<compile_context>
chip_gen: v7x
topology: tpu7x:2x2x1
jax: 0.10.0
libtpu: 0.0.40
codegen_flags: <defaults>
</compile_context>

<pallas_src>
import functools

import jax
import jax.numpy as jnp
from jax import lax
from jax.experimental import pallas as pl
from jax.experimental.pallas import tpu as pltpu

# ---- model hyperparameters (forward-consistent small feature dims) ----
EMBED_T = 8
EMBED_X = 16
EMBED_C = 8
INTERNAL = 32
NUM_LAYERS = 3
N_BLOCKS = 2
BOTTLENECK = EMBED_X
SIZE_OUT = EMBED_X                      # residual x = x + block(...) needs size_out == embed_x
SIZE_IN = EMBED_T + EMBED_X + EMBED_C   # 32

LANE = 128
CHUNK = 512                             # in-kernel lane sub-chunk (vreg-pressure cap)


def _layer_dims():
    """Static (in_dim, out_dim, scale) per Linear layer, matching Resnet/Subnet."""
    dims = []
    for blk in range(N_BLOCKS):
        block_in = SIZE_IN if blk == 0 else EMBED_T + BOTTLENECK + EMBED_C
        block_out = SIZE_OUT if blk == N_BLOCKS - 1 else BOTTLENECK
        for layer in range(NUM_LAYERS):
            i = block_in if layer == 0 else INTERNAL
            o = block_out if layer == NUM_LAYERS - 1 else INTERNAL
            s = 0.02 if layer == NUM_LAYERS - 1 else 1.0   # Subnet scales its last layer
            dims.append((i, o, s))
    return dims


def _slab_width():
    return max(i for i, _, _ in _layer_dims())             # 32


def init_params(key):
    """nn.Linear-style init (uniform +-1/sqrt(fan_in)).  Returns two fused
    parameter slabs: bf16 weights [sum(out), 32] (PyTorch [out,in] rows
    stacked, zero-padded to slab width) and f32 biases [sum(out), 1]."""
    dims = _layer_dims()
    width = _slab_width()
    w_rows, b_rows = [], []
    for (in_dim, out_dim, scale) in dims:
        key, kw, kb = jax.random.split(key, 3)
        bound = 1.0 / (in_dim ** 0.5)
        w = jax.random.uniform(kw, (out_dim, in_dim), jnp.float32, -bound, bound) * scale
        b = jax.random.uniform(kb, (out_dim, 1), jnp.float32, -bound, bound) * scale
        w_rows.append(jnp.pad(w, ((0, 0), (0, width - in_dim))))
        b_rows.append(b)
    w_slab = jnp.concatenate(w_rows, axis=0).astype(jnp.bfloat16)   # [160, 32] bf16
    b_slab = jnp.concatenate(b_rows, axis=0)                        # [160, 1]  f32
    return w_slab, b_slab


def _make_kernel(num_chunks, chunk):
    dims = _layer_dims()

    def kernel(x_ref, w_ref, b_ref, o_ref):
        # x_ref: [SIZE_IN, tb] bf16 (features on sublanes, batch on lanes).
        # w_ref: [160, 32] bf16 resident weight slab; b_ref: [160, 1] f32 biases.
        # o_ref: [SIZE_OUT, tb] bf16.
        def chunk_body(j, carry):
            start = pl.multiple_of(j * chunk, chunk)
            net = x_ref[:, pl.ds(start, chunk)]                 # [32, chunk] bf16
            t = net[:EMBED_T, :]                                # [8,  chunk] bf16
            c = net[EMBED_T + EMBED_X:, :]                      # [8,  chunk] bf16
            x = net[EMBED_T:EMBED_T + EMBED_X, :].astype(jnp.float32)   # f32 residual

            cat = net                                           # block-0 concat == input
            row = 0
            li = 0
            for blk in range(N_BLOCKS):                         # statically unrolled
                h = None
                for layer in range(NUM_LAYERS):
                    in_dim, out_dim, _ = dims[li]
                    li += 1
                    w = w_ref[row:row + out_dim, :in_dim]       # static slice -> free view
                    b = b_ref[row:row + out_dim, :]
                    row += out_dim
                    a = cat if layer == 0 else h.astype(jnp.bfloat16)
                    h = jnp.dot(w, a, preferred_element_type=jnp.float32) + b
                    if layer < NUM_LAYERS - 1:
                        h = h * jax.nn.sigmoid(h)               # SiLU in f32 (EUP + VPU)
                x = x + h                                       # residual, [EMBED_X, chunk] f32
                if blk < N_BLOCKS - 1:
                    # Rebuild the concat input for the next block; only the x rows
                    # change. f32 concat keeps sublane offsets (0,8,24) 8-aligned.
                    cat = jnp.concatenate(
                        [t.astype(jnp.float32), x, c.astype(jnp.float32)],
                        axis=0).astype(jnp.bfloat16)
            o_ref[:, pl.ds(start, chunk)] = x.astype(o_ref.dtype)
            return carry

        lax.fori_loop(0, num_chunks, chunk_body, 0, unroll=True)

    return kernel


def _forward_fmajor(x_t, w_slab, b_slab, n_tiles):
    """Lane-dense entry point: x_t is [SIZE_IN, Bp] bf16 with Bp % (128*n_tiles) == 0.
    Returns [SIZE_OUT, Bp] bf16.  No wrapper-side layout ops."""
    D, Bp = x_t.shape
    assert D == SIZE_IN and Bp % (LANE * n_tiles) == 0
    tb = Bp // n_tiles
    chunk = CHUNK if tb % CHUNK == 0 else (256 if tb % 256 == 0 else LANE)
    num_chunks = tb // chunk

    return pl.pallas_call(
        _make_kernel(num_chunks, chunk),
        out_shape=jax.ShapeDtypeStruct((SIZE_OUT, Bp), jnp.bfloat16),
        grid=(n_tiles,),
        in_specs=[
            pl.BlockSpec((SIZE_IN, tb), lambda i: (0, i)),
            pl.BlockSpec(w_slab.shape, lambda i: (0, 0)),   # constant index -> resident
            pl.BlockSpec(b_slab.shape, lambda i: (0, 0)),   # constant index -> resident
        ],
        out_specs=pl.BlockSpec((SIZE_OUT, tb), lambda i: (0, i)),
        compiler_params=pltpu.CompilerParams(
            dimension_semantics=("parallel",)),
    )(x_t, w_slab, b_slab)


def num_grid_tiles():
    """Exactly 2 grid steps on v7x (one per TensorCore); 1 step on single-TC
    chips (v5e/v6e) where extra steps only cost ~0.35 us each."""
    try:
        kind = jax.devices()[0].device_kind.lower()
        if "v7" in kind:
            return 2
    except Exception:
        pass
    return 1


@functools.partial(jax.jit, static_argnames=("n_tiles",))
def resnet_forward(net_in, w_slab, b_slab, n_tiles=1):
    """net_in: [B, SIZE_IN] (any float dtype). Returns [B, EMBED_X] bf16.
    Pad/cast/transpose are layout plumbing fused under this jit; callers that
    already keep activations lane-dense should use _forward_fmajor directly."""
    B, D = net_in.shape
    assert D == SIZE_IN
    quantum = LANE * n_tiles
    Bp = ((B + quantum - 1) // quantum) * quantum          # lane-dense, unmasked stores

    x = net_in.astype(jnp.bfloat16)
    if Bp != B:
        x = jnp.pad(x, ((0, Bp - B), (0, 0)))
    out_t = _forward_fmajor(x.T, w_slab, b_slab, n_tiles)
    return out_t.T[:B]


def resnet_reference(net_in, w_slab, b_slab):
    """Plain-JAX f32 reference (batch-major) on the same bf16-quantized data."""
    dims = _layer_dims()
    f32 = lambda a: a.astype(jnp.float32)
    W, Bv = f32(w_slab), f32(b_slab)[:, 0]
    t = f32(net_in[:, :EMBED_T])
    x = f32(net_in[:, EMBED_T:EMBED_T + EMBED_X])
    c = f32(net_in[:, EMBED_T + EMBED_X:])
    row, li = 0, 0
    for _blk in range(N_BLOCKS):
        h = jnp.concatenate([t, x, c], axis=-1)
        for layer in range(NUM_LAYERS):
            in_dim, out_dim, _ = dims[li]
            li += 1
            w = W[row:row + out_dim, :in_dim]
            b = Bv[row:row + out_dim]
            row += out_dim
            h = h @ w.T + b
            if layer < NUM_LAYERS - 1:
                h = h * jax.nn.sigmoid(h)
        x = x + h
    return x


if __name__ == "__main__":
    key = jax.random.PRNGKey(0)
    key, k_in, k_params = jax.random.split(key, 3)

    B = 2048
    net_in = jax.random.normal(k_in, (B, SIZE_IN), dtype=jnp.float32).astype(jnp.bfloat16)
    w_slab, b_slab = init_params(k_params)

    n_tiles = num_grid_tiles()                      # 2 on v7x, else 1
    out = resnet_forward(net_in, w_slab, b_slab, n_tiles=n_tiles)
    out = jax.block_until_ready(out)

    ref = resnet_reference(net_in, w_slab, b_slab)
    assert out.shape == (B, EMBED_X)
    out_f32 = out.astype(jnp.float32)
    max_err = float(jnp.max(jnp.abs(out_f32 - ref)))
    assert jnp.allclose(out_f32, ref, atol=3e-2, rtol=3e-2), f"mismatch vs ref, max|err|={max_err}"

    print("KERNEL_OK")
</pallas_src>

<mosaic_0001>
module attributes {stable_mosaic.version = 11 : i64} {
  func.func @kernel(%arg0: i32, %arg1: memref<32x2048xbf16, #tpu.memory_space<vmem>>, %arg2: memref<160x32xbf16, #tpu.memory_space<vmem>>, %arg3: memref<160x1xf32, #tpu.memory_space<vmem>>, %arg4: memref<16x2048xbf16, #tpu.memory_space<vmem>>) attributes {dimension_semantics = [#tpu.dimension_semantics<parallel>], iteration_bounds = array<i64: 1>, scalar_prefetch = 0 : i64, scratch_operands = 0 : i64, tpu.core_type = #tpu.core_type<tc>, window_params = [{transform_indices = @transform_0, window_bounds = array<i64: 32, 2048>}, {pipeline_mode = #tpu.pipeline_mode<synchronous>, transform_indices = @transform_1, window_bounds = array<i64: 160, 32>}, {pipeline_mode = #tpu.pipeline_mode<synchronous>, transform_indices = @transform_2, window_bounds = array<i64: 160, 1>}, {transform_indices = @transform_3, window_bounds = array<i64: 16, 2048>}]} {
    %c0_i32 = arith.constant 0 : i32
    %c512_i32 = arith.constant 512 : i32
    %0 = arith.muli %c0_i32, %c512_i32 : i32
    %1 = tpu.assume_multiple %0, 512 : i32
    %c0 = arith.constant 0 : index
    %2 = arith.index_cast %1 : i32 to index
    %3 = vector.load %arg1[%c0, %2] : memref<32x2048xbf16, #tpu.memory_space<vmem>>, vector<32x512xbf16>
    %4 = vector.extract_strided_slice %3 {offsets = [0, 0], sizes = [8, 512], strides = [1, 1]} : vector<32x512xbf16> to vector<8x512xbf16>
    %5 = vector.extract_strided_slice %3 {offsets = [24, 0], sizes = [8, 512], strides = [1, 1]} : vector<32x512xbf16> to vector<8x512xbf16>
    %6 = vector.extract_strided_slice %3 {offsets = [8, 0], sizes = [16, 512], strides = [1, 1]} : vector<32x512xbf16> to vector<16x512xbf16>
    %7 = arith.extf %6 : vector<16x512xbf16> to vector<16x512xf32>
    %c0_0 = arith.constant 0 : index
    %c0_1 = arith.constant 0 : index
    %8 = vector.load %arg2[%c0_0, %c0_1] : memref<160x32xbf16, #tpu.memory_space<vmem>>, vector<32x32xbf16>
    %c0_2 = arith.constant 0 : index
    %c0_3 = arith.constant 0 : index
    %9 = vector.load %arg3[%c0_2, %c0_3] : memref<160x1xf32, #tpu.memory_space<vmem>>, vector<32x1xf32>
    %cst = arith.constant dense<0.000000e+00> : vector<32x512xf32>
    %10 = tpu.matmul %8, %3, %cst {dimension_numbers = #tpu.dot_dimension_numbers<[1], [0], [0], [1], [0, 0, 1, 1], [], []>} : vector<32x32xbf16>, vector<32x512xbf16>, vector<32x512xf32> -> vector<32x512xf32>
    %11 = vector.broadcast %9 : vector<32x1xf32> to vector<32x512xf32>
    %12 = arith.addf %10, %11 : vector<32x512xf32>
    %13 = arith.negf %12 : vector<32x512xf32>
    %14 = math.exp %13 : vector<32x512xf32>
    %cst_4 = arith.constant 1.000000e+00 : f32
    %15 = vector.broadcast %cst_4 : f32 to vector<32x512xf32>
    %16 = arith.addf %15, %14 : vector<32x512xf32>
    %17 = arith.divf %15, %16 : vector<32x512xf32>
    %18 = arith.mulf %12, %17 : vector<32x512xf32>
    %c32 = arith.constant 32 : index
    %c0_5 = arith.constant 0 : index
    %19 = vector.load %arg2[%c32, %c0_5] : memref<160x32xbf16, #tpu.memory_space<vmem>>, vector<32x32xbf16>
    %c32_6 = arith.constant 32 : index
    %c0_7 = arith.constant 0 : index
    %20 = vector.load %arg3[%c32_6, %c0_7] : memref<160x1xf32, #tpu.memory_space<vmem>>, vector<32x1xf32>
    %21 = arith.truncf %18 : vector<32x512xf32> to vector<32x512xbf16>
    %cst_8 = arith.constant dense<0.000000e+00> : vector<32x512xf32>
    %22 = tpu.matmul %19, %21, %cst_8 {dimension_numbers = #tpu.dot_dimension_numbers<[1], [0], [0], [1], [0, 0, 1, 1], [], []>} : vector<32x32xbf16>, vector<32x512xbf16>, vector<32x512xf32> -> vector<32x512xf32>
    %23 = vector.broadcast %20 : vector<32x1xf32> to vector<32x512xf32>
    %24 = arith.addf %22, %23 : vector<32x512xf32>
    %25 = arith.negf %24 : vector<32x512xf32>
    %26 = math.exp %25 : vector<32x512xf32>
    %cst_9 = arith.constant 1.000000e+00 : f32
    %27 = vector.broadcast %cst_9 : f32 to vector<32x512xf32>
    %28 = arith.addf %27, %26 : vector<32x512xf32>
    %29 = arith.divf %27, %28 : vector<32x512xf32>
    %30 = arith.mulf %24, %29 : vector<32x512xf32>
    %c64 = arith.constant 64 : index
    %c0_10 = arith.constant 0 : index
    %31 = vector.load %arg2[%c64, %c0_10] : memref<160x32xbf16, #tpu.memory_space<vmem>>, vector<16x32xbf16>
    %c64_11 = arith.constant 64 : index
    %c0_12 = arith.constant 0 : index
    %32 = vector.load %arg3[%c64_11, %c0_12] : memref<160x1xf32, #tpu.memory_space<vmem>>, vector<16x1xf32>
    %33 = arith.truncf %30 : vector<32x512xf32> to vector<32x512xbf16>
    %cst_13 = arith.constant dense<0.000000e+00> : vector<16x512xf32>
    %34 = tpu.matmul %31, %33, %cst_13 {dimension_numbers = #tpu.dot_dimension_numbers<[1], [0], [0], [1], [0, 0, 1, 1], [], []>} : vector<16x32xbf16>, vector<32x512xbf16>, vector<16x512xf32> -> vector<16x512xf32>
    %35 = vector.broadcast %32 : vector<16x1xf32> to vector<16x512xf32>
    %36 = arith.addf %34, %35 : vector<16x512xf32>
    %37 = arith.addf %7, %36 : vector<16x512xf32>
    %38 = arith.extf %4 : vector<8x512xbf16> to vector<8x512xf32>
    %39 = arith.extf %5 : vector<8x512xbf16> to vector<8x512xf32>
    %40 = tpu.concatenate %38, %37, %39 in 0 : vector<8x512xf32>, vector<16x512xf32>, vector<8x512xf32> -> vector<32x512xf32>
    %41 = arith.truncf %40 : vector<32x512xf32> to vector<32x512xbf16>
    %c80 = arith.constant 80 : index
    %c0_14 = arith.constant 0 : index
    %42 = vector.load %arg2[%c80, %c0_14] : memref<160x32xbf16, #tpu.memory_space<vmem>>, vector<32x32xbf16>
    %c80_15 = arith.constant 80 : index
    %c0_16 = arith.constant 0 : index
    %43 = vector.load %arg3[%c80_15, %c0_16] : memref<160x1xf32, #tpu.memory_space<vmem>>, vector<32x1xf32>
    %cst_17 = arith.constant dense<0.000000e+00> : vector<32x512xf32>
    %44 = tpu.matmul %42, %41, %cst_17 {dimension_numbers = #tpu.dot_dimension_numbers<[1], [0], [0], [1], [0, 0, 1, 1], [], []>} : vector<32x32xbf16>, vector<32x512xbf16>, vector<32x512xf32> -> vector<32x512xf32>
    %45 = vector.broadcast %43 : vector<32x1xf32> to vector<32x512xf32>
    %46 = arith.addf %44, %45 : vector<32x512xf32>
    %47 = arith.negf %46 : vector<32x512xf32>
    %48 = math.exp %47 : vector<32x512xf32>
    %cst_18 = arith.constant 1.000000e+00 : f32
    %49 = vector.broadcast %cst_18 : f32 to vector<32x512xf32>
    %50 = arith.addf %49, %48 : vector<32x512xf32>
    %51 = arith.divf %49, %50 : vector<32x512xf32>
    %52 = arith.mulf %46, %51 : vector<32x512xf32>
    %c112 = arith.constant 112 : index
    %c0_19 = arith.constant 0 : index
    %53 = vector.load %arg2[%c112, %c0_19] : memref<160x32xbf16, #tpu.memory_space<vmem>>, vector<32x32xbf16>
    %c112_20 = arith.constant 112 : index
    %c0_21 = arith.constant 0 : index
    %54 = vector.load %arg3[%c112_20, %c0_21] : memref<160x1xf32, #tpu.memory_space<vmem>>, vector<32x1xf32>
    %55 = arith.truncf %52 : vector<32x512xf32> to vector<32x512xbf16>
    %cst_22 = arith.constant dense<0.000000e+00> : vector<32x512xf32>
    %56 = tpu.matmul %53, %55, %cst_22 {dimension_numbers = #tpu.dot_dimension_numbers<[1], [0], [0], [1], [0, 0, 1, 1], [], []>} : vector<32x32xbf16>, vector<32x512xbf16>, vector<32x512xf32> -> vector<32x512xf32>
    %57 = vector.broadcast %54 : vector<32x1xf32> to vector<32x512xf32>
    %58 = arith.addf %56, %57 : vector<32x512xf32>
    %59 = arith.negf %58 : vector<32x512xf32>
    %60 = math.exp %59 : vector<32x512xf32>
    %cst_23 = arith.constant 1.000000e+00 : f32
    %61 = vector.broadcast %cst_23 : f32 to vector<32x512xf32>
    %62 = arith.addf %61, %60 : vector<32x512xf32>
    %63 = arith.divf %61, %62 : vector<32x512xf32>
    %64 = arith.mulf %58, %63 : vector<32x512xf32>
    %c144 = arith.constant 144 : index
    %c0_24 = arith.constant 0 : index
    %65 = vector.load %arg2[%c144, %c0_24] : memref<160x32xbf16, #tpu.memory_space<vmem>>, vector<16x32xbf16>
    %c144_25 = arith.constant 144 : index
    %c0_26 = arith.constant 0 : index
    %66 = vector.load %arg3[%c144_25, %c0_26] : memref<160x1xf32, #tpu.memory_space<vmem>>, vector<16x1xf32>
    %67 = arith.truncf %64 : vector<32x512xf32> to vector<32x512xbf16>
    %cst_27 = arith.constant dense<0.000000e+00> : vector<16x512xf32>
    %68 = tpu.matmul %65, %67, %cst_27 {dimension_numbers = #tpu.dot_dimension_numbers<[1], [0], [0], [1], [0, 0, 1, 1], [], []>} : vector<16x32xbf16>, vector<32x512xbf16>, vector<16x512xf32> -> vector<16x512xf32>
    %69 = vector.broadcast %66 : vector<16x1xf32> to vector<16x512xf32>
    %70 = arith.addf %68, %69 : vector<16x512xf32>
    %71 = arith.addf %37, %70 : vector<16x512xf32>
    %72 = arith.truncf %71 : vector<16x512xf32> to vector<16x512xbf16>
    %c0_28 = arith.constant 0 : index
    %73 = arith.index_cast %1 : i32 to index
    %74 = vector.load %arg4[%c0_28, %73] : memref<16x2048xbf16, #tpu.memory_space<vmem>>, vector<16x512xbf16>
    tpu.vector_store %arg4[%c0_28, %73], %72 {strides = array<i32>} : memref<16x2048xbf16, #tpu.memory_space<vmem>>, vector<16x512xbf16>,
    %c1_i32 = arith.constant 1 : i32
    %c512_i32_29 = arith.constant 512 : i32
    %75 = arith.muli %c1_i32, %c512_i32_29 : i32
    %76 = tpu.assume_multiple %75, 512 : i32
    %c0_30 = arith.constant 0 : index
    %77 = arith.index_cast %76 : i32 to index
    %78 = vector.load %arg1[%c0_30, %77] : memref<32x2048xbf16, #tpu.memory_space<vmem>>, vector<32x512xbf16>
    %79 = vector.extract_strided_slice %78 {offsets = [0, 0], sizes = [8, 512], strides = [1, 1]} : vector<32x512xbf16> to vector<8x512xbf16>
    %80 = vector.extract_strided_slice %78 {offsets = [24, 0], sizes = [8, 512], strides = [1, 1]} : vector<32x512xbf16> to vector<8x512xbf16>
    %81 = vector.extract_strided_slice %78 {offsets = [8, 0], sizes = [16, 512], strides = [1, 1]} : vector<32x512xbf16> to vector<16x512xbf16>
    %82 = arith.extf %81 : vector<16x512xbf16> to vector<16x512xf32>
    %c0_31 = arith.constant 0 : index
    %c0_32 = arith.constant 0 : index
    %83 = vector.load %arg2[%c0_31, %c0_32] : memref<160x32xbf16, #tpu.memory_space<vmem>>, vector<32x32xbf16>
    %c0_33 = arith.constant 0 : index
    %c0_34 = arith.constant 0 : index
    %84 = vector.load %arg3[%c0_33, %c0_34] : memref<160x1xf32, #tpu.memory_space<vmem>>, vector<32x1xf32>
    %cst_35 = arith.constant dense<0.000000e+00> : vector<32x512xf32>
    %85 = tpu.matmul %83, %78, %cst_35 {dimension_numbers = #tpu.dot_dimension_numbers<[1], [0], [0], [1], [0, 0, 1, 1], [], []>} : vector<32x32xbf16>, vector<32x512xbf16>, vector<32x512xf32> -> vector<32x512xf32>
    %86 = vector.broadcast %84 : vector<32x1xf32> to vector<32x512xf32>
    %87 = arith.addf %85, %86 : vector<32x512xf32>
    %88 = arith.negf %87 : vector<32x512xf32>
    %89 = math.exp %88 : vector<32x512xf32>
    %cst_36 = arith.constant 1.000000e+00 : f32
    %90 = vector.broadcast %cst_36 : f32 to vector<32x512xf32>
    %91 = arith.addf %90, %89 : vector<32x512xf32>
    %92 = arith.divf %90, %91 : vector<32x512xf32>
    %93 = arith.mulf %87, %92 : vector<32x512xf32>
    %c32_37 = arith.constant 32 : index
    %c0_38 = arith.constant 0 : index
    %94 = vector.load %arg2[%c32_37, %c0_38] : memref<160x32xbf16, #tpu.memory_space<vmem>>, vector<32x32xbf16>
    %c32_39 = arith.constant 32 : index
    %c0_40 = arith.constant 0 : index
    %95 = vector.load %arg3[%c32_39, %c0_40] : memref<160x1xf32, #tpu.memory_space<vmem>>, vector<32x1xf32>
    %96 = arith.truncf %93 : vector<32x512xf32> to vector<32x512xbf16>
    %cst_41 = arith.constant dense<0.000000e+00> : vector<32x512xf32>
    %97 = tpu.matmul %94, %96, %cst_41 {dimension_numbers = #tpu.dot_dimension_numbers<[1], [0], [0], [1], [0, 0, 1, 1], [], []>} : vector<32x32xbf16>, vector<32x512xbf16>, vector<32x512xf32> -> vector<32x512xf32>
    %98 = vector.broadcast %95 : vector<32x1xf32> to vector<32x512xf32>
    %99 = arith.addf %97, %98 : vector<32x512xf32>
    %100 = arith.negf %99 : vector<32x512xf32>
    %101 = math.exp %100 : vector<32x512xf32>
    %cst_42 = arith.constant 1.000000e+00 : f32
    %102 = vector.broadcast %cst_42 : f32 to vector<32x512xf32>
    %103 = arith.addf %102, %101 : vector<32x512xf32>
    %104 = arith.divf %102, %103 : vector<32x512xf32>
    %105 = arith.mulf %99, %104 : vector<32x512xf32>
    %c64_43 = arith.constant 64 : index
    %c0_44 = arith.constant 0 : index
    %106 = vector.load %arg2[%c64_43, %c0_44] : memref<160x32xbf16, #tpu.memory_space<vmem>>, vector<16x32xbf16>
    %c64_45 = arith.constant 64 : index
    %c0_46 = arith.constant 0 : index
    %107 = vector.load %arg3[%c64_45, %c0_46] : memref<160x1xf32, #tpu.memory_space<vmem>>, vector<16x1xf32>
    %108 = arith.truncf %105 : vector<32x512xf32> to vector<32x512xbf16>
    %cst_47 = arith.constant dense<0.000000e+00> : vector<16x512xf32>
    %109 = tpu.matmul %106, %108, %cst_47 {dimension_numbers = #tpu.dot_dimension_numbers<[1], [0], [0], [1], [0, 0, 1, 1], [], []>} : vector<16x32xbf16>, vector<32x512xbf16>, vector<16x512xf32> -> vector<16x512xf32>
    %110 = vector.broadcast %107 : vector<16x1xf32> to vector<16x512xf32>
    %111 = arith.addf %109, %110 : vector<16x512xf32>
    %112 = arith.addf %82, %111 : vector<16x512xf32>
    %113 = arith.extf %79 : vector<8x512xbf16> to vector<8x512xf32>
    %114 = arith.extf %80 : vector<8x512xbf16> to vector<8x512xf32>
    %115 = tpu.concatenate %113, %112, %114 in 0 : vector<8x512xf32>, vector<16x512xf32>, vector<8x512xf32> -> vector<32x512xf32>
    %116 = arith.truncf %115 : vector<32x512xf32> to vector<32x512xbf16>
    %c80_48 = arith.constant 80 : index
    %c0_49 = arith.constant 0 : index
    %117 = vector.load %arg2[%c80_48, %c0_49] : memref<160x32xbf16, #tpu.memory_space<vmem>>, vector<32x32xbf16>
    %c80_50 = arith.constant 80 : index
    %c0_51 = arith.constant 0 : index
    %118 = vector.load %arg3[%c80_50, %c0_51] : memref<160x1xf32, #tpu.memory_space<vmem>>, vector<32x1xf32>
    %cst_52 = arith.constant dense<0.000000e+00> : vector<32x512xf32>
    %119 = tpu.matmul %117, %116, %cst_52 {dimension_numbers = #tpu.dot_dimension_numbers<[1], [0], [0], [1], [0, 0, 1, 1], [], []>} : vector<32x32xbf16>, vector<32x512xbf16>, vector<32x512xf32> -> vector<32x512xf32>
    %120 = vector.broadcast %118 : vector<32x1xf32> to vector<32x512xf32>
    %121 = arith.addf %119, %120 : vector<32x512xf32>
    %122 = arith.negf %121 : vector<32x512xf32>
    %123 = math.exp %122 : vector<32x512xf32>
    %cst_53 = arith.constant 1.000000e+00 : f32
    %124 = vector.broadcast %cst_53 : f32 to vector<32x512xf32>
    %125 = arith.addf %124, %123 : vector<32x512xf32>
    %126 = arith.divf %124, %125 : vector<32x512xf32>
    %127 = arith.mulf %121, %126 : vector<32x512xf32>
    %c112_54 = arith.constant 112 : index
    %c0_55 = arith.constant 0 : index
    %128 = vector.load %arg2[%c112_54, %c0_55] : memref<160x32xbf16, #tpu.memory_space<vmem>>, vector<32x32xbf16>
    %c112_56 = arith.constant 112 : index
    %c0_57 = arith.constant 0 : index
    %129 = vector.load %arg3[%c112_56, %c0_57] : memref<160x1xf32, #tpu.memory_space<vmem>>, vector<32x1xf32>
    %130 = arith.truncf %127 : vector<32x512xf32> to vector<32x512xbf16>
    %cst_58 = arith.constant dense<0.000000e+00> : vector<32x512xf32>
    %131 = tpu.matmul %128, %130, %cst_58 {dimension_numbers = #tpu.dot_dimension_numbers<[1], [0], [0], [1], [0, 0, 1, 1], [], []>} : vector<32x32xbf16>, vector<32x512xbf16>, vector<32x512xf32> -> vector<32x512xf32>
    %132 = vector.broadcast %129 : vector<32x1xf32> to vector<32x512xf32>
    %133 = arith.addf %131, %132 : vector<32x512xf32>
    %134 = arith.negf %133 : vector<32x512xf32>
    %135 = math.exp %134 : vector<32x512xf32>
    %cst_59 = arith.constant 1.000000e+00 : f32
    %136 = vector.broadcast %cst_59 : f32 to vector<32x512xf32>
    %137 = arith.addf %136, %135 : vector<32x512xf32>
    %138 = arith.divf %136, %137 : vector<32x512xf32>
    %139 = arith.mulf %133, %138 : vector<32x512xf32>
    %c144_60 = arith.constant 144 : index
    %c0_61 = arith.constant 0 : index
    %140 = vector.load %arg2[%c144_60, %c0_61] : memref<160x32xbf16, #tpu.memory_space<vmem>>, vector<16x32xbf16>
    %c144_62 = arith.constant 144 : index
    %c0_63 = arith.constant 0 : index
    %141 = vector.load %arg3[%c144_62, %c0_63] : memref<160x1xf32, #tpu.memory_space<vmem>>, vector<16x1xf32>
    %142 = arith.truncf %139 : vector<32x512xf32> to vector<32x512xbf16>
    %cst_64 = arith.constant dense<0.000000e+00> : vector<16x512xf32>
    %143 = tpu.matmul %140, %142, %cst_64 {dimension_numbers = #tpu.dot_dimension_numbers<[1], [0], [0], [1], [0, 0, 1, 1], [], []>} : vector<16x32xbf16>, vector<32x512xbf16>, vector<16x512xf32> -> vector<16x512xf32>
    %144 = vector.broadcast %141 : vector<16x1xf32> to vector<16x512xf32>
    %145 = arith.addf %143, %144 : vector<16x512xf32>
    %146 = arith.addf %112, %145 : vector<16x512xf32>
    %147 = arith.truncf %146 : vector<16x512xf32> to vector<16x512xbf16>
    %c0_65 = arith.constant 0 : index
    %148 = arith.index_cast %76 : i32 to index
    %149 = vector.load %arg4[%c0_65, %148] : memref<16x2048xbf16, #tpu.memory_space<vmem>>, vector<16x512xbf16>
    tpu.vector_store %arg4[%c0_65, %148], %147 {strides = array<i32>} : memref<16x2048xbf16, #tpu.memory_space<vmem>>, vector<16x512xbf16>,
    %c2_i32 = arith.constant 2 : i32
    %c512_i32_66 = arith.constant 512 : i32
    %150 = arith.muli %c2_i32, %c512_i32_66 : i32
    %151 = tpu.assume_multiple %150, 512 : i32
    %c0_67 = arith.constant 0 : index
    %152 = arith.index_cast %151 : i32 to index
    %153 = vector.load %arg1[%c0_67, %152] : memref<32x2048xbf16, #tpu.memory_space<vmem>>, vector<32x512xbf16>
    %154 = vector.extract_strided_slice %153 {offsets = [0, 0], sizes = [8, 512], strides = [1, 1]} : vector<32x512xbf16> to vector<8x512xbf16>
    %155 = vector.extract_strided_slice %153 {offsets = [24, 0], sizes = [8, 512], strides = [1, 1]} : vector<32x512xbf16> to vector<8x512xbf16>
    %156 = vector.extract_strided_slice %153 {offsets = [8, 0], sizes = [16, 512], strides = [1, 1]} : vector<32x512xbf16> to vector<16x512xbf16>
    %157 = arith.extf %156 : vector<16x512xbf16> to vector<16x512xf32>
    %c0_68 = arith.constant 0 : index
    %c0_69 = arith.constant 0 : index
    %158 = vector.load %arg2[%c0_68, %c0_69] : memref<160x32xbf16, #tpu.memory_space<vmem>>, vector<32x32xbf16>
    %c0_70 = arith.constant 0 : index
    %c0_71 = arith.constant 0 : index
    %159 = vector.load %arg3[%c0_70, %c0_71] : memref<160x1xf32, #tpu.memory_space<vmem>>, vector<32x1xf32>
    %cst_72 = arith.constant dense<0.000000e+00> : vector<32x512xf32>
    %160 = tpu.matmul %158, %153, %cst_72 {dimension_numbers = #tpu.dot_dimension_numbers<[1], [0], [0], [1], [0, 0, 1, 1], [], []>} : vector<32x32xbf16>, vector<32x512xbf16>, vector<32x512xf32> -> vector<32x512xf32>
    %161 = vector.broadcast %159 : vector<32x1xf32> to vector<32x512xf32>
    %162 = arith.addf %160, %161 : vector<32x512xf32>
    %163 = arith.negf %162 : vector<32x512xf32>
    %164 = math.exp %163 : vector<32x512xf32>
    %cst_73 = arith.constant 1.000000e+00 : f32
    %165 = vector.broadcast %cst_73 : f32 to vector<32x512xf32>
    %166 = arith.addf %165, %164 : vector<32x512xf32>
    %167 = arith.divf %165, %166 : vector<32x512xf32>
    %168 = arith.mulf %162, %167 : vector<32x512xf32>
    %c32_74 = arith.constant 32 : index
    %c0_75 = arith.constant 0 : index
    %169 = vector.load %arg2[%c32_74, %c0_75] : memref<160x32xbf16, #tpu.memory_space<vmem>>, vector<32x32xbf16>
    %c32_76 = arith.constant 32 : index
    %c0_77 = arith.constant 0 : index
    %170 = vector.load %arg3[%c32_76, %c0_77] : memref<160x1xf32, #tpu.memory_space<vmem>>, vector<32x1xf32>
    %171 = arith.truncf %168 : vector<32x512xf32> to vector<32x512xbf16>
    %cst_78 = arith.constant dense<0.000000e+00> : vector<32x512xf32>
    %172 = tpu.matmul %169, %171, %cst_78 {dimension_numbers = #tpu.dot_dimension_numbers<[1], [0], [0], [1], [0, 0, 1, 1], [], []>} : vector<32x32xbf16>, vector<32x512xbf16>, vector<32x512xf32> -> vector<32x512xf32>
    %173 = vector.broadcast %170 : vector<32x1xf32> to vector<32x512xf32>
    %174 = arith.addf %172, %173 : vector<32x512xf32>
    %175 = arith.negf %174 : vector<32x512xf32>
    %176 = math.exp %175 : vector<32x512xf32>
    %cst_79 = arith.constant 1.000000e+00 : f32
    %177 = vector.broadcast %cst_79 : f32 to vector<32x512xf32>
    %178 = arith.addf %177, %176 : vector<32x512xf32>
    %179 = arith.divf %177, %178 : vector<32x512xf32>
    %180 = arith.mulf %174, %179 : vector<32x512xf32>
    %c64_80 = arith.constant 64 : index
    %c0_81 = arith.constant 0 : index
    %181 = vector.load %arg2[%c64_80, %c0_81] : memref<160x32xbf16, #tpu.memory_space<vmem>>, vector<16x32xbf16>
    %c64_82 = arith.constant 64 : index
    %c0_83 = arith.constant 0 : index
    %182 = vector.load %arg3[%c64_82, %c0_83] : memref<160x1xf32, #tpu.memory_space<vmem>>, vector<16x1xf32>
    %183 = arith.truncf %180 : vector<32x512xf32> to vector<32x512xbf16>
    %cst_84 = arith.constant dense<0.000000e+00> : vector<16x512xf32>
    %184 = tpu.matmul %181, %183, %cst_84 {dimension_numbers = #tpu.dot_dimension_numbers<[1], [0], [0], [1], [0, 0, 1, 1], [], []>} : vector<16x32xbf16>, vector<32x512xbf16>, vector<16x512xf32> -> vector<16x512xf32>
    %185 = vector.broadcast %182 : vector<16x1xf32> to vector<16x512xf32>
    %186 = arith.addf %184, %185 : vector<16x512xf32>
    %187 = arith.addf %157, %186 : vector<16x512xf32>
    %188 = arith.extf %154 : vector<8x512xbf16> to vector<8x512xf32>
    %189 = arith.extf %155 : vector<8x512xbf16> to vector<8x512xf32>
    %190 = tpu.concatenate %188, %187, %189 in 0 : vector<8x512xf32>, vector<16x512xf32>, vector<8x512xf32> -> vector<32x512xf32>
    %191 = arith.truncf %190 : vector<32x512xf32> to vector<32x512xbf16>
    %c80_85 = arith.constant 80 : index
    %c0_86 = arith.constant 0 : index
    %192 = vector.load %arg2[%c80_85, %c0_86] : memref<160x32xbf16, #tpu.memory_space<vmem>>, vector<32x32xbf16>
    %c80_87 = arith.constant 80 : index
    %c0_88 = arith.constant 0 : index
    %193 = vector.load %arg3[%c80_87, %c0_88] : memref<160x1xf32, #tpu.memory_space<vmem>>, vector<32x1xf32>
    %cst_89 = arith.constant dense<0.000000e+00> : vector<32x512xf32>
    %194 = tpu.matmul %192, %191, %cst_89 {dimension_numbers = #tpu.dot_dimension_numbers<[1], [0], [0], [1], [0, 0, 1, 1], [], []>} : vector<32x32xbf16>, vector<32x512xbf16>, vector<32x512xf32> -> vector<32x512xf32>
    %195 = vector.broadcast %193 : vector<32x1xf32> to vector<32x512xf32>
    %196 = arith.addf %194, %195 : vector<32x512xf32>
    %197 = arith.negf %196 : vector<32x512xf32>
    %198 = math.exp %197 : vector<32x512xf32>
    %cst_90 = arith.constant 1.000000e+00 : f32
    %199 = vector.broadcast %cst_90 : f32 to vector<32x512xf32>
    %200 = arith.addf %199, %198 : vector<32x512xf32>
    %201 = arith.divf %199, %200 : vector<32x512xf32>
    %202 = arith.mulf %196, %201 : vector<32x512xf32>
    %c112_91 = arith.constant 112 : index
    %c0_92 = arith.constant 0 : index
    %203 = vector.load %arg2[%c112_91, %c0_92] : memref<160x32xbf16, #tpu.memory_space<vmem>>, vector<32x32xbf16>
    %c112_93 = arith.constant 112 : index
    %c0_94 = arith.constant 0 : index
    %204 = vector.load %arg3[%c112_93, %c0_94] : memref<160x1xf32, #tpu.memory_space<vmem>>, vector<32x1xf32>
    %205 = arith.truncf %202 : vector<32x512xf32> to vector<32x512xbf16>
    %cst_95 = arith.constant dense<0.000000e+00> : vector<32x512xf32>
    %206 = tpu.matmul %203, %205, %cst_95 {dimension_numbers = #tpu.dot_dimension_numbers<[1], [0], [0], [1], [0, 0, 1, 1], [], []>} : vector<32x32xbf16>, vector<32x512xbf16>, vector<32x512xf32> -> vector<32x512xf32>
    %207 = vector.broadcast %204 : vector<32x1xf32> to vector<32x512xf32>
    %208 = arith.addf %206, %207 : vector<32x512xf32>
    %209 = arith.negf %208 : vector<32x512xf32>
    %210 = math.exp %209 : vector<32x512xf32>
    %cst_96 = arith.constant 1.000000e+00 : f32
    %211 = vector.broadcast %cst_96 : f32 to vector<32x512xf32>
    %212 = arith.addf %211, %210 : vector<32x512xf32>
    %213 = arith.divf %211, %212 : vector<32x512xf32>
    %214 = arith.mulf %208, %213 : vector<32x512xf32>
    %c144_97 = arith.constant 144 : index
    %c0_98 = arith.constant 0 : index
    %215 = vector.load %arg2[%c144_97, %c0_98] : memref<160x32xbf16, #tpu.memory_space<vmem>>, vector<16x32xbf16>
    %c144_99 = arith.constant 144 : index
    %c0_100 = arith.constant 0 : index
    %216 = vector.load %arg3[%c144_99, %c0_100] : memref<160x1xf32, #tpu.memory_space<vmem>>, vector<16x1xf32>
    %217 = arith.truncf %214 : vector<32x512xf32> to vector<32x512xbf16>
    %cst_101 = arith.constant dense<0.000000e+00> : vector<16x512xf32>
    %218 = tpu.matmul %215, %217, %cst_101 {dimension_numbers = #tpu.dot_dimension_numbers<[1], [0], [0], [1], [0, 0, 1, 1], [], []>} : vector<16x32xbf16>, vector<32x512xbf16>, vector<16x512xf32> -> vector<16x512xf32>
    %219 = vector.broadcast %216 : vector<16x1xf32> to vector<16x512xf32>
    %220 = arith.addf %218, %219 : vector<16x512xf32>
    %221 = arith.addf %187, %220 : vector<16x512xf32>
    %222 = arith.truncf %221 : vector<16x512xf32> to vector<16x512xbf16>
    %c0_102 = arith.constant 0 : index
    %223 = arith.index_cast %151 : i32 to index
    %224 = vector.load %arg4[%c0_102, %223] : memref<16x2048xbf16, #tpu.memory_space<vmem>>, vector<16x512xbf16>
    tpu.vector_store %arg4[%c0_102, %223], %222 {strides = array<i32>} : memref<16x2048xbf16, #tpu.memory_space<vmem>>, vector<16x512xbf16>,
    %c3_i32 = arith.constant 3 : i32
    %c512_i32_103 = arith.constant 512 : i32
    %225 = arith.muli %c3_i32, %c512_i32_103 : i32
    %226 = tpu.assume_multiple %225, 512 : i32
    %c0_104 = arith.constant 0 : index
    %227 = arith.index_cast %226 : i32 to index
    %228 = vector.load %arg1[%c0_104, %227] : memref<32x2048xbf16, #tpu.memory_space<vmem>>, vector<32x512xbf16>
    %229 = vector.extract_strided_slice %228 {offsets = [0, 0], sizes = [8, 512], strides = [1, 1]} : vector<32x512xbf16> to vector<8x512xbf16>
    %230 = vector.extract_strided_slice %228 {offsets = [24, 0], sizes = [8, 512], strides = [1, 1]} : vector<32x512xbf16> to vector<8x512xbf16>
    %231 = vector.extract_strided_slice %228 {offsets = [8, 0], sizes = [16, 512], strides = [1, 1]} : vector<32x512xbf16> to vector<16x512xbf16>
    %232 = arith.extf %231 : vector<16x512xbf16> to vector<16x512xf32>
    %c0_105 = arith.constant 0 : index
    %c0_106 = arith.constant 0 : index
    %233 = vector.load %arg2[%c0_105, %c0_106] : memref<160x32xbf16, #tpu.memory_space<vmem>>, vector<32x32xbf16>
    %c0_107 = arith.constant 0 : index
    %c0_108 = arith.constant 0 : index
    %234 = vector.load %arg3[%c0_107, %c0_108] : memref<160x1xf32, #tpu.memory_space<vmem>>, vector<32x1xf32>
    %cst_109 = arith.constant dense<0.000000e+00> : vector<32x512xf32>
    %235 = tpu.matmul %233, %228, %cst_109 {dimension_numbers = #tpu.dot_dimension_numbers<[1], [0], [0], [1], [0, 0, 1, 1], [], []>} : vector<32x32xbf16>, vector<32x512xbf16>, vector<32x512xf32> -> vector<32x512xf32>
    %236 = vector.broadcast %234 : vector<32x1xf32> to vector<32x512xf32>
    %237 = arith.addf %235, %236 : vector<32x512xf32>
    %238 = arith.negf %237 : vector<32x512xf32>
    %239 = math.exp %238 : vector<32x512xf32>
    %cst_110 = arith.constant 1.000000e+00 : f32
    %240 = vector.broadcast %cst_110 : f32 to vector<32x512xf32>
    %241 = arith.addf %240, %239 : vector<32x512xf32>
    %242 = arith.divf %240, %241 : vector<32x512xf32>
    %243 = arith.mulf %237, %242 : vector<32x512xf32>
    %c32_111 = arith.constant 32 : index
    %c0_112 = arith.constant 0 : index
    %244 = vector.load %arg2[%c32_111, %c0_112] : memref<160x32xbf16, #tpu.memory_space<vmem>>, vector<32x32xbf16>
    %c32_113 = arith.constant 32 : index
    %c0_114 = arith.constant 0 : index
    %245 = vector.load %arg3[%c32_113, %c0_114] : memref<160x1xf32, #tpu.memory_space<vmem>>, vector<32x1xf32>
    %246 = arith.truncf %243 : vector<32x512xf32> to vector<32x512xbf16>
    %cst_115 = arith.constant dense<0.000000e+00> : vector<32x512xf32>
    %247 = tpu.matmul %244, %246, %cst_115 {dimension_numbers = #tpu.dot_dimension_numbers<[1], [0], [0], [1], [0, 0, 1, 1], [], []>} : vector<32x32xbf16>, vector<32x512xbf16>, vector<32x512xf32> -> vector<32x512xf32>
    %248 = vector.broadcast %245 : vector<32x1xf32> to vector<32x512xf32>
    %249 = arith.addf %247, %248 : vector<32x512xf32>
    %250 = arith.negf %249 : vector<32x512xf32>
    %251 = math.exp %250 : vector<32x512xf32>
    %cst_116 = arith.constant 1.000000e+00 : f32
    %252 = vector.broadcast %cst_116 : f32 to vector<32x512xf32>
    %253 = arith.addf %252, %251 : vector<32x512xf32>
    %254 = arith.divf %252, %253 : vector<32x512xf32>
    %255 = arith.mulf %249, %254 : vector<32x512xf32>
    %c64_117 = arith.constant 64 : index
    %c0_118 = arith.constant 0 : index
    %256 = vector.load %arg2[%c64_117, %c0_118] : memref<160x32xbf16, #tpu.memory_space<vmem>>, vector<16x32xbf16>
    %c64_119 = arith.constant 64 : index
    %c0_120 = arith.constant 0 : index
    %257 = vector.load %arg3[%c64_119, %c0_120] : memref<160x1xf32, #tpu.memory_space<vmem>>, vector<16x1xf32>
    %258 = arith.truncf %255 : vector<32x512xf32> to vector<32x512xbf16>
    %cst_121 = arith.constant dense<0.000000e+00> : vector<16x512xf32>
    %259 = tpu.matmul %256, %258, %cst_121 {dimension_numbers = #tpu.dot_dimension_numbers<[1], [0], [0], [1], [0, 0, 1, 1], [], []>} : vector<16x32xbf16>, vector<32x512xbf16>, vector<16x512xf32> -> vector<16x512xf32>
    %260 = vector.broadcast %257 : vector<16x1xf32> to vector<16x512xf32>
    %261 = arith.addf %259, %260 : vector<16x512xf32>
    %262 = arith.addf %232, %261 : vector<16x512xf32>
    %263 = arith.extf %229 : vector<8x512xbf16> to vector<8x512xf32>
    %264 = arith.extf %230 : vector<8x512xbf16> to vector<8x512xf32>
    %265 = tpu.concatenate %263, %262, %264 in 0 : vector<8x512xf32>, vector<16x512xf32>, vector<8x512xf32> -> vector<32x512xf32>
    %266 = arith.truncf %265 : vector<32x512xf32> to vector<32x512xbf16>
    %c80_122 = arith.constant 80 : index
    %c0_123 = arith.constant 0 : index
    %267 = vector.load %arg2[%c80_122, %c0_123] : memref<160x32xbf16, #tpu.memory_space<vmem>>, vector<32x32xbf16>
    %c80_124 = arith.constant 80 : index
    %c0_125 = arith.constant 0 : index
    %268 = vector.load %arg3[%c80_124, %c0_125] : memref<160x1xf32, #tpu.memory_space<vmem>>, vector<32x1xf32>
    %cst_126 = arith.constant dense<0.000000e+00> : vector<32x512xf32>
    %269 = tpu.matmul %267, %266, %cst_126 {dimension_numbers = #tpu.dot_dimension_numbers<[1], [0], [0], [1], [0, 0, 1, 1], [], []>} : vector<32x32xbf16>, vector<32x512xbf16>, vector<32x512xf32> -> vector<32x512xf32>
    %270 = vector.broadcast %268 : vector<32x1xf32> to vector<32x512xf32>
    %271 = arith.addf %269, %270 : vector<32x512xf32>
    %272 = arith.negf %271 : vector<32x512xf32>
    %273 = math.exp %272 : vector<32x512xf32>
    %cst_127 = arith.constant 1.000000e+00 : f32
    %274 = vector.broadcast %cst_127 : f32 to vector<32x512xf32>
    %275 = arith.addf %274, %273 : vector<32x512xf32>
    %276 = arith.divf %274, %275 : vector<32x512xf32>
    %277 = arith.mulf %271, %276 : vector<32x512xf32>
    %c112_128 = arith.constant 112 : index
    %c0_129 = arith.constant 0 : index
    %278 = vector.load %arg2[%c112_128, %c0_129] : memref<160x32xbf16, #tpu.memory_space<vmem>>, vector<32x32xbf16>
    %c112_130 = arith.constant 112 : index
    %c0_131 = arith.constant 0 : index
    %279 = vector.load %arg3[%c112_130, %c0_131] : memref<160x1xf32, #tpu.memory_space<vmem>>, vector<32x1xf32>
    %280 = arith.truncf %277 : vector<32x512xf32> to vector<32x512xbf16>
    %cst_132 = arith.constant dense<0.000000e+00> : vector<32x512xf32>
    %281 = tpu.matmul %278, %280, %cst_132 {dimension_numbers = #tpu.dot_dimension_numbers<[1], [0], [0], [1], [0, 0, 1, 1], [], []>} : vector<32x32xbf16>, vector<32x512xbf16>, vector<32x512xf32> -> vector<32x512xf32>
    %282 = vector.broadcast %279 : vector<32x1xf32> to vector<32x512xf32>
    %283 = arith.addf %281, %282 : vector<32x512xf32>
    %284 = arith.negf %283 : vector<32x512xf32>
    %285 = math.exp %284 : vector<32x512xf32>
    %cst_133 = arith.constant 1.000000e+00 : f32
    %286 = vector.broadcast %cst_133 : f32 to vector<32x512xf32>
    %287 = arith.addf %286, %285 : vector<32x512xf32>
    %288 = arith.divf %286, %287 : vector<32x512xf32>
    %289 = arith.mulf %283, %288 : vector<32x512xf32>
    %c144_134 = arith.constant 144 : index
    %c0_135 = arith.constant 0 : index
    %290 = vector.load %arg2[%c144_134, %c0_135] : memref<160x32xbf16, #tpu.memory_space<vmem>>, vector<16x32xbf16>
    %c144_136 = arith.constant 144 : index
    %c0_137 = arith.constant 0 : index
    %291 = vector.load %arg3[%c144_136, %c0_137] : memref<160x1xf32, #tpu.memory_space<vmem>>, vector<16x1xf32>
    %292 = arith.truncf %289 : vector<32x512xf32> to vector<32x512xbf16>
    %cst_138 = arith.constant dense<0.000000e+00> : vector<16x512xf32>
    %293 = tpu.matmul %290, %292, %cst_138 {dimension_numbers = #tpu.dot_dimension_numbers<[1], [0], [0], [1], [0, 0, 1, 1], [], []>} : vector<16x32xbf16>, vector<32x512xbf16>, vector<16x512xf32> -> vector<16x512xf32>
    %294 = vector.broadcast %291 : vector<16x1xf32> to vector<16x512xf32>
    %295 = arith.addf %293, %294 : vector<16x512xf32>
    %296 = arith.addf %262, %295 : vector<16x512xf32>
    %297 = arith.truncf %296 : vector<16x512xf32> to vector<16x512xbf16>
    %c0_139 = arith.constant 0 : index
    %298 = arith.index_cast %226 : i32 to index
    %299 = vector.load %arg4[%c0_139, %298] : memref<16x2048xbf16, #tpu.memory_space<vmem>>, vector<16x512xbf16>
    tpu.vector_store %arg4[%c0_139, %298], %297 {strides = array<i32>} : memref<16x2048xbf16, #tpu.memory_space<vmem>>, vector<16x512xbf16>,
    %c4_i32 = arith.constant 4 : i32
    return
  }
  func.func @transform_0(%arg0: i32) -> (i32, i32) {
    %c0_i32 = arith.constant 0 : i32
    %c0_i32_0 = arith.constant 0 : i32
    return %c0_i32, %arg0 : i32, i32
  }
  func.func @transform_1(%arg0: i32) -> (i32, i32) {
    %c0_i32 = arith.constant 0 : i32
    %c0_i32_0 = arith.constant 0 : i32
    %c0_i32_1 = arith.constant 0 : i32
    return %c0_i32, %c0_i32_0 : i32, i32
  }
  func.func @transform_2(%arg0: i32) -> (i32, i32) {
    %c0_i32 = arith.constant 0 : i32
    %c0_i32_0 = arith.constant 0 : i32
    %c0_i32_1 = arith.constant 0 : i32
    return %c0_i32, %c0_i32_0 : i32, i32
  }
  func.func @transform_3(%arg0: i32) -> (i32, i32) {
    %c0_i32 = arith.constant 0 : i32
    %c0_i32_0 = arith.constant 0 : i32
    return %c0_i32, %arg0 : i32, i32
  }
}

</mosaic_0001>

<bundles_post_ra>
// kernel: resnet_forward.1
= control target key start
LH: loop header
LB: loop body
LE: loop exit
PB: predicated region body
PF: predicated region fallthrough
CT: control target
= control target key end

     0   :  { %v9465_v3 = vmov 0   ;;  %vm110_vm0 = vcmask 261120   ;;  %s9461_s0 = inlined_call_operand.vmem [shape: bf16[32,2048], index: 0, kind: input, shape index: {}]   ;;  %s9462_s1 = inlined_call_operand.vmem [shape: bf16[160,32], index: 1, kind: input, shape index: {}]   ;;  %s9463_s2 = inlined_call_operand.vmem [shape: f32[160,1], index: 2, kind: input, shape index: {}]   ;;  %s9464_s3 = inlined_call_operand.hbm [shape: bf16[16,2048], index: 3, kind: output, shape index: {}]  }
   0x1   :  { %v7280_v0 = vld [vmem:[%s9463_s2 + $0x10] sm:$0xff]  ;;  %v7285_v1 = vld [vmem:[%s9463_s2] sm:$0xff]  ;;  %6156 = vset.pattern.permute.xlu1 %v9465_v3  ;;  %6155 = vset.pattern.permute.xlu0 %v9465_v3  ;;  %v17_v5 = vld [vmem:[%s9461_s0 + $0x8] sm:$0xff] }
   0x2   :  { %v16_v2 = vld [vmem:[%s9461_s0] sm:$0xff]  ;;  %v19_v6 = vld [vmem:[%s9461_s0 + $0x48] sm:$0xff]  ;;  %52 = vperm.xlu1 %6156, %v7280_v0   ;;  %42 = vperm.xlu0 %6155, %v7285_v1   ;;  %v7306_v10 = vld [vmem:[%s9463_s2 + $0x18] sm:$0xff] }
   0x3   :  { %v18_v4 = vld [vmem:[%s9461_s0 + $0x40] sm:$0xff]  ;;  %v5692_v8 = vcombine.high %v17_v5, %v19_v6  ;;  %v7311_v11 = vld [vmem:[%s9463_s2 + $0x8] sm:$0xff]  ;;  %v5691_v13 = vcombine.low %v17_v5, %v19_v6  ;;  %149 = vmatprep.mubr.bf16.mxu0 %v9465_v3  ;;  %202 = vmatprep.mubr.bf16.mxu1 %v9465_v3  ;;  %v7347_v24 = vld [vmem:[%s9463_s2 + $0x38] sm:$0xff] }
   0x4   :  { %v5690_v7 = vcombine.high %v16_v2, %v18_v4  ;;  %v5689_v9 = vcombine.low %v16_v2, %v18_v4  ;;  %v20_v12 = vld [vmem:[%s9461_s0 + $0x80] sm:$0xff]  ;;  %v21_v15 = vld [vmem:[%s9461_s0 + $0x88] sm:$0xff]  ;;  %v7352_v25 = vld [vmem:[%s9463_s2 + $0x30] sm:$0xff] }
   0x5   :  { %v22_v14 = vld [vmem:[%s9461_s0 + $0xc0] sm:$0xff]  ;;  %v23_v16 = vld [vmem:[%s9461_s0 + $0xc8] sm:$0xff]  ;;  %170 = vmatprep.subr.bf16.mxu1 %v5692_v8  ;;  %v7376_v29 = vld [vmem:[%s9463_s2 + $0x58] sm:$0xff] }
   0x6   :  { %117 = vmatprep.subr.bf16.mxu0 %v5690_v7  ;;  %v5694_v17 = vcombine.high %v20_v12, %v22_v14  ;;  %v5696_v18 = vcombine.high %v21_v15, %v23_v16  ;;  %171 = vmatpush1.bf16.msra.mxu1 %v5691_v13  ;;  %v5693_v19 = vcombine.low %v20_v12, %v22_v14  ;;  %v7332_v21 = vld [vmem:[%s9463_s2 + $0x28] sm:$0xff]  ;;  %v7337_v22 = vld [vmem:[%s9463_s2 + $0x20] sm:$0xff]  ;;  %v7383_v30 = vld [vmem:[%s9463_s2 + $0x50] sm:$0xff] }
   0x7   :  { %118 = vmatpush1.bf16.msra.mxu0 %v5689_v9  ;;  %v5695_v20 = vcombine.low %v21_v15, %v23_v16  ;;  %57 = vperm.xlu1 %6156, %v7306_v10   ;;  %v6157_v23 = vld [vmem:[%s9462_s1] sm:$0xff]   ;;  %v7359_v26 = vld [vmem:[%s9463_s2 + $0x48] sm:$0xff]  ;;  %v1012_v33 = vld [vmem:[%s9463_s2 + $0x78] sm:$0xff] }
   0x8   :  { %47 = vperm.xlu0 %6155, %v7311_v11   ;;  %119 = vmatprep.subr.bf16.mxu0 %v5694_v17  ;;  %v7364_v27 = vld [vmem:[%s9463_s2 + $0x40] sm:$0xff]  ;;  %v6158_v28 = vld [vmem:[%s9462_s1 + $0x8] sm:$0xff]   ;;  %v1011_v34 = vld [vmem:[%s9463_s2 + $0x70] sm:$0xff] }
   0x9   :  { %172 = vmatprep.subr.bf16.mxu1 %v5696_v18  ;;  %v7390_v31 = vld [vmem:[%s9463_s2 + $0x68] sm:$0xff]  ;;  %v7395_v32 = vld [vmem:[%s9463_s2 + $0x60] sm:$0xff] }
   0xa   :  { %173 = vmatpush1.bf16.msra.mxu1 %v5695_v20  ;;  %v1014_v35 = vld [vmem:[%s9463_s2 + $0x88] sm:$0xff]  ;;  %v1013_v36 = vld [vmem:[%s9463_s2 + $0x80] sm:$0xff] }
   0xb   :  { %120 = vmatpush1.bf16.msra.mxu0 %v5693_v19  ;;  %358 = vperm.xlu1 %6156, %v7332_v21  }
   0xc   :  { %353 = vperm.xlu0 %6155, %v7337_v22  }
   0xd   :  { %5699 = vmatmul.mubr.msk.bf16.vlgmr.msra.gmra.mrb[0].mxu1 %vm110_vm0, %v6157_v23 }
   0xe   :  { %5697 = vmatmul.mubr.msk.bf16.vlgmr.msra.gmra.mrb[0].mxu0 %vm110_vm0, %v6157_v23  ;;  %212 = vmatprep.mubr.bf16.mxu1 %v9465_v3 }
   0xf   :  { %159 = vmatprep.mubr.bf16.mxu0 %v9465_v3  ;;  %368 = vperm.xlu1 %6156, %v7347_v24  }
  0x10   :  { %363 = vperm.xlu0 %6155, %v7352_v25  }
  0x13   :  { %624 = vperm.xlu1 %6156, %v7359_v26  }
  0x14   :  { %619 = vperm.xlu0 %6155, %v7364_v27  }
  0x15   :  { %5700 = vmatmul.mubr.msk.bf16.gmra.mrb[4].mxu1 %vm110_vm0, %v6158_v28 }
  0x16   :  { %5698 = vmatmul.mubr.msk.bf16.gmra.mrb[4].mxu0 %vm110_vm0, %v6158_v28  ;;  %472 = vmatprep.mubr.bf16.mxu1 %v9465_v3 }
  0x17   :  { %419 = vmatprep.mubr.bf16.mxu0 %v9465_v3  ;;  %760 = vperm.xlu1 %6156, %v7376_v29  }
  0x18   :  { %755 = vperm.xlu0 %6155, %v7383_v30  }
  0x1b   :  { %770 = vperm.xlu1 %6156, %v7390_v31  }
  0x1c   :  { %765 = vperm.xlu0 %6155, %v7395_v32  }
  0x1f   :  { %1030 = vperm.xlu1 %6156, %v1012_v33  }
  0x20   :  { %1025 = vperm.xlu0 %6155, %v1011_v34  }
  0x23   :  { %1040 = vperm.xlu1 %6156, %v1014_v35  }
  0x24   :  { %1035 = vperm.xlu0 %6155, %v1013_v36  }
  0x25   :  { %8 = vsyncpa [#allocation3], 0  ;;  %v1280_v37 = vld [vmem:[%s9463_s2 + $0x98] sm:$0xff]  ;;  %v1279_v38 = vld [vmem:[%s9463_s2 + $0x90] sm:$0xff] }
  0x27   :  { %1461 = vperm.xlu1 %6156, %v7311_v11  }
  0x28   :  { %1456 = vperm.xlu0 %6155, %v7285_v1  }
  0x2b   :  { %1471 = vperm.xlu1 %6156, %v7306_v10  }
  0x2c   :  { %1466 = vperm.xlu0 %6155, %v7280_v0  }
  0x2f   :  { %1771 = vperm.xlu1 %6156, %v7332_v21  }
  0x30   :  { %1766 = vperm.xlu0 %6155, %v7337_v22  }
  0x33   :  { %1781 = vperm.xlu1 %6156, %v7347_v24  }
  0x34   :  { %1776 = vperm.xlu0 %6155, %v7352_v25  }
  0x37   :  { %2037 = vperm.xlu1 %6156, %v7359_v26  }
  0x38   :  { %2032 = vperm.xlu0 %6155, %v7364_v27  }
  0x3b   :  { %2173 = vperm.xlu1 %6156, %v7376_v29  }
  0x3c   :  { %2168 = vperm.xlu0 %6155, %v7383_v30  }
  0x3f   :  { %2183 = vperm.xlu1 %6156, %v7390_v31  }
  0x40   :  { %2178 = vperm.xlu0 %6155, %v7395_v32  }
  0x43   :  { %2443 = vperm.xlu1 %6156, %v1012_v33  }
  0x44   :  { %2438 = vperm.xlu0 %6155, %v1011_v34  }
  0x47   :  { %2453 = vperm.xlu1 %6156, %v1014_v35  }
  0x48   :  { %2448 = vperm.xlu0 %6155, %v1013_v36  }
  0x4b   :  { %2875 = vperm.xlu1 %6156, %v7311_v11  }
  0x4c   :  { %2870 = vperm.xlu0 %6155, %v7285_v1  }
  0x4f   :  { %2885 = vperm.xlu1 %6156, %v7306_v10  }
  0x50   :  { %2880 = vperm.xlu0 %6155, %v7280_v0  }
  0x53   :  { %3185 = vperm.xlu1 %6156, %v7332_v21  }
  0x54   :  { %3180 = vperm.xlu0 %6155, %v7337_v22  }
  0x57   :  { %3195 = vperm.xlu1 %6156, %v7347_v24  }
  0x58   :  { %3190 = vperm.xlu0 %6155, %v7352_v25  }
  0x5b   :  { %3451 = vperm.xlu1 %6156, %v7359_v26  }
  0x5c   :  { %3446 = vperm.xlu0 %6155, %v7364_v27  }
  0x5f   :  { %3587 = vperm.xlu1 %6156, %v7376_v29  }
  0x60   :  { %3582 = vperm.xlu0 %6155, %v7383_v30  }
  0x63   :  { %3597 = vperm.xlu1 %6156, %v7390_v31  }
  0x64   :  { %3592 = vperm.xlu0 %6155, %v7395_v32  }
  0x67   :  { %3857 = vperm.xlu1 %6156, %v1012_v33  }
  0x68   :  { %3852 = vperm.xlu0 %6155, %v1011_v34  }
  0x6b   :  { %3867 = vperm.xlu1 %6156, %v1014_v35  }
  0x6c   :  { %3862 = vperm.xlu0 %6155, %v1013_v36  }
  0x6f   :  { %4289 = vperm.xlu1 %6156, %v7311_v11  }
  0x70   :  { %4284 = vperm.xlu0 %6155, %v7285_v1  }
  0x73   :  { %4299 = vperm.xlu1 %6156, %v7306_v10  }
  0x74   :  { %4294 = vperm.xlu0 %6155, %v7280_v0  }
  0x77   :  { %4599 = vperm.xlu1 %6156, %v7332_v21  }
  0x78   :  { %4594 = vperm.xlu0 %6155, %v7337_v22  }
  0x7b   :  { %4609 = vperm.xlu1 %6156, %v7347_v24  }
  0x7c   :  { %4604 = vperm.xlu0 %6155, %v7352_v25  }
  0x7f   :  { %4865 = vperm.xlu1 %6156, %v7359_v26  }
  0x80   :  { %4860 = vperm.xlu0 %6155, %v7364_v27  }
  0x81   :  { %v43_v39 = vpop.permute.xlu0 %42  ;;  %v7463_v40 = vpop.permute.xlu1 %52 }
  0x83   :  { %5001 = vperm.xlu1 %6156, %v7376_v29  }
  0x84   :  { %4996 = vperm.xlu0 %6155, %v7383_v30  }
  0x86   :  { %v58_v0 = vpop.permute.xlu1 %57 }
  0x87   :  { %5011 = vperm.xlu1 %6156, %v7390_v31   ;;  %v48_v41 = vpop.permute.xlu0 %47 }
  0x88   :  { %5006 = vperm.xlu0 %6155, %v7395_v32  }
  0x8b   :  { %5271 = vperm.xlu1 %6156, %v1012_v33  }
  0x8c   :  { %5266 = vperm.xlu0 %6155, %v1011_v34  }
  0x8f   :  { %5281 = vperm.xlu1 %6156, %v1014_v35  }
  0x90   :  { %5276 = vperm.xlu0 %6155, %v1013_v36  }
  0x93   :  { %1296 = vperm.xlu1 %6156, %v1280_v37  }
  0x94   :  { %1291 = vperm.xlu0 %6155, %v1279_v38  }
  0x97   :  { %2709 = vperm.xlu1 %6156, %v1280_v37  }
  0x98   :  { %2704 = vperm.xlu0 %6155, %v1279_v38  }
  0x9b   :  { %4123 = vperm.xlu1 %6156, %v1280_v37  }
  0x9c   :  { %4118 = vperm.xlu0 %6155, %v1279_v38  }
  0x9f   :  { %5537 = vperm.xlu1 %6156, %v1280_v37  }
  0xa0   :  { %5532 = vperm.xlu0 %6155, %v1279_v38  }
  0xe0   :  { %v204_v43 = vpop.f32.mrb[0].mxu1 }
  0xe1   :  { %v151_v42 = vpop.f32.mrb[0].mxu0  ;;  %v7467_v45 = vadd.f32 %v204_v43, %v43_v39  ;;  %v206_v47 = vpop.f32.mrb[1].mxu1 }
  0xe2   :  { %v7465_v44 = vadd.f32 %v151_v42, %v43_v39  ;;  %v153_v46 = vpop.f32.mrb[1].mxu0  ;;  %v7471_v49 = vadd.f32 %v206_v47, %v43_v39  ;;  %v208_v51 = vpop.f32.mrb[2].mxu1 }
  0xe3   :  { %v7469_v48 = vadd.f32 %v153_v46, %v43_v39  ;;  %v155_v50 = vpop.f32.mrb[2].mxu0  ;;  %v5703_v53 = vmul.f32 -1.442695, %v7467_v45  ;;  %v7477_v55 = vadd.f32 %v208_v51, %v48_v41  ;;  %v210_v59 = vpop.f32.mrb[3].mxu1 }
  0xe4   :  { %v5701_v52 = vmul.f32 -1.442695, %v7465_v44  ;;  %v7475_v54 = vadd.f32 %v155_v50, %v48_v41  ;;  %v5704_v57 = vmul.f32 -1.442695, %v7471_v49  ;;  %v157_v58 = vpop.f32.mrb[3].mxu0  ;;  %v7485_v63 = vadd.f32 %v210_v59, %v48_v41 }
  0xe5   :  { %v5702_v56 = vmul.f32 -1.442695, %v7469_v48  ;;  %v7482_v61 = vadd.f32 %v157_v58, %v48_v41  ;;  %v5707_v62 = vmul.f32 -1.442695, %v7477_v55 }
  0xe6   :  { %6197 = vpow2.f32 %v5701_v52  ;;  %v5705_v60 = vmul.f32 -1.442695, %v7475_v54  ;;  %v5708_v2 = vmul.f32 -1.442695, %v7485_v63 }
  0xe7   :  { %6199 = vpow2.f32 %v5703_v53  ;;  %v5706_v1 = vmul.f32 -1.442695, %v7482_v61 }
  0xe8   :  { %6201 = vpow2.f32 %v5702_v56  ;;  %v214_v5 = vpop.f32.mrb[4].mxu1 }
  0xe9   :  { %6203 = vpow2.f32 %v5704_v57  ;;  %v161_v4 = vpop.f32.mrb[4].mxu0  ;;  %v7493_v7 = vadd.f32 %v214_v5, %v7463_v40  ;;  %v216_v9 = vpop.f32.mrb[5].mxu1 }
  0xea   :  { %6205 = vpow2.f32 %v5705_v60  ;;  %v7490_v6 = vadd.f32 %v161_v4, %v7463_v40  ;;  %v163_v8 = vpop.f32.mrb[5].mxu0  ;;  %v218_v12 = vpop.f32.mrb[6].mxu1  ;;  %v7505_v27 = vadd.f32 %v216_v9, %v7463_v40 }
  0xeb   :  { %6207 = vpow2.f32 %v5707_v62  ;;  %v7496_v10 = vadd.f32 %v163_v8, %v7463_v40  ;;  %v165_v11 = vpop.f32.mrb[6].mxu0  ;;  %v5711_v14 = vmul.f32 -1.442695, %v7493_v7  ;;  %v220_v18 = vpop.f32.mrb[7].mxu1  ;;  %v7508_v39 = vadd.f32 %v218_v12, %v58_v0 }
  0xec   :  { %6209 = vpow2.f32 %v5706_v1  ;;  %v5709_v13 = vmul.f32 -1.442695, %v7490_v6  ;;  %v7500_v15 = vadd.f32 %v165_v11, %v58_v0  ;;  %v167_v17 = vpop.f32.mrb[7].mxu0  ;;  %v5712_v36 = vmul.f32 -1.442695, %v7505_v27 }
  0xed   :  { %6211 = vpow2.f32 %v5708_v2  ;;  %v5710_v16 = vmul.f32 -1.442695, %v7496_v10  ;;  %v7510_v41 = vadd.f32 %v167_v17, %v58_v0  ;;  %v7512_v43 = vadd.f32 %v220_v18, %v58_v0 }
  0xee   :  { %6213 = vpow2.f32 %v5709_v13  ;;  %v5713_v19 = vmul.f32 -1.442695, %v7500_v15  ;;  %v5715_v50 = vmul.f32 -1.442695, %v7508_v39 }
  0xef   :  { %6215 = vpow2.f32 %v5711_v14  ;;  %v5714_v53 = vmul.f32 -1.442695, %v7510_v41  ;;  %v5716_v57 = vmul.f32 -1.442695, %v7512_v43 }
  0xf0   :  { %v6198_v20 = vpop.eup %6197  ;;  %6217 = vpow2.f32 %v5710_v16 }
  0xf1   :  { %v6200_v21 = vpop.eup %6199  ;;  %v271_v22 = vadd.f32 1.0, %v6198_v20  ;;  %6219 = vpow2.f32 %v5713_v19 }
  0xf2   :  { %v6202_v23 = vpop.eup %6201  ;;  %v273_v24 = vadd.f32 1.0, %v6200_v21 }
  0xf3   :  { %v6204_v25 = vpop.eup %6203  ;;  %6221 = vrcp.f32 %v271_v22  ;;  %v272_v26 = vadd.f32 1.0, %v6202_v23 }
  0xf4   :  { %v6206_v28 = vpop.eup %6205  ;;  %6223 = vrcp.f32 %v273_v24  ;;  %v274_v29 = vadd.f32 1.0, %v6204_v25 }
  0xf5   :  { %v6208_v30 = vpop.eup %6207  ;;  %6225 = vrcp.f32 %v272_v26  ;;  %v275_v31 = vadd.f32 1.0, %v6206_v28 }
  0xf6   :  { %v6210_v32 = vpop.eup %6209  ;;  %6227 = vrcp.f32 %v274_v29  ;;  %v277_v33 = vadd.f32 1.0, %v6208_v30 }
  0xf7   :  { %v6212_v34 = vpop.eup %6211  ;;  %6229 = vrcp.f32 %v275_v31  ;;  %v276_v35 = vadd.f32 1.0, %v6210_v32 }
  0xf8   :  { %v6214_v37 = vpop.eup %6213  ;;  %6231 = vrcp.f32 %v277_v33  ;;  %v278_v38 = vadd.f32 1.0, %v6212_v34 }
  0xf9   :  { %6233 = vrcp.f32 %v276_v35  ;;  %v279_v40 = vadd.f32 1.0, %v6214_v37  ;;  %v6216_v42 = vpop.eup %6215 }
  0xfa   :  { %6235 = vrcp.f32 %v278_v38  ;;  %v6218_v46 = vpop.eup %6217  ;;  %v281_v17 = vadd.f32 1.0, %v6216_v42  ;;  %v6159_v42 = vld [vmem:[%s9462_s1 + $0x10] sm:$0xff]  }
  0xfb   :  { %6237 = vpow2.f32 %v5712_v36  ;;  %v6220_v47 = vpop.eup %6219  ;;  %v280_v19 = vadd.f32 1.0, %v6218_v46 }
  0xfc   :  { %6239 = vrcp.f32 %v279_v40  ;;  %v283_v52 = vadd.f32 1.0, %v6220_v47 }
  0xfd   :  { %v6222_v51 = vpop.eup %6221 }
  0xfe   :  { %v6224_v56 = vpop.eup %6223  ;;  %6241 = vrcp.f32 %v283_v52  ;;  %v319_v0 = vmul.f32 %v6222_v51, %v7465_v44 }
  0xff   :  { %v6226_v58 = vpop.eup %6225  ;;  %6243 = vpow2.f32 %v5715_v50  ;;  %v321_v4 = vmul.f32 %v6224_v56, %v7467_v45 }
 0x100   :  { %v6228_v59 = vpop.eup %6227  ;;  %6245 = vpow2.f32 %v5714_v53  ;;  %v320_v9 = vmul.f32 %v6226_v58, %v7469_v48 }
 0x101   :  { %v6230_v60 = vpop.eup %6229  ;;  %6247 = vpow2.f32 %v5716_v57  ;;  %v322_v14 = vmul.f32 %v6228_v59, %v7471_v49 }
 0x102   :  { %v6232_v62 = vpop.eup %6231  ;;  %v323_v1 = vmul.f32 %v6230_v60, %v7475_v54  ;;  %6249 = vrcp.f32 %v281_v17 }
 0x103   :  { %v6234_v2 = vpop.eup %6233  ;;  %v325_v5 = vmul.f32 %v6232_v62, %v7477_v55  ;;  %6251 = vrcp.f32 %v280_v19 }
 0x104   :  { %v6236_v8 = vpop.eup %6235  ;;  %v343_v11 = vpack.c.bf16 %v323_v1, %v319_v0  ;;  %v324_v12 = vmul.f32 %v6234_v2, %v7482_v61 }
 0x105   :  { %v6238_v13 = vpop.eup %6237  ;;  %v345_v16 = vpack.c.bf16 %v325_v5, %v321_v4  ;;  %v326_v44 = vmul.f32 %v6236_v8, %v7485_v63 }
 0x106   :  { %v344_v54 = vpack.c.bf16 %v324_v12, %v320_v9  ;;  %v6240_v18 = vpop.eup %6239  ;;  %v282_v45 = vadd.f32 1.0, %v6238_v13 }
 0x107   :  { %v346_v20 = vpack.c.bf16 %v326_v44, %v322_v14  ;;  %v327_v21 = vmul.f32 %v6240_v18, %v7490_v6 }
 0x108   :  { %387 = vmatprep.subr.bf16.mxu0 %v344_v54  ;;  %v6242_v55 = vpop.eup %6241  ;;  %6253 = vrcp.f32 %v282_v45 }
 0x109   :  { %440 = vmatprep.subr.bf16.mxu1 %v346_v20  ;;  %388 = vmatpush1.bf16.msra.mxu0 %v343_v11  ;;  %v6244_v48 = vpop.eup %6243  ;;  %v331_v61 = vmul.f32 %v6242_v55, %v7500_v15 }
 0x10a   :  { %441 = vmatpush1.bf16.msra.mxu1 %v345_v16  ;;  %v6246_v49 = vpop.eup %6245  ;;  %v285_v63 = vadd.f32 1.0, %v6244_v48 }
 0x10b   :  { %v6248_v22 = vpop.eup %6247  ;;  %v347_v23 = vpack.c.bf16 %v331_v61, %v327_v21  ;;  %v284_v24 = vadd.f32 1.0, %v6246_v49 }
 0x10c   :  { %6255 = vrcp.f32 %v285_v63  ;;  %v286_v25 = vadd.f32 1.0, %v6248_v22  ;;  %v6250_v26 = vpop.eup %6249 }
 0x10d   :  { %6257 = vrcp.f32 %v284_v24  ;;  %v6252_v28 = vpop.eup %6251  ;;  %v329_v31 = vmul.f32 %v6250_v26, %v7493_v7  ;;  %v6160_v7 = vld [vmem:[%s9462_s1 + $0x18] sm:$0xff]  }
 0x10e   :  { %6259 = vrcp.f32 %v286_v25  ;;  %v328_v33 = vmul.f32 %v6252_v28, %v7496_v10  ;;  %v359_v10 = vpop.permute.xlu1 %358 }
 0x112   :  { %v6254_v29 = vpop.eup %6253  ;;  %v369_v11 = vpop.permute.xlu1 %368 }
 0x113   :  { %v330_v35 = vmul.f32 %v6254_v29, %v7505_v27  ;;  %v354_v27 = vpop.permute.xlu0 %353 }
 0x116   :  { %v6256_v30 = vpop.eup %6255 }
 0x117   :  { %v6258_v6 = vpop.eup %6257  ;;  %v333_v15 = vmul.f32 %v6256_v30, %v7508_v39  ;;  %v364_v13 = vpop.permute.xlu0 %363 }
 0x118   :  { %v6260_v32 = vpop.eup %6259  ;;  %v332_v34 = vmul.f32 %v6258_v6, %v7510_v41 }
 0x119   :  { %v349_v36 = vpack.c.bf16 %v333_v15, %v329_v31  ;;  %v334_v37 = vmul.f32 %v6260_v32, %v7512_v43 }
 0x11a   :  { %v348_v38 = vpack.c.bf16 %v332_v34, %v328_v33 }
 0x11b   :  { %v350_v40 = vpack.c.bf16 %v334_v37, %v330_v35 }
 0x11c   :  { %389 = vmatprep.subr.bf16.mxu0 %v348_v38 }
 0x11d   :  { %442 = vmatprep.subr.bf16.mxu1 %v350_v40  ;;  %390 = vmatpush1.bf16.msra.mxu0 %v347_v23 }
 0x11e   :  { %443 = vmatpush1.bf16.msra.mxu1 %v349_v36 }
 0x120   :  { %5719 = vmatmul.mubr.msk.bf16.vlgmr.msra.gmra.mrb[8].mxu0 %vm110_vm0, %v6159_v42 }
 0x121   :  { %5721 = vmatmul.mubr.msk.bf16.vlgmr.msra.gmra.mrb[8].mxu1 %vm110_vm0, %v6159_v42  ;;  %429 = vmatprep.mubr.bf16.mxu0 %v9465_v3 }
 0x122   :  { %482 = vmatprep.mubr.bf16.mxu1 %v9465_v3 }
 0x128   :  { %5720 = vmatmul.mubr.msk.bf16.gmra.mrb[12].mxu0 %vm110_vm0, %v6160_v7 }
 0x129   :  { %5722 = vmatmul.mubr.msk.bf16.gmra.mrb[12].mxu1 %vm110_vm0, %v6160_v7  ;;  %667 = vmatprep.mubr.bf16.mxu0 %v9465_v3 }
 0x12a   :  { %710 = vmatprep.mubr.bf16.mxu1 %v9465_v3 }
 0x1f3   :  { %v421_v39 = vpop.f32.mrb[8].mxu0 }
 0x1f4   :  { %v7547_v41 = vadd.f32 %v421_v39, %v354_v27  ;;  %v474_v43 = vpop.f32.mrb[8].mxu1  ;;  %v423_v46 = vpop.f32.mrb[9].mxu0 }
 0x1f5   :  { %v7549_v47 = vadd.f32 %v474_v43, %v354_v27  ;;  %v7551_v50 = vadd.f32 %v423_v46, %v354_v27  ;;  %v476_v51 = vpop.f32.mrb[9].mxu1  ;;  %v425_v52 = vpop.f32.mrb[10].mxu0 }
 0x1f6   :  { %v5723_v53 = vmul.f32 -1.442695, %v7547_v41  ;;  %v7554_v56 = vadd.f32 %v476_v51, %v354_v27  ;;  %v7556_v57 = vadd.f32 %v425_v52, %v359_v10  ;;  %v478_v58 = vpop.f32.mrb[10].mxu1  ;;  %v427_v59 = vpop.f32.mrb[11].mxu0 }
 0x1f7   :  { %v5725_v60 = vmul.f32 -1.442695, %v7549_v47  ;;  %v5724_v62 = vmul.f32 -1.442695, %v7551_v50  ;;  %v7560_v0 = vadd.f32 %v478_v58, %v359_v10  ;;  %v7562_v1 = vadd.f32 %v427_v59, %v359_v10  ;;  %v480_v2 = vpop.f32.mrb[11].mxu1 }
 0x1f8   :  { %6261 = vpow2.f32 %v5723_v53  ;;  %v5726_v4 = vmul.f32 -1.442695, %v7554_v56  ;;  %v5727_v5 = vmul.f32 -1.442695, %v7556_v57  ;;  %v7566_v8 = vadd.f32 %v480_v2, %v359_v10 }
 0x1f9   :  { %6263 = vpow2.f32 %v5725_v60  ;;  %v5729_v9 = vmul.f32 -1.442695, %v7560_v0  ;;  %v5728_v12 = vmul.f32 -1.442695, %v7562_v1 }
 0x1fa   :  { %6265 = vpow2.f32 %v5724_v62  ;;  %v5730_v14 = vmul.f32 -1.442695, %v7566_v8 }
 0x1fb   :  { %6267 = vpow2.f32 %v5726_v4  ;;  %v431_v16 = vpop.f32.mrb[12].mxu0 }
 0x1fc   :  { %6269 = vpow2.f32 %v5727_v5  ;;  %v7571_v44 = vadd.f32 %v431_v16, %v364_v13  ;;  %v484_v17 = vpop.f32.mrb[12].mxu1  ;;  %v433_v54 = vpop.f32.mrb[13].mxu0 }
 0x1fd   :  { %6271 = vpow2.f32 %v5729_v9  ;;  %v7573_v18 = vadd.f32 %v484_v17, %v364_v13  ;;  %v7575_v19 = vadd.f32 %v433_v54, %v364_v13  ;;  %v486_v20 = vpop.f32.mrb[13].mxu1  ;;  %v435_v45 = vpop.f32.mrb[14].mxu0 }
 0x1fe   :  { %6273 = vpow2.f32 %v5728_v12  ;;  %v5731_v55 = vmul.f32 -1.442695, %v7571_v44  ;;  %v7578_v48 = vadd.f32 %v435_v45, %v369_v11  ;;  %v488_v21 = vpop.f32.mrb[14].mxu1  ;;  %v437_v61 = vpop.f32.mrb[15].mxu0  ;;  %v7583_v31 = vadd.f32 %v486_v20, %v364_v13 }
 0x1ff   :  { %6275 = vpow2.f32 %v5730_v14  ;;  %v5733_v49 = vmul.f32 -1.442695, %v7573_v18  ;;  %v5732_v63 = vmul.f32 -1.442695, %v7575_v19  ;;  %v490_v22 = vpop.f32.mrb[15].mxu1  ;;  %v7586_v10 = vadd.f32 %v488_v21, %v369_v11 }
 0x200   :  { %6277 = vpow2.f32 %v5731_v55  ;;  %v5735_v23 = vmul.f32 -1.442695, %v7578_v48  ;;  %v5734_v40 = vmul.f32 -1.442695, %v7583_v31  ;;  %v7588_v39 = vadd.f32 %v437_v61, %v369_v11 }
 0x201   :  { %6279 = vpow2.f32 %v5733_v49  ;;  %v7590_v46 = vadd.f32 %v490_v22, %v369_v11  ;;  %v5737_v53 = vmul.f32 -1.442695, %v7586_v10 }
 0x202   :  { %v6262_v24 = vpop.eup %6261  ;;  %6281 = vpow2.f32 %v5732_v63  ;;  %v5736_v60 = vmul.f32 -1.442695, %v7588_v39 }
 0x203   :  { %v6264_v25 = vpop.eup %6263  ;;  %v541_v26 = vadd.f32 1.0, %v6262_v24  ;;  %6283 = vpow2.f32 %v5735_v23  ;;  %v5738_v2 = vmul.f32 -1.442695, %v7590_v46 }
 0x204   :  { %v6266_v28 = vpop.eup %6265  ;;  %v543_v29 = vadd.f32 1.0, %v6264_v25 }
 0x205   :  { %v6268_v30 = vpop.eup %6267  ;;  %6285 = vrcp.f32 %v541_v26  ;;  %v542_v6 = vadd.f32 1.0, %v6266_v28 }
 0x206   :  { %v6270_v15 = vpop.eup %6269  ;;  %6287 = vrcp.f32 %v543_v29  ;;  %v544_v32 = vadd.f32 1.0, %v6268_v30 }
 0x207   :  { %v6272_v33 = vpop.eup %6271  ;;  %6289 = vrcp.f32 %v542_v6  ;;  %v545_v34 = vadd.f32 1.0, %v6270_v15 }
 0x208   :  { %v6274_v35 = vpop.eup %6273  ;;  %6291 = vrcp.f32 %v544_v32  ;;  %v547_v36 = vadd.f32 1.0, %v6272_v33 }
 0x209   :  { %v6276_v37 = vpop.eup %6275  ;;  %6293 = vrcp.f32 %v545_v34  ;;  %v546_v38 = vadd.f32 1.0, %v6274_v35 }
 0x20a   :  { %v6278_v42 = vpop.eup %6277  ;;  %6295 = vrcp.f32 %v547_v36  ;;  %v548_v7 = vadd.f32 1.0, %v6276_v37 }
 0x20b   :  { %6297 = vrcp.f32 %v546_v38  ;;  %v549_v27 = vadd.f32 1.0, %v6278_v42  ;;  %v6280_v43 = vpop.eup %6279 }
 0x20c   :  { %6299 = vrcp.f32 %v548_v7  ;;  %v6282_v51 = vpop.eup %6281  ;;  %v551_v63 = vadd.f32 1.0, %v6280_v43  ;;  %v6161_v43 = vld [vmem:[%s9462_s1 + $0x20] sm:$0xff]  }
 0x20d   :  { %6301 = vpow2.f32 %v5734_v40  ;;  %v6284_v52 = vpop.eup %6283  ;;  %v550_v23 = vadd.f32 1.0, %v6282_v51 }
 0x20e   :  { %6303 = vrcp.f32 %v549_v27  ;;  %v553_v59 = vadd.f32 1.0, %v6284_v52  ;;  %v620_v52 = vpop.permute.xlu0 %619 }
 0x20f   :  { %v6286_v58 = vpop.eup %6285 }
 0x210   :  { %v6288_v62 = vpop.eup %6287  ;;  %6305 = vrcp.f32 %v553_v59  ;;  %v589_v12 = vmul.f32 %v6286_v58, %v7547_v41  ;;  %v7224_v58 = vld [vmem:[%s9461_s0 + $0x8] sm:$0xff] }
 0x211   :  { %v6290_v4 = vpop.eup %6289  ;;  %6307 = vpow2.f32 %v5737_v53  ;;  %v591_v16 = vmul.f32 %v6288_v62, %v7549_v47  ;;  %v731_v59 = vunpack.c.l.bf16 %v7224_v58 }
 0x212   :  { %v6292_v5 = vpop.eup %6291  ;;  %6309 = vpow2.f32 %v5736_v60  ;;  %v590_v20 = vmul.f32 %v6290_v4, %v7551_v50 }
 0x213   :  { %v6294_v9 = vpop.eup %6293  ;;  %6311 = vpow2.f32 %v5738_v2  ;;  %v592_v61 = vmul.f32 %v6292_v5, %v7554_v56  ;;  %v7225_v2 = vld [vmem:[%s9461_s0 + $0x80] sm:$0xff] }
 0x214   :  { %v6296_v11 = vpop.eup %6295  ;;  %v593_v13 = vmul.f32 %v6294_v9, %v7556_v57  ;;  %6313 = vrcp.f32 %v551_v63  ;;  %v28_v4 = vunpack.c.l.bf16 %v7225_v2 }
 0x215   :  { %v6298_v14 = vpop.eup %6297  ;;  %v595_v17 = vmul.f32 %v6296_v11, %v7560_v0  ;;  %6315 = vrcp.f32 %v550_v23 }
 0x216   :  { %v6300_v54 = vpop.eup %6299  ;;  %v609_v45 = vpack.c.bf16 %v593_v13, %v589_v12  ;;  %v594_v55 = vmul.f32 %v6298_v14, %v7562_v1  ;;  %v7226_v12 = vld [vmem:[%s9461_s0 + $0x88] sm:$0xff]  ;;  %v29_v14 = vunpack.c.h.bf16 %v7225_v2 }
 0x217   :  { %v6302_v21 = vpop.eup %6301  ;;  %v611_v49 = vpack.c.bf16 %v595_v17, %v591_v16  ;;  %v596_v41 = vmul.f32 %v6300_v54, %v7566_v8  ;;  %v30_v13 = vunpack.c.l.bf16 %v7226_v12  ;;  %v31_v16 = vunpack.c.h.bf16 %v7226_v12 }
 0x218   :  { %v610_v57 = vpack.c.bf16 %v594_v55, %v590_v20  ;;  %v6304_v22 = vpop.eup %6303  ;;  %v552_v47 = vadd.f32 1.0, %v6302_v21  ;;  %v732_v21 = vunpack.c.h.bf16 %v7224_v58 }
 0x219   :  { %v612_v24 = vpack.c.bf16 %v596_v41, %v592_v61  ;;  %v597_v25 = vmul.f32 %v6304_v22, %v7571_v44  ;;  %v7227_v22 = vld [vmem:[%s9461_s0 + $0xc0] sm:$0xff] }
 0x21a   :  { %635 = vmatprep.subr.bf16.mxu0 %v610_v57  ;;  %v6306_v0 = vpop.eup %6305  ;;  %6317 = vrcp.f32 %v552_v47  ;;  %v734_v23 = vunpack.c.h.bf16 %v7227_v22 }
 0x21b   :  { %678 = vmatprep.subr.bf16.mxu1 %v612_v24  ;;  %636 = vmatpush1.bf16.msra.mxu0 %v609_v45  ;;  %v6308_v50 = vpop.eup %6307  ;;  %v601_v1 = vmul.f32 %v6306_v0, %v7578_v48 }
 0x21c   :  { %679 = vmatpush1.bf16.msra.mxu1 %v611_v49  ;;  %v6310_v56 = vpop.eup %6309  ;;  %v555_v8 = vadd.f32 1.0, %v6308_v50 }
 0x21d   :  { %v6312_v26 = vpop.eup %6311  ;;  %v613_v28 = vpack.c.bf16 %v601_v1, %v597_v25  ;;  %v554_v29 = vadd.f32 1.0, %v6310_v56 }
 0x21e   :  { %6319 = vrcp.f32 %v555_v8  ;;  %v556_v30 = vadd.f32 1.0, %v6312_v26  ;;  %v6314_v6 = vpop.eup %6313  ;;  %v7228_v8 = vld [vmem:[%s9461_s0 + $0xc8] sm:$0xff] }
 0x21f   :  { %6321 = vrcp.f32 %v554_v29  ;;  %v6316_v15 = vpop.eup %6315  ;;  %v599_v34 = vmul.f32 %v6314_v6, %v7573_v18  ;;  %v625_v18 = vpop.permute.xlu1 %624  ;;  %v736_v26 = vunpack.c.h.bf16 %v7228_v8 }
 0x220   :  { %6323 = vrcp.f32 %v556_v30  ;;  %v598_v36 = vmul.f32 %v6316_v15, %v7575_v19  ;;  %v7221_v19 = vld [vmem:[%s9461_s0 + $0x40] sm:$0xff] }
 0x221   :  { %v25_v60 = vunpack.c.h.bf16 %v7221_v19 }
 0x224   :  { %v6318_v32 = vpop.eup %6317 }
 0x225   :  { %v600_v38 = vmul.f32 %v6318_v32, %v7583_v31  ;;  %v24_v31 = vunpack.c.l.bf16 %v7221_v19 }
 0x228   :  { %v6320_v33 = vpop.eup %6319 }
 0x229   :  { %v6322_v44 = vpop.eup %6321  ;;  %v603_v48 = vmul.f32 %v6320_v33, %v7586_v10  ;;  %v7222_v10 = vld [vmem:[%s9461_s0] sm:$0xff] }
 0x22a   :  { %v6324_v35 = vpop.eup %6323  ;;  %v602_v37 = vmul.f32 %v6322_v44, %v7588_v39  ;;  %v729_v39 = vunpack.c.l.bf16 %v7222_v10  ;;  %v730_v55 = vunpack.c.h.bf16 %v7222_v10 }
 0x22b   :  { %v615_v40 = vpack.c.bf16 %v603_v48, %v599_v34  ;;  %v604_v42 = vmul.f32 %v6324_v35, %v7590_v46  ;;  %v7223_v46 = vld [vmem:[%s9461_s0 + $0x48] sm:$0xff]  ;;  %v735_v48 = vunpack.c.l.bf16 %v7228_v8 }
 0x22c   :  { %v614_v7 = vpack.c.bf16 %v602_v37, %v598_v36  ;;  %v26_v51 = vunpack.c.l.bf16 %v7223_v46  ;;  %v27_v62 = vunpack.c.h.bf16 %v7223_v46 }
 0x22d   :  { %v616_v27 = vpack.c.bf16 %v604_v42, %v600_v38  ;;  %v6163_v42 = vld [vmem:[%s9462_s1 + $0x30] sm:$0xff]  }
 0x22e   :  { %637 = vmatprep.subr.bf16.mxu0 %v614_v7  ;;  %v761_v7 = vpop.permute.xlu1 %760 }
 0x22f   :  { %680 = vmatprep.subr.bf16.mxu1 %v616_v27  ;;  %638 = vmatpush1.bf16.msra.mxu0 %v613_v28  ;;  %v733_v28 = vunpack.c.l.bf16 %v7227_v22  ;;  %v756_v27 = vpop.permute.xlu0 %755 }
 0x230   :  { %681 = vmatpush1.bf16.msra.mxu1 %v615_v40  ;;  %v6162_v40 = vld [vmem:[%s9462_s1 + $0x28] sm:$0xff]  }
 0x232   :  { %5740 = vmatmul.mubr.msk.bf16.vlgmr.msra.gmra.mrb[16].mxu0 %vm110_vm0, %v6161_v43 }
 0x233   :  { %5741 = vmatmul.mubr.msk.bf16.vlgmr.msra.gmra.mrb[16].mxu1 %vm110_vm0, %v6161_v43  ;;  %821 = vmatprep.mubr.bf16.mxu0 %v9465_v3 }
 0x234   :  { %874 = vmatprep.mubr.bf16.mxu1 %v9465_v3 }
 0x305   :  { %v669_v53 = vpop.f32.mrb[16].mxu0 }
 0x306   :  { %v670_v5 = vadd.f32 %v669_v53, %v620_v52  ;;  %v712_v9 = vpop.f32.mrb[16].mxu1  ;;  %v671_v11 = vpop.f32.mrb[17].mxu0 }
 0x307   :  { %v713_v17 = vadd.f32 %v712_v9, %v620_v52  ;;  %v672_v54 = vadd.f32 %v671_v11, %v620_v52  ;;  %v714_v20 = vpop.f32.mrb[17].mxu1  ;;  %v673_v45 = vpop.f32.mrb[18].mxu0 }
 0x308   :  { %v7636_v61 = vadd.f32 %v670_v5, %v24_v31  ;;  %v715_v49 = vadd.f32 %v714_v20, %v620_v52  ;;  %v674_v41 = vadd.f32 %v673_v45, %v625_v18  ;;  %v716_v63 = vpop.f32.mrb[18].mxu1  ;;  %v675_v57 = vpop.f32.mrb[19].mxu0 }
 0x309   :  { %v7641_v24 = vadd.f32 %v713_v17, %v26_v51  ;;  %v7643_v47 = vadd.f32 %v672_v54, %v25_v60  ;;  %v717_v0 = vadd.f32 %v716_v63, %v625_v18  ;;  %v676_v50 = vadd.f32 %v675_v57, %v625_v18  ;;  %v718_v25 = vpop.f32.mrb[19].mxu1  ;;  %v766_v54 = vpop.permute.xlu0 %765 }
 0x30a   :  { %v7645_v1 = vadd.f32 %v715_v49, %v27_v62  ;;  %v719_v56 = vadd.f32 %v718_v25, %v625_v18  ;;  %v737_v6 = vpack.c.bf16 %v7636_v61, %v729_v39  ;;  %v7654_v15 = vadd.f32 %v674_v41, %v28_v4 }
 0x30b   :  { %v7650_v29 = vadd.f32 %v676_v50, %v29_v14  ;;  %v738_v30 = vpack.c.bf16 %v7643_v47, %v730_v55  ;;  %v739_v44 = vpack.c.bf16 %v7641_v24, %v731_v59  ;;  %v7660_v34 = vadd.f32 %v717_v0, %v30_v13 }
 0x30c   :  { %v7656_v32 = vadd.f32 %v719_v56, %v31_v16  ;;  %v740_v33 = vpack.c.bf16 %v7645_v1, %v732_v21  ;;  %v741_v37 = vpack.c.bf16 %v733_v28, %v7654_v15  ;;  %v771_v16 = vpop.permute.xlu1 %770 }
 0x30d   :  { %789 = vmatprep.subr.bf16.mxu0 %v738_v30  ;;  %v742_v35 = vpack.c.bf16 %v734_v23, %v7650_v29  ;;  %v743_v38 = vpack.c.bf16 %v735_v48, %v7660_v34 }
 0x30e   :  { %842 = vmatprep.subr.bf16.mxu1 %v740_v33  ;;  %790 = vmatpush1.bf16.msra.mxu0 %v737_v6  ;;  %v744_v36 = vpack.c.bf16 %v736_v26, %v7656_v32 }
 0x30f   :  { %843 = vmatpush1.bf16.msra.mxu1 %v739_v44  ;;  %791 = vmatprep.subr.bf16.mxu0 %v742_v35 }
 0x310   :  { %844 = vmatprep.subr.bf16.mxu1 %v744_v36 }
 0x312   :  { %792 = vmatpush1.bf16.msra.mxu0 %v741_v37 }
 0x313   :  { %845 = vmatpush1.bf16.msra.mxu1 %v743_v38 }
 0x315   :  { %5744 = vmatmul.mubr.msk.bf16.vlgmr.msra.gmra.mrb[20].mxu0 %vm110_vm0, %v6162_v40 }
 0x316   :  { %5746 = vmatmul.mubr.msk.bf16.vlgmr.msra.gmra.mrb[20].mxu1 %vm110_vm0, %v6162_v40  ;;  %831 = vmatprep.mubr.bf16.mxu0 %v9465_v3 }
 0x317   :  { %884 = vmatprep.mubr.bf16.mxu1 %v9465_v3 }
 0x31d   :  { %5745 = vmatmul.mubr.msk.bf16.gmra.mrb[24].mxu0 %vm110_vm0, %v6163_v42 }
 0x31e   :  { %5747 = vmatmul.mubr.msk.bf16.gmra.mrb[24].mxu1 %vm110_vm0, %v6163_v42  ;;  %1091 = vmatprep.mubr.bf16.mxu0 %v9465_v3 }
 0x31f   :  { %1144 = vmatprep.mubr.bf16.mxu1 %v9465_v3 }
 0x3e8   :  { %v823_v43 = vpop.f32.mrb[20].mxu0 }
 0x3e9   :  { %v7680_v18 = vadd.f32 %v823_v43, %v756_v27  ;;  %v876_v19 = vpop.f32.mrb[20].mxu1  ;;  %v825_v31 = vpop.f32.mrb[21].mxu0 }
 0x3ea   :  { %v7682_v10 = vadd.f32 %v876_v19, %v756_v27  ;;  %v7684_v39 = vadd.f32 %v825_v31, %v756_v27  ;;  %v878_v46 = vpop.f32.mrb[21].mxu1  ;;  %v827_v51 = vpop.f32.mrb[22].mxu0 }
 0x3eb   :  { %v5748_v52 = vmul.f32 -1.442695, %v7680_v18  ;;  %v7687_v53 = vadd.f32 %v878_v46, %v756_v27  ;;  %v7689_v58 = vadd.f32 %v827_v51, %v761_v7  ;;  %v880_v59 = vpop.f32.mrb[22].mxu1  ;;  %v829_v60 = vpop.f32.mrb[23].mxu0 }
 0x3ec   :  { %v5750_v62 = vmul.f32 -1.442695, %v7682_v10  ;;  %v5749_v2 = vmul.f32 -1.442695, %v7684_v39  ;;  %v7693_v4 = vadd.f32 %v880_v59, %v761_v7  ;;  %v7695_v5 = vadd.f32 %v829_v60, %v761_v7  ;;  %v882_v9 = vpop.f32.mrb[23].mxu1 }
 0x3ed   :  { %6325 = vpow2.f32 %v5748_v52  ;;  %v5751_v11 = vmul.f32 -1.442695, %v7687_v53  ;;  %v5752_v12 = vmul.f32 -1.442695, %v7689_v58  ;;  %v7699_v13 = vadd.f32 %v882_v9, %v761_v7 }
 0x3ee   :  { %6327 = vpow2.f32 %v5750_v62  ;;  %v5754_v14 = vmul.f32 -1.442695, %v7693_v4  ;;  %v5753_v17 = vmul.f32 -1.442695, %v7695_v5 }
 0x3ef   :  { %6329 = vpow2.f32 %v5749_v2  ;;  %v5755_v20 = vmul.f32 -1.442695, %v7699_v13 }
 0x3f0   :  { %6331 = vpow2.f32 %v5751_v11  ;;  %v833_v45 = vpop.f32.mrb[24].mxu0 }
 0x3f1   :  { %6333 = vpow2.f32 %v5752_v12  ;;  %v7704_v55 = vadd.f32 %v833_v45, %v766_v54  ;;  %v886_v21 = vpop.f32.mrb[24].mxu1  ;;  %v835_v49 = vpop.f32.mrb[25].mxu0 }
 0x3f2   :  { %6335 = vpow2.f32 %v5754_v14  ;;  %v7706_v41 = vadd.f32 %v886_v21, %v766_v54  ;;  %v7708_v63 = vadd.f32 %v835_v49, %v766_v54  ;;  %v888_v57 = vpop.f32.mrb[25].mxu1  ;;  %v837_v22 = vpop.f32.mrb[26].mxu0 }
 0x3f3   :  { %6337 = vpow2.f32 %v5753_v17  ;;  %v5756_v23 = vmul.f32 -1.442695, %v7704_v55  ;;  %v7711_v0 = vadd.f32 %v837_v22, %v771_v16  ;;  %v890_v50 = vpop.f32.mrb[26].mxu1  ;;  %v839_v25 = vpop.f32.mrb[27].mxu0  ;;  %v7716_v37 = vadd.f32 %v888_v57, %v766_v54 }
 0x3f4   :  { %6339 = vpow2.f32 %v5755_v20  ;;  %v5758_v56 = vmul.f32 -1.442695, %v7706_v41  ;;  %v5757_v8 = vmul.f32 -1.442695, %v7708_v63  ;;  %v892_v26 = vpop.f32.mrb[27].mxu1  ;;  %v7719_v59 = vadd.f32 %v890_v50, %v771_v16 }
 0x3f5   :  { %6341 = vpow2.f32 %v5756_v23  ;;  %v5760_v28 = vmul.f32 -1.442695, %v7711_v0  ;;  %v5759_v46 = vmul.f32 -1.442695, %v7716_v37  ;;  %v7721_v62 = vadd.f32 %v839_v25, %v771_v16 }
 0x3f6   :  { %6343 = vpow2.f32 %v5758_v56  ;;  %v7723_v9 = vadd.f32 %v892_v26, %v771_v16  ;;  %v5762_v14 = vmul.f32 -1.442695, %v7719_v59 }
 0x3f7   :  { %v6326_v30 = vpop.eup %6325  ;;  %6345 = vpow2.f32 %v5757_v8  ;;  %v5761_v20 = vmul.f32 -1.442695, %v7721_v62 }
 0x3f8   :  { %v6328_v6 = vpop.eup %6327  ;;  %v943_v33 = vadd.f32 1.0, %v6326_v30  ;;  %6347 = vpow2.f32 %v5760_v28  ;;  %v5763_v21 = vmul.f32 -1.442695, %v7723_v9 }
 0x3f9   :  { %v6330_v44 = vpop.eup %6329  ;;  %v945_v48 = vadd.f32 1.0, %v6328_v6 }
 0x3fa   :  { %v6332_v35 = vpop.eup %6331  ;;  %6349 = vrcp.f32 %v943_v33  ;;  %v944_v36 = vadd.f32 1.0, %v6330_v44 }
 0x3fb   :  { %v6334_v38 = vpop.eup %6333  ;;  %6351 = vrcp.f32 %v945_v48  ;;  %v946_v40 = vadd.f32 1.0, %v6332_v35 }
 0x3fc   :  { %v6336_v42 = vpop.eup %6335  ;;  %6353 = vrcp.f32 %v944_v36  ;;  %v947_v7 = vadd.f32 1.0, %v6334_v38 }
 0x3fd   :  { %v6338_v27 = vpop.eup %6337  ;;  %6355 = vrcp.f32 %v946_v40  ;;  %v949_v43 = vadd.f32 1.0, %v6336_v42 }
 0x3fe   :  { %v6340_v19 = vpop.eup %6339  ;;  %6357 = vrcp.f32 %v947_v7  ;;  %v948_v31 = vadd.f32 1.0, %v6338_v27 }
 0x3ff   :  { %v6342_v51 = vpop.eup %6341  ;;  %6359 = vrcp.f32 %v949_v43  ;;  %v950_v52 = vadd.f32 1.0, %v6340_v19 }
 0x400   :  { %6361 = vrcp.f32 %v948_v31  ;;  %v951_v60 = vadd.f32 1.0, %v6342_v51  ;;  %v6344_v2 = vpop.eup %6343 }
 0x401   :  { %6363 = vrcp.f32 %v950_v52  ;;  %v6346_v11 = vpop.eup %6345  ;;  %v953_v35 = vadd.f32 1.0, %v6344_v2 }
 0x402   :  { %6365 = vpow2.f32 %v5759_v46  ;;  %v6348_v12 = vpop.eup %6347  ;;  %v952_v38 = vadd.f32 1.0, %v6346_v11 }
 0x403   :  { %6367 = vrcp.f32 %v951_v60  ;;  %v955_v54 = vadd.f32 1.0, %v6348_v12 }
 0x404   :  { %v6350_v17 = vpop.eup %6349 }
 0x405   :  { %v6352_v45 = vpop.eup %6351  ;;  %6369 = vrcp.f32 %v955_v54  ;;  %v991_v23 = vmul.f32 %v6350_v17, %v7680_v18 }
 0x406   :  { %v6354_v49 = vpop.eup %6353  ;;  %6371 = vpow2.f32 %v5762_v14  ;;  %v993_v56 = vmul.f32 %v6352_v45, %v7682_v10 }
 0x407   :  { %v6356_v57 = vpop.eup %6355  ;;  %6373 = vpow2.f32 %v5761_v20  ;;  %v992_v28 = vmul.f32 %v6354_v49, %v7684_v39 }
 0x408   :  { %v6358_v22 = vpop.eup %6357  ;;  %6375 = vpow2.f32 %v5763_v21  ;;  %v994_v44 = vmul.f32 %v6356_v57, %v7687_v53  ;;  %v6164_v21 = vld [vmem:[%s9462_s1 + $0x38] sm:$0xff]  }
 0x409   :  { %v6360_v16 = vpop.eup %6359  ;;  %v995_v50 = vmul.f32 %v6358_v22, %v7689_v58  ;;  %6377 = vrcp.f32 %v953_v35 }
 0x40a   :  { %v6362_v25 = vpop.eup %6361  ;;  %v997_v8 = vmul.f32 %v6360_v16, %v7693_v4  ;;  %6379 = vrcp.f32 %v952_v38 }
 0x40b   :  { %v6364_v26 = vpop.eup %6363  ;;  %v1015_v30 = vpack.c.bf16 %v995_v50, %v991_v23  ;;  %v996_v6 = vmul.f32 %v6362_v25, %v7695_v5 }
 0x40c   :  { %v6366_v33 = vpop.eup %6365  ;;  %v1017_v48 = vpack.c.bf16 %v997_v8, %v993_v56  ;;  %v998_v18 = vmul.f32 %v6364_v26, %v7699_v13 }
 0x40d   :  { %v1016_v58 = vpack.c.bf16 %v996_v6, %v992_v28  ;;  %v6368_v36 = vpop.eup %6367  ;;  %v954_v10 = vadd.f32 1.0, %v6366_v33 }
 0x40e   :  { %v1018_v40 = vpack.c.bf16 %v998_v18, %v994_v44  ;;  %v999_v42 = vmul.f32 %v6368_v36, %v7704_v55 }
 0x40f   :  { %1059 = vmatprep.subr.bf16.mxu0 %v1016_v58  ;;  %v6370_v4 = vpop.eup %6369  ;;  %6381 = vrcp.f32 %v954_v10 }
 0x410   :  { %1112 = vmatprep.subr.bf16.mxu1 %v1018_v40  ;;  %1060 = vmatpush1.bf16.msra.mxu0 %v1015_v30  ;;  %v6372_v39 = vpop.eup %6371  ;;  %v1003_v5 = vmul.f32 %v6370_v4, %v7711_v0 }
 0x411   :  { %1113 = vmatpush1.bf16.msra.mxu1 %v1017_v48  ;;  %v6374_v53 = vpop.eup %6373  ;;  %v957_v13 = vadd.f32 1.0, %v6372_v39 }
 0x412   :  { %v6376_v7 = vpop.eup %6375  ;;  %v1019_v27 = vpack.c.bf16 %v1003_v5, %v999_v42  ;;  %v956_v43 = vadd.f32 1.0, %v6374_v53 }
 0x413   :  { %6383 = vrcp.f32 %v957_v13  ;;  %v958_v19 = vadd.f32 1.0, %v6376_v7  ;;  %v6378_v31 = vpop.eup %6377 }
 0x414   :  { %6385 = vrcp.f32 %v956_v43  ;;  %v6380_v46 = vpop.eup %6379  ;;  %v1001_v60 = vmul.f32 %v6378_v31, %v7706_v41  ;;  %v6165_v41 = vld [vmem:[%s9462_s1 + $0x40] sm:$0xff]  }
 0x415   :  { %6387 = vrcp.f32 %v958_v19  ;;  %v1000_v11 = vmul.f32 %v6380_v46, %v7708_v63  ;;  %v1031_v63 = vpop.permute.xlu1 %1030 }
 0x419   :  { %v6382_v51 = vpop.eup %6381  ;;  %v1041_v36 = vpop.permute.xlu1 %1040 }
 0x41a   :  { %v1002_v14 = vmul.f32 %v6382_v51, %v7716_v37  ;;  %v1026_v37 = vpop.permute.xlu0 %1025 }
 0x41d   :  { %v6384_v52 = vpop.eup %6383 }
 0x41e   :  { %v6386_v55 = vpop.eup %6385  ;;  %v1005_v0 = vmul.f32 %v6384_v52, %v7719_v59  ;;  %v1036_v40 = vpop.permute.xlu0 %1035 }
 0x41f   :  { %v6388_v2 = vpop.eup %6387  ;;  %v1004_v12 = vmul.f32 %v6386_v55, %v7721_v62 }
 0x420   :  { %v1021_v17 = vpack.c.bf16 %v1005_v0, %v1001_v60  ;;  %v1006_v54 = vmul.f32 %v6388_v2, %v7723_v9 }
 0x421   :  { %v1020_v20 = vpack.c.bf16 %v1004_v12, %v1000_v11 }
 0x422   :  { %v1022_v45 = vpack.c.bf16 %v1006_v54, %v1002_v14 }
 0x423   :  { %1061 = vmatprep.subr.bf16.mxu0 %v1020_v20 }
 0x424   :  { %1114 = vmatprep.subr.bf16.mxu1 %v1022_v45  ;;  %1062 = vmatpush1.bf16.msra.mxu0 %v1019_v27 }
 0x425   :  { %1115 = vmatpush1.bf16.msra.mxu1 %v1021_v17 }
 0x427   :  { %5766 = vmatmul.mubr.msk.bf16.vlgmr.msra.gmra.mrb[28].mxu0 %vm110_vm0, %v6164_v21 }
 0x428   :  { %5768 = vmatmul.mubr.msk.bf16.vlgmr.msra.gmra.mrb[28].mxu1 %vm110_vm0, %v6164_v21  ;;  %1101 = vmatprep.mubr.bf16.mxu0 %v9465_v3 }
 0x429   :  { %1154 = vmatprep.mubr.bf16.mxu1 %v9465_v3 }
 0x42f   :  { %5767 = vmatmul.mubr.msk.bf16.gmra.mrb[32].mxu0 %vm110_vm0, %v6165_v41 }
 0x430   :  { %5769 = vmatmul.mubr.msk.bf16.gmra.mrb[32].mxu1 %vm110_vm0, %v6165_v41  ;;  %1339 = vmatprep.mubr.bf16.mxu0 %v9465_v3 }
 0x431   :  { %1382 = vmatprep.mubr.bf16.mxu1 %v9465_v3 }
 0x4fa   :  { %v1093_v59 = vpop.f32.mrb[28].mxu0 }
 0x4fb   :  { %v7758_v62 = vadd.f32 %v1093_v59, %v1026_v37  ;;  %v1146_v9 = vpop.f32.mrb[28].mxu1  ;;  %v1095_v49 = vpop.f32.mrb[29].mxu0 }
 0x4fc   :  { %v7760_v57 = vadd.f32 %v1146_v9, %v1026_v37  ;;  %v7762_v22 = vadd.f32 %v1095_v49, %v1026_v37  ;;  %v1148_v16 = vpop.f32.mrb[29].mxu1  ;;  %v1097_v23 = vpop.f32.mrb[30].mxu0 }
 0x4fd   :  { %v5770_v50 = vmul.f32 -1.442695, %v7758_v62  ;;  %v7765_v25 = vadd.f32 %v1148_v16, %v1026_v37  ;;  %v7767_v56 = vadd.f32 %v1097_v23, %v1031_v63  ;;  %v1150_v8 = vpop.f32.mrb[30].mxu1  ;;  %v1099_v26 = vpop.f32.mrb[31].mxu0 }
 0x4fe   :  { %v5772_v28 = vmul.f32 -1.442695, %v7760_v57  ;;  %v5771_v30 = vmul.f32 -1.442695, %v7762_v22  ;;  %v7771_v6 = vadd.f32 %v1150_v8, %v1031_v63  ;;  %v7773_v33 = vadd.f32 %v1099_v26, %v1031_v63  ;;  %v1152_v44 = vpop.f32.mrb[31].mxu1 }
 0x4ff   :  { %6389 = vpow2.f32 %v5770_v50  ;;  %v5773_v48 = vmul.f32 -1.442695, %v7765_v25  ;;  %v5774_v18 = vmul.f32 -1.442695, %v7767_v56  ;;  %v7777_v35 = vadd.f32 %v1152_v44, %v1031_v63 }
 0x500   :  { %6391 = vpow2.f32 %v5772_v28  ;;  %v5776_v58 = vmul.f32 -1.442695, %v7771_v6  ;;  %v5775_v38 = vmul.f32 -1.442695, %v7773_v33 }
 0x501   :  { %6393 = vpow2.f32 %v5771_v30  ;;  %v5777_v10 = vmul.f32 -1.442695, %v7777_v35 }
 0x502   :  { %6395 = vpow2.f32 %v5773_v48  ;;  %v1103_v4 = vpop.f32.mrb[32].mxu0 }
 0x503   :  { %6397 = vpow2.f32 %v5774_v18  ;;  %v7782_v39 = vadd.f32 %v1103_v4, %v1036_v40  ;;  %v1156_v42 = vpop.f32.mrb[32].mxu1  ;;  %v1105_v5 = vpop.f32.mrb[33].mxu0 }
 0x504   :  { %6399 = vpow2.f32 %v5776_v58  ;;  %v7784_v53 = vadd.f32 %v1156_v42, %v1036_v40  ;;  %v7786_v13 = vadd.f32 %v1105_v5, %v1036_v40  ;;  %v1158_v7 = vpop.f32.mrb[33].mxu1  ;;  %v1107_v27 = vpop.f32.mrb[34].mxu0 }
 0x505   :  { %6401 = vpow2.f32 %v5775_v38  ;;  %v5778_v43 = vmul.f32 -1.442695, %v7782_v39  ;;  %v7789_v19 = vadd.f32 %v1107_v27, %v1041_v36  ;;  %v1160_v31 = vpop.f32.mrb[34].mxu1  ;;  %v1109_v46 = vpop.f32.mrb[35].mxu0  ;;  %v7794_v20 = vadd.f32 %v1158_v7, %v1036_v40 }
 0x506   :  { %6403 = vpow2.f32 %v5777_v10  ;;  %v5780_v51 = vmul.f32 -1.442695, %v7784_v53  ;;  %v5779_v52 = vmul.f32 -1.442695, %v7786_v13  ;;  %v1162_v55 = vpop.f32.mrb[35].mxu1  ;;  %v7797_v8 = vadd.f32 %v1160_v31, %v1041_v36 }
 0x507   :  { %6405 = vpow2.f32 %v5778_v43  ;;  %v5782_v60 = vmul.f32 -1.442695, %v7789_v19  ;;  %v5781_v16 = vmul.f32 -1.442695, %v7794_v20  ;;  %v7799_v28 = vadd.f32 %v1109_v46, %v1041_v36 }
 0x508   :  { %6407 = vpow2.f32 %v5780_v51  ;;  %v7801_v44 = vadd.f32 %v1162_v55, %v1041_v36  ;;  %v5784_v58 = vmul.f32 -1.442695, %v7797_v8 }
 0x509   :  { %v6390_v0 = vpop.eup %6389  ;;  %6409 = vpow2.f32 %v5779_v52  ;;  %v5783_v10 = vmul.f32 -1.442695, %v7799_v28 }
 0x50a   :  { %v6392_v2 = vpop.eup %6391  ;;  %v1213_v11 = vadd.f32 1.0, %v6390_v0  ;;  %6411 = vpow2.f32 %v5782_v60  ;;  %v5785_v42 = vmul.f32 -1.442695, %v7801_v44 }
 0x50b   :  { %v6394_v12 = vpop.eup %6393  ;;  %v1215_v14 = vadd.f32 1.0, %v6392_v2 }
 0x50c   :  { %v6396_v17 = vpop.eup %6395  ;;  %6413 = vrcp.f32 %v1213_v11  ;;  %v1214_v54 = vadd.f32 1.0, %v6394_v12 }
 0x50d   :  { %v6398_v45 = vpop.eup %6397  ;;  %6415 = vrcp.f32 %v1215_v14  ;;  %v1216_v21 = vadd.f32 1.0, %v6396_v17 }
 0x50e   :  { %v6400_v41 = vpop.eup %6399  ;;  %6417 = vrcp.f32 %v1214_v54  ;;  %v1217_v63 = vadd.f32 1.0, %v6398_v45 }
 0x50f   :  { %v6402_v37 = vpop.eup %6401  ;;  %6419 = vrcp.f32 %v1216_v21  ;;  %v1219_v59 = vadd.f32 1.0, %v6400_v41 }
 0x510   :  { %v6404_v9 = vpop.eup %6403  ;;  %6421 = vrcp.f32 %v1217_v63  ;;  %v1218_v49 = vadd.f32 1.0, %v6402_v37 }
 0x511   :  { %v6406_v23 = vpop.eup %6405  ;;  %6423 = vrcp.f32 %v1219_v59  ;;  %v1220_v50 = vadd.f32 1.0, %v6404_v9 }
 0x512   :  { %6425 = vrcp.f32 %v1218_v49  ;;  %v1221_v26 = vadd.f32 1.0, %v6406_v23  ;;  %v6408_v30 = vpop.eup %6407 }
 0x513   :  { %6427 = vrcp.f32 %v1220_v50  ;;  %v6410_v48 = vpop.eup %6409  ;;  %v1223_v17 = vadd.f32 1.0, %v6408_v30  ;;  %v7821_v30 = vld [vmem:[%s9461_s0 + $0x10] sm:$0xff] }
 0x514   :  { %6429 = vpow2.f32 %v5781_v16  ;;  %v6412_v18 = vpop.eup %6411  ;;  %v1222_v45 = vadd.f32 1.0, %v6410_v48  ;;  %v7826_v48 = vld [vmem:[%s9461_s0 + $0x50] sm:$0xff] }
 0x515   :  { %6431 = vrcp.f32 %v1221_v26  ;;  %v1225_v40 = vadd.f32 1.0, %v6412_v18 }
 0x516   :  { %v6414_v38 = vpop.eup %6413 }
 0x517   :  { %v6416_v4 = vpop.eup %6415  ;;  %6433 = vrcp.f32 %v1225_v40  ;;  %v1261_v43 = vmul.f32 %v6414_v38, %v7758_v62 }
 0x518   :  { %v6418_v5 = vpop.eup %6417  ;;  %6435 = vpow2.f32 %v5784_v58  ;;  %v1263_v51 = vmul.f32 %v6416_v4, %v7760_v57 }
 0x519   :  { %v6420_v7 = vpop.eup %6419  ;;  %6437 = vpow2.f32 %v5783_v10  ;;  %v1262_v60 = vmul.f32 %v6418_v5, %v7762_v22 }
 0x51a   :  { %v6422_v27 = vpop.eup %6421  ;;  %6439 = vpow2.f32 %v5785_v42  ;;  %v1264_v12 = vmul.f32 %v6420_v7, %v7765_v25  ;;  %v7849_v7 = vld [vmem:[%s9461_s0 + $0x90] sm:$0xff] }
 0x51b   :  { %v6424_v36 = vpop.eup %6423  ;;  %v1265_v31 = vmul.f32 %v6422_v27, %v7767_v56  ;;  %6441 = vrcp.f32 %v1223_v17  ;;  %v7862_v27 = vld [vmem:[%s9461_s0 + $0x98] sm:$0xff] }
 0x51c   :  { %v6426_v46 = vpop.eup %6425  ;;  %v1267_v52 = vmul.f32 %v6424_v36, %v7771_v6  ;;  %6443 = vrcp.f32 %v1222_v45  ;;  %v7867_v36 = vld [vmem:[%s9461_s0 + $0xd8] sm:$0xff] }
 0x51d   :  { %v6428_v55 = vpop.eup %6427  ;;  %v1281_v0 = vpack.c.bf16 %v1265_v31, %v1261_v43  ;;  %v1266_v2 = vmul.f32 %v6426_v46, %v7773_v33  ;;  %v5803_v43 = vcombine.low %v7821_v30, %v7826_v48 }
 0x51e   :  { %v6430_v11 = vpop.eup %6429  ;;  %v1283_v14 = vpack.c.bf16 %v1267_v52, %v1263_v51  ;;  %v1268_v62 = vmul.f32 %v6428_v55, %v7777_v35  ;;  %v5810_v51 = vcombine.high %v7862_v27, %v7867_v36  ;;  %v5809_v55 = vcombine.low %v7862_v27, %v7867_v36 }
 0x51f   :  { %v1282_v56 = vpack.c.bf16 %v1266_v2, %v1262_v60  ;;  %v6432_v54 = vpop.eup %6431  ;;  %v1224_v57 = vadd.f32 1.0, %v6430_v11  ;;  %v6167_v60 = vld [vmem:[%s9462_s1] sm:$0xff]   ;;  %v7899_v2 = vpop.permute.xlu1 %1461 }
 0x520   :  { %v1284_v21 = vpack.c.bf16 %v1268_v62, %v1264_v12  ;;  %v1269_v41 = vmul.f32 %v6432_v54, %v7782_v39  ;;  %v7901_v11 = vpop.permute.xlu0 %1456 }
 0x521   :  { %1307 = vmatprep.subr.bf16.mxu0 %v1282_v56  ;;  %v6434_v6 = vpop.eup %6433  ;;  %6445 = vrcp.f32 %v1224_v57 }
 0x522   :  { %1350 = vmatprep.subr.bf16.mxu1 %v1284_v21  ;;  %1308 = vmatpush1.bf16.msra.mxu0 %v1281_v0  ;;  %v6436_v22 = vpop.eup %6435  ;;  %v1273_v33 = vmul.f32 %v6434_v6, %v7789_v19  ;;  %v6168_v0 = vld [vmem:[%s9462_s1 + $0x8] sm:$0xff]  }
 0x523   :  { %1351 = vmatpush1.bf16.msra.mxu1 %v1283_v14  ;;  %v6438_v25 = vpop.eup %6437  ;;  %v1227_v35 = vadd.f32 1.0, %v6436_v22  ;;  %v7903_v12 = vpop.permute.xlu1 %1471 }
 0x524   :  { %v6440_v63 = vpop.eup %6439  ;;  %v1285_v37 = vpack.c.bf16 %v1273_v33, %v1269_v41  ;;  %v1226_v59 = vadd.f32 1.0, %v6438_v25  ;;  %v7905_v14 = vpop.permute.xlu0 %1466 }
 0x525   :  { %6447 = vrcp.f32 %v1227_v35  ;;  %v1228_v9 = vadd.f32 1.0, %v6440_v63  ;;  %v6442_v49 = vpop.eup %6441 }
 0x526   :  { %6449 = vrcp.f32 %v1226_v59  ;;  %v6444_v16 = vpop.eup %6443  ;;  %v1271_v26 = vmul.f32 %v6442_v49, %v7784_v53  ;;  %v7833_v53 = vld [vmem:[%s9461_s0 + $0x18] sm:$0xff] }
 0x527   :  { %6451 = vrcp.f32 %v1228_v9  ;;  %v1270_v58 = vmul.f32 %v6444_v16, %v7786_v13  ;;  %v5804_v13 = vcombine.high %v7821_v30, %v7826_v48  ;;  %v7907_v62 = vpop.permute.xlu1 %1771 }
 0x528   :  { %v7909_v17 = vpop.permute.xlu0 %1766 }
 0x52b   :  { %v6446_v23 = vpop.eup %6445  ;;  %v7911_v56 = vpop.permute.xlu1 %1781 }
 0x52c   :  { %v1272_v40 = vmul.f32 %v6446_v23, %v7794_v20  ;;  %v7854_v20 = vld [vmem:[%s9461_s0 + $0xd0] sm:$0xff]  ;;  %v7913_v54 = vpop.permute.xlu0 %1776 }
 0x52d   :  { %v5808_v46 = vcombine.high %v7849_v7, %v7854_v20  ;;  %v5807_v52 = vcombine.low %v7849_v7, %v7854_v20 }
 0x52f   :  { %v6448_v50 = vpop.eup %6447  ;;  %v7915_v45 = vpop.permute.xlu1 %2037 }
 0x530   :  { %v6450_v39 = vpop.eup %6449  ;;  %v1275_v19 = vmul.f32 %v6448_v50, %v7797_v8  ;;  %v7838_v8 = vld [vmem:[%s9461_s0 + $0x58] sm:$0xff]  ;;  %v7917_v21 = vpop.permute.xlu0 %2032 }
 0x531   :  { %v6452_v18 = vpop.eup %6451  ;;  %v1274_v38 = vmul.f32 %v6450_v39, %v7799_v28  ;;  %v5806_v5 = vcombine.high %v7833_v53, %v7838_v8  ;;  %v5805_v31 = vcombine.low %v7833_v53, %v7838_v8 }
 0x532   :  { %v1287_v10 = vpack.c.bf16 %v1275_v19, %v1271_v26  ;;  %v1276_v4 = vmul.f32 %v6452_v18, %v7801_v44  ;;  %v6166_v44 = vld [vmem:[%s9462_s1 + $0x48] sm:$0xff]  }
 0x533   :  { %v1286_v42 = vpack.c.bf16 %v1274_v38, %v1270_v58  ;;  %v7919_v57 = vpop.permute.xlu1 %2173 }
 0x534   :  { %v1288_v28 = vpack.c.bf16 %v1276_v4, %v1272_v40  ;;  %v7921_v6 = vpop.permute.xlu0 %2168 }
 0x535   :  { %1309 = vmatprep.subr.bf16.mxu0 %v1286_v42 }
 0x536   :  { %1352 = vmatprep.subr.bf16.mxu1 %v1288_v28  ;;  %1310 = vmatpush1.bf16.msra.mxu0 %v1285_v37 }
 0x537   :  { %1353 = vmatpush1.bf16.msra.mxu1 %v1287_v10  ;;  %1530 = vmatprep.subr.bf16.mxu0 %v5804_v13  ;;  %v7923_v22 = vpop.permute.xlu1 %2183 }
 0x538   :  { %1583 = vmatprep.subr.bf16.mxu1 %v5806_v5  ;;  %v7925_v41 = vpop.permute.xlu0 %2178 }
 0x539   :  { %5787 = vmatmul.mubr.msk.bf16.vlgmr.msra.gmra.mrb[36].mxu0 %vm110_vm0, %v6166_v44 }
 0x53a   :  { %5788 = vmatmul.mubr.msk.bf16.vlgmr.msra.gmra.mrb[36].mxu1 %vm110_vm0, %v6166_v44  ;;  %1531 = vmatpush1.bf16.msra.mxu0 %v5803_v43 }
 0x53b   :  { %1584 = vmatpush1.bf16.msra.mxu1 %v5805_v31  ;;  %1532 = vmatprep.subr.bf16.mxu0 %v5808_v46  ;;  %v7927_v33 = vpop.permute.xlu1 %2443 }
 0x53c   :  { %1585 = vmatprep.subr.bf16.mxu1 %v5810_v51  ;;  %1562 = vmatprep.mubr.bf16.mxu0 %v9465_v3  ;;  %v7929_v25 = vpop.permute.xlu0 %2438 }
 0x53d   :  { %1615 = vmatprep.mubr.bf16.mxu1 %v9465_v3 }
 0x53e   :  { %1533 = vmatpush1.bf16.msra.mxu0 %v5807_v52 }
 0x53f   :  { %1586 = vmatpush1.bf16.msra.mxu1 %v5809_v55  ;;  %v7931_v35 = vpop.permute.xlu1 %2453 }
 0x540   :  { %v7933_v63 = vpop.permute.xlu0 %2448 }
 0x541   :  { %5811 = vmatmul.mubr.msk.bf16.vlgmr.msra.gmra.mrb[40].mxu0 %vm110_vm0, %v6167_v60 }
 0x542   :  { %5813 = vmatmul.mubr.msk.bf16.vlgmr.msra.gmra.mrb[40].mxu1 %vm110_vm0, %v6167_v60  ;;  %1572 = vmatprep.mubr.bf16.mxu0 %v9465_v3 }
 0x543   :  { %1625 = vmatprep.mubr.bf16.mxu1 %v9465_v3  ;;  %v7935_v37 = vpop.permute.xlu1 %2875 }
 0x544   :  { %v7937_v59 = vpop.permute.xlu0 %2870 }
 0x547   :  { %v7939_v9 = vpop.permute.xlu1 %2885 }
 0x548   :  { %v7941_v49 = vpop.permute.xlu0 %2880 }
 0x549   :  { %5812 = vmatmul.mubr.msk.bf16.gmra.mrb[44].mxu0 %vm110_vm0, %v6168_v0 }
 0x54a   :  { %5814 = vmatmul.mubr.msk.bf16.gmra.mrb[44].mxu1 %vm110_vm0, %v6168_v0  ;;  %1832 = vmatprep.mubr.bf16.mxu0 %v9465_v3 }
 0x54b   :  { %1885 = vmatprep.mubr.bf16.mxu1 %v9465_v3  ;;  %v7943_v16 = vpop.permute.xlu1 %3185 }
 0x54c   :  { %9499 = vst [vmem:[#allocation5_spill] sm:$0xff] %v7943_v16  ;;  %v7945_v23 = vpop.permute.xlu0 %3180 }
 0x54d   :  { %9500 = vst [vmem:[#allocation6_spill] sm:$0xff] %v7945_v23 }
 0x54f   :  { %v7947_v50 = vpop.permute.xlu1 %3195 }
 0x550   :  { %9501 = vst [vmem:[#allocation7_spill] sm:$0xff] %v7947_v50  ;;  %v7949_v39 = vpop.permute.xlu0 %3190 }
 0x551   :  { %9502 = vst [vmem:[#allocation8_spill] sm:$0xff] %v7949_v39 }
 0x553   :  { %v7951_v26 = vpop.permute.xlu1 %3451 }
 0x554   :  { %9503 = vst [vmem:[#allocation9_spill] sm:$0xff] %v7951_v26  ;;  %v7953_v19 = vpop.permute.xlu0 %3446 }
 0x555   :  { %9504 = vst [vmem:[#allocation10_spill] sm:$0xff] %v7953_v19 }
 0x557   :  { %v7955_v18 = vpop.permute.xlu1 %3587 }
 0x558   :  { %9505 = vst [vmem:[#allocation11_spill] sm:$0xff] %v7955_v18  ;;  %v7957_v58 = vpop.permute.xlu0 %3582 }
 0x559   :  { %9506 = vst [vmem:[#allocation12_spill] sm:$0xff] %v7957_v58 }
 0x55b   :  { %v7959_v38 = vpop.permute.xlu1 %3597 }
 0x55c   :  { %9507 = vst [vmem:[#allocation13_spill] sm:$0xff] %v7959_v38  ;;  %v7961_v40 = vpop.permute.xlu0 %3592 }
 0x55d   :  { %9508 = vst [vmem:[#allocation14_spill] sm:$0xff] %v7961_v40 }
 0x55f   :  { %v7963_v10 = vpop.permute.xlu1 %3857 }
 0x560   :  { %9509 = vst [vmem:[#allocation15_spill] sm:$0xff] %v7963_v10  ;;  %v7965_v4 = vpop.permute.xlu0 %3852 }
 0x561   :  { %9510 = vst [vmem:[#allocation16_spill] sm:$0xff] %v7965_v4 }
 0x563   :  { %v7967_v42 = vpop.permute.xlu1 %3867 }
 0x564   :  { %9511 = vst [vmem:[#allocation17_spill] sm:$0xff] %v7967_v42  ;;  %v7969_v13 = vpop.permute.xlu0 %3862 }
 0x565   :  { %9512 = vst [vmem:[#allocation18_spill] sm:$0xff] %v7969_v13 }
 0x567   :  { %v7971_v28 = vpop.permute.xlu1 %4289 }
 0x568   :  { %9513 = vst [vmem:[#allocation19_spill] sm:$0xff] %v7971_v28  ;;  %v7973_v5 = vpop.permute.xlu0 %4284 }
 0x569   :  { %9514 = vst [vmem:[#allocation20_spill] sm:$0xff] %v7973_v5 }
 0x56b   :  { %v7975_v44 = vpop.permute.xlu1 %4299 }
 0x56c   :  { %9515 = vst [vmem:[#allocation21_spill] sm:$0xff] %v7975_v44  ;;  %v7977_v43 = vpop.permute.xlu0 %4294 }
 0x56d   :  { %9516 = vst [vmem:[#allocation22_spill] sm:$0xff] %v7977_v43 }
 0x56f   :  { %v7979_v31 = vpop.permute.xlu1 %4599 }
 0x570   :  { %9517 = vst [vmem:[#allocation23_spill] sm:$0xff] %v7979_v31  ;;  %v7981_v46 = vpop.permute.xlu0 %4594 }
 0x571   :  { %9518 = vst [vmem:[#allocation24_spill] sm:$0xff] %v7981_v46 }
 0x573   :  { %v7983_v51 = vpop.permute.xlu1 %4609 }
 0x574   :  { %9519 = vst [vmem:[#allocation25_spill] sm:$0xff] %v7983_v51  ;;  %v7985_v52 = vpop.permute.xlu0 %4604 }
 0x575   :  { %9520 = vst [vmem:[#allocation26_spill] sm:$0xff] %v7985_v52 }
 0x577   :  { %v7987_v55 = vpop.permute.xlu1 %4865 }
 0x578   :  { %9521 = vst [vmem:[#allocation27_spill] sm:$0xff] %v7987_v55  ;;  %v7989_v60 = vpop.permute.xlu0 %4860 }
 0x579   :  { %9522 = vst [vmem:[#allocation28_spill] sm:$0xff] %v7989_v60 }
 0x57b   :  { %v7991_v0 = vpop.permute.xlu1 %5001 }
 0x57c   :  { %9523 = vst [vmem:[#allocation29_spill] sm:$0xff] %v7991_v0  ;;  %v7993_v3 = vpop.permute.xlu0 %4996 }
 0x57d   :  { %9524 = vst [vmem:[#allocation30_spill] sm:$0xff] %v7993_v3 }
 0x57f   :  { %v7995_v28 = vpop.permute.xlu1 %5011 }
 0x580   :  { %9525 = vst [vmem:[#allocation31_spill] sm:$0xff] %v7995_v28  ;;  %v7997_v44 = vpop.permute.xlu0 %5006 }
 0x581   :  { %9526 = vst [vmem:[#allocation32_spill] sm:$0xff] %v7997_v44 }
 0x583   :  { %v7999_v43 = vpop.permute.xlu1 %5271 }
 0x584   :  { %9527 = vst [vmem:[#allocation33_spill] sm:$0xff] %v7999_v43  ;;  %v8001_v31 = vpop.permute.xlu0 %5266 }
 0x585   :  { %9528 = vst [vmem:[#allocation34_spill] sm:$0xff] %v8001_v31 }
 0x587   :  { %v8003_v46 = vpop.permute.xlu1 %5281 }
 0x588   :  { %9529 = vst [vmem:[#allocation35_spill] sm:$0xff] %v8003_v46  ;;  %v8005_v51 = vpop.permute.xlu0 %5276 }
 0x589   :  { %9530 = vst [vmem:[#allocation36_spill] sm:$0xff] %v8005_v51 }
 0x58b   :  { %v1297_v52 = vpop.permute.xlu1 %1296 }
 0x58c   :  { %v1292_v55 = vpop.permute.xlu0 %1291 }
 0x60c   :  { %v1341_v5 = vpop.f32.mrb[36].mxu0 }
 0x60d   :  { %v1342_v60 = vadd.f32 %v1341_v5, %v1292_v55  ;;  %v1384_v42 = vpop.f32.mrb[36].mxu1  ;;  %v1343_v0 = vpop.f32.mrb[37].mxu0 }
 0x60e   :  { %v1385_v13 = vadd.f32 %v1384_v42, %v1292_v55  ;;  %v1344_v3 = vadd.f32 %v1343_v0, %v1292_v55  ;;  %v1386_v10 = vpop.f32.mrb[37].mxu1  ;;  %v1345_v28 = vpop.f32.mrb[38].mxu0 }
 0x60f   :  { %v1393_v44 = vadd.f32 %v1342_v60, %v7636_v61  ;;  %v1387_v4 = vadd.f32 %v1386_v10, %v1292_v55  ;;  %v1346_v43 = vadd.f32 %v1345_v28, %v1297_v52  ;;  %v1388_v38 = vpop.f32.mrb[38].mxu1  ;;  %v1347_v31 = vpop.f32.mrb[39].mxu0 }
 0x610   :  { %v1395_v46 = vadd.f32 %v1385_v13, %v7641_v24  ;;  %v1394_v51 = vadd.f32 %v1344_v3, %v7643_v47  ;;  %v1389_v40 = vadd.f32 %v1388_v38, %v1297_v52  ;;  %v1348_v18 = vadd.f32 %v1347_v31, %v1297_v52  ;;  %v1390_v58 = vpop.f32.mrb[39].mxu1 }
 0x611   :  { %v1396_v5 = vadd.f32 %v1387_v4, %v7645_v1  ;;  %v1397_v42 = vadd.f32 %v1346_v43, %v7654_v15  ;;  %v1391_v0 = vadd.f32 %v1390_v58, %v1297_v52 }
 0x612   :  { %v6135_v26 = vpack.c.bf16 %v1394_v51, %v1393_v44  ;;  %v1399_v19 = vadd.f32 %v1389_v40, %v7660_v34  ;;  %v1398_v61 = vadd.f32 %v1348_v18, %v7650_v29 }
 0x613   :  { %v6136_v10 = vpack.c.bf16 %v1396_v5, %v1395_v46  ;;  %v1400_v28 = vadd.f32 %v1391_v0, %v7656_v32 }
 0x614   :  { %1425 = vst [vmem:[#allocation2] sm:$0xff] %v6135_v26  ;;  %v6137_v24 = vpack.c.bf16 %v1398_v61, %v1397_v42  ;;  %v1564_v13 = vpop.f32.mrb[40].mxu0 }
 0x615   :  { %1426 = vst [vmem:[#allocation2 + $0x8] sm:$0xff] %v6136_v10  ;;  %v6138_v3 = vpack.c.bf16 %v1400_v28, %v1399_v19  ;;  %v8016_v47 = vadd.f32 %v1564_v13, %v7901_v11  ;;  %v1617_v1 = vpop.f32.mrb[40].mxu1  ;;  %v1566_v38 = vpop.f32.mrb[41].mxu0 }
 0x616   :  { %1427 = vst [vmem:[#allocation2 + $0x40] sm:$0xff] %v6137_v24  ;;  %v8019_v15 = vadd.f32 %v1617_v1, %v7901_v11  ;;  %v8022_v34 = vadd.f32 %v1566_v38, %v7901_v11  ;;  %v1619_v29 = vpop.f32.mrb[41].mxu1  ;;  %v1568_v18 = vpop.f32.mrb[42].mxu0 }
 0x617   :  { %1428 = vst [vmem:[#allocation2 + $0x48] sm:$0xff] %v6138_v3  ;;  %v5815_v32 = vmul.f32 -1.442695, %v8016_v47  ;;  %v8026_v26 = vadd.f32 %v1619_v29, %v7901_v11  ;;  %v8029_v19 = vadd.f32 %v1568_v18, %v7899_v2  ;;  %v1621_v58 = vpop.f32.mrb[42].mxu1  ;;  %v1570_v40 = vpop.f32.mrb[43].mxu0 }
 0x618   :  { %v5817_v4 = vmul.f32 -1.442695, %v8019_v15  ;;  %v5816_v44 = vmul.f32 -1.442695, %v8022_v34  ;;  %v8034_v43 = vadd.f32 %v1621_v58, %v7899_v2  ;;  %v8037_v31 = vadd.f32 %v1570_v40, %v7899_v2  ;;  %v1623_v46 = vpop.f32.mrb[43].mxu1 }
 0x619   :  { %6453 = vpow2.f32 %v5815_v32  ;;  %v5818_v11 = vmul.f32 -1.442695, %v8026_v26  ;;  %v5819_v51 = vmul.f32 -1.442695, %v8029_v19  ;;  %v8042_v52 = vadd.f32 %v1623_v46, %v7899_v2 }
 0x61a   :  { %6455 = vpow2.f32 %v5817_v4  ;;  %v5821_v55 = vmul.f32 -1.442695, %v8034_v43  ;;  %v5820_v60 = vmul.f32 -1.442695, %v8037_v31 }
 0x61b   :  { %6457 = vpow2.f32 %v5816_v44  ;;  %v5822_v5 = vmul.f32 -1.442695, %v8042_v52 }
 0x61c   :  { %6459 = vpow2.f32 %v5818_v11  ;;  %v1574_v42 = vpop.f32.mrb[44].mxu0 }
 0x61d   :  { %6461 = vpow2.f32 %v5819_v51  ;;  %v8048_v0 = vadd.f32 %v1574_v42, %v7905_v14  ;;  %v1627_v61 = vpop.f32.mrb[44].mxu1  ;;  %v1576_v10 = vpop.f32.mrb[45].mxu0 }
 0x61e   :  { %6463 = vpow2.f32 %v5821_v55  ;;  %v8051_v2 = vadd.f32 %v1627_v61, %v7905_v14  ;;  %v8054_v28 = vadd.f32 %v1576_v10, %v7905_v14  ;;  %v1629_v24 = vpop.f32.mrb[45].mxu1  ;;  %v1578_v13 = vpop.f32.mrb[46].mxu0 }
 0x61f   :  { %6465 = vpow2.f32 %v5820_v60  ;;  %v5823_v3 = vmul.f32 -1.442695, %v8048_v0  ;;  %v8058_v1 = vadd.f32 %v1578_v13, %v7903_v12  ;;  %v1631_v38 = vpop.f32.mrb[46].mxu1  ;;  %v1580_v29 = vpop.f32.mrb[47].mxu0 }
 0x620   :  { %6467 = vpow2.f32 %v5822_v5  ;;  %v5825_v18 = vmul.f32 -1.442695, %v8051_v2  ;;  %v5824_v32 = vmul.f32 -1.442695, %v8054_v28  ;;  %v1633_v58 = vpop.f32.mrb[47].mxu1  ;;  %v8064_v5 = vadd.f32 %v1629_v24, %v7905_v14 }
 0x621   :  { %6469 = vpow2.f32 %v5823_v3  ;;  %v5827_v40 = vmul.f32 -1.442695, %v8058_v1  ;;  %v8068_v14 = vadd.f32 %v1631_v38, %v7903_v12 }
 0x622   :  { %6471 = vpow2.f32 %v5825_v18 }
 0x623   :  { %v6454_v4 = vpop.eup %6453  ;;  %6473 = vpow2.f32 %v5824_v32 }
 0x624   :  { %v6456_v44 = vpop.eup %6455  ;;  %v1684_v46 = vadd.f32 1.0, %v6454_v4  ;;  %6475 = vpow2.f32 %v5827_v40  ;;  %v5826_v40 = vmul.f32 -1.442695, %v8064_v5 }
 0x625   :  { %v6458_v11 = vpop.eup %6457  ;;  %v1686_v51 = vadd.f32 1.0, %v6456_v44 }
 0x626   :  { %v6460_v55 = vpop.eup %6459  ;;  %6477 = vrcp.f32 %v1684_v46  ;;  %v1685_v60 = vadd.f32 1.0, %v6458_v11  ;;  %v8071_v11 = vadd.f32 %v1580_v29, %v7903_v12 }
 0x627   :  { %v6462_v42 = vpop.eup %6461  ;;  %6479 = vrcp.f32 %v1686_v51  ;;  %v1687_v61 = vadd.f32 1.0, %v6460_v55  ;;  %v8074_v55 = vadd.f32 %v1633_v58, %v7903_v12 }
 0x628   :  { %v6464_v10 = vpop.eup %6463  ;;  %6481 = vrcp.f32 %v1685_v60  ;;  %v1688_v13 = vadd.f32 1.0, %v6462_v42  ;;  %v5828_v38 = vmul.f32 -1.442695, %v8071_v11 }
 0x629   :  { %v6466_v3 = vpop.eup %6465  ;;  %6483 = vrcp.f32 %v1687_v61  ;;  %v1690_v18 = vadd.f32 1.0, %v6464_v10  ;;  %v5829_v61 = vmul.f32 -1.442695, %v8068_v14 }
 0x62a   :  { %v6468_v4 = vpop.eup %6467  ;;  %6485 = vrcp.f32 %v1688_v13  ;;  %v1689_v32 = vadd.f32 1.0, %v6466_v3 }
 0x62b   :  { %v6470_v44 = vpop.eup %6469  ;;  %6487 = vrcp.f32 %v1690_v18  ;;  %v1691_v46 = vadd.f32 1.0, %v6468_v4  ;;  %v5830_v18 = vmul.f32 -1.442695, %v8074_v55 }
 0x62c   :  { %6489 = vrcp.f32 %v1689_v32  ;;  %v1692_v24 = vadd.f32 1.0, %v6470_v44  ;;  %v6472_v51 = vpop.eup %6471 }
 0x62d   :  { %6491 = vrcp.f32 %v1691_v46  ;;  %v6474_v60 = vpop.eup %6473 }
 0x62e   :  { %6493 = vpow2.f32 %v5826_v40  ;;  %v6476_v42 = vpop.eup %6475 }
 0x62f   :  { %6495 = vrcp.f32 %v1692_v24  ;;  %v1696_v13 = vadd.f32 1.0, %v6476_v42 }
 0x630   :  { %v6478_v10 = vpop.eup %6477 }
 0x631   :  { %v6480_v3 = vpop.eup %6479  ;;  %6497 = vrcp.f32 %v1696_v13  ;;  %v1732_v58 = vmul.f32 %v6478_v10, %v8016_v47  ;;  %v1694_v10 = vadd.f32 1.0, %v6472_v51 }
 0x632   :  { %v6482_v29 = vpop.eup %6481  ;;  %6499 = vpow2.f32 %v5829_v61  ;;  %v1734_v46 = vmul.f32 %v6480_v3, %v8019_v15 }
 0x633   :  { %v6484_v4 = vpop.eup %6483  ;;  %6501 = vpow2.f32 %v5828_v38  ;;  %v1733_v50 = vmul.f32 %v6482_v29, %v8022_v34 }
 0x634   :  { %v6486_v32 = vpop.eup %6485  ;;  %6503 = vpow2.f32 %v5830_v18  ;;  %v1735_v38 = vmul.f32 %v6484_v4, %v8026_v26 }
 0x635   :  { %v6488_v12 = vpop.eup %6487  ;;  %v1736_v40 = vmul.f32 %v6486_v32, %v8029_v19  ;;  %v1693_v32 = vadd.f32 1.0, %v6474_v60  ;;  %6505 = vrcp.f32 %v1694_v10 }
 0x636   :  { %v6490_v44 = vpop.eup %6489  ;;  %v1738_v24 = vmul.f32 %v6488_v12, %v8034_v43 }
 0x637   :  { %v6492_v42 = vpop.eup %6491  ;;  %v1756_v39 = vpack.c.bf16 %v1736_v40, %v1732_v58  ;;  %v1737_v13 = vmul.f32 %v6490_v44, %v8037_v31  ;;  %6507 = vrcp.f32 %v1693_v32 }
 0x638   :  { %v6494_v61 = vpop.eup %6493  ;;  %v1758_v16 = vpack.c.bf16 %v1738_v24, %v1734_v46  ;;  %v1739_v47 = vmul.f32 %v6492_v42, %v8042_v52 }
 0x639   :  { %v1757_v19 = vpack.c.bf16 %v1737_v13, %v1733_v50  ;;  %v6496_v18 = vpop.eup %6495  ;;  %v1695_v15 = vadd.f32 1.0, %v6494_v61 }
 0x63a   :  { %v1759_v23 = vpack.c.bf16 %v1739_v47, %v1735_v38  ;;  %v1740_v3 = vmul.f32 %v6496_v18, %v8048_v0  ;;  %v6169_v38 = vld [vmem:[%s9462_s1 + $0x10] sm:$0xff]  }
 0x63b   :  { %1800 = vmatprep.subr.bf16.mxu0 %v1757_v19  ;;  %v6498_v43 = vpop.eup %6497  ;;  %6509 = vrcp.f32 %v1695_v15 }
 0x63c   :  { %1853 = vmatprep.subr.bf16.mxu1 %v1759_v23  ;;  %1801 = vmatpush1.bf16.msra.mxu0 %v1756_v39  ;;  %v6500_v34 = vpop.eup %6499  ;;  %v1744_v31 = vmul.f32 %v6498_v43, %v8058_v1 }
 0x63d   :  { %1854 = vmatpush1.bf16.msra.mxu1 %v1758_v16  ;;  %v6502_v26 = vpop.eup %6501  ;;  %v1698_v52 = vadd.f32 1.0, %v6500_v34 }
 0x63e   :  { %v6504_v51 = vpop.eup %6503  ;;  %v1760_v50 = vpack.c.bf16 %v1744_v31, %v1740_v3  ;;  %v1697_v60 = vadd.f32 1.0, %v6502_v26 }
 0x63f   :  { %6511 = vrcp.f32 %v1698_v52  ;;  %v1699_v29 = vadd.f32 1.0, %v6504_v51  ;;  %v6506_v23 = vpop.eup %6505 }
 0x640   :  { %6513 = vrcp.f32 %v1697_v60  ;;  %v1742_v58 = vmul.f32 %v6506_v23, %v8051_v2  ;;  %v9531_v2 = vmov 0  }
 0x641   :  { %6515 = vrcp.f32 %v1699_v29  ;;  %v6508_v39 = vpop.eup %6507 }
 0x642   :  { %v1741_v40 = vmul.f32 %v6508_v39, %v8054_v28  ;;  %v6170_v28 = vld [vmem:[%s9462_s1 + $0x18] sm:$0xff]  }
 0x645   :  { %v6510_v4 = vpop.eup %6509 }
 0x646   :  { %v1743_v46 = vmul.f32 %v6510_v4, %v8064_v5 }
 0x649   :  { %v6512_v12 = vpop.eup %6511 }
 0x64a   :  { %v6514_v0 = vpop.eup %6513  ;;  %v1746_v16 = vmul.f32 %v6512_v12, %v8068_v14 }
 0x64b   :  { %v6516_v1 = vpop.eup %6515  ;;  %v1745_v44 = vmul.f32 %v6514_v0, %v8071_v11 }
 0x64c   :  { %v1762_v24 = vpack.c.bf16 %v1746_v16, %v1742_v58  ;;  %v1747_v42 = vmul.f32 %v6516_v1, %v8074_v55 }
 0x64d   :  { %v1761_v13 = vpack.c.bf16 %v1745_v44, %v1741_v40 }
 0x64e   :  { %v1763_v61 = vpack.c.bf16 %v1747_v42, %v1743_v46 }
 0x64f   :  { %1802 = vmatprep.subr.bf16.mxu0 %v1761_v13 }
 0x650   :  { %1855 = vmatprep.subr.bf16.mxu1 %v1763_v61  ;;  %1803 = vmatpush1.bf16.msra.mxu0 %v1760_v50 }
 0x651   :  { %1856 = vmatpush1.bf16.msra.mxu1 %v1762_v24 }
 0x653   :  { %5833 = vmatmul.mubr.msk.bf16.vlgmr.msra.gmra.mrb[48].mxu0 %vm110_vm0, %v6169_v38 }
 0x654   :  { %5835 = vmatmul.mubr.msk.bf16.vlgmr.msra.gmra.mrb[48].mxu1 %vm110_vm0, %v6169_v38  ;;  %1842 = vmatprep.mubr.bf16.mxu0 %v9531_v2 }
 0x655   :  { %1895 = vmatprep.mubr.bf16.mxu1 %v9531_v2 }
 0x65b   :  { %5834 = vmatmul.mubr.msk.bf16.gmra.mrb[52].mxu0 %vm110_vm0, %v6170_v28 }
 0x65c   :  { %5836 = vmatmul.mubr.msk.bf16.gmra.mrb[52].mxu1 %vm110_vm0, %v6170_v28  ;;  %2080 = vmatprep.mubr.bf16.mxu0 %v9531_v2 }
 0x65d   :  { %2123 = vmatprep.mubr.bf16.mxu1 %v9531_v2 }
 0x726   :  { %v1834_v5 = vpop.f32.mrb[48].mxu0 }
 0x727   :  { %v8110_v14 = vadd.f32 %v1834_v5, %v7909_v17  ;;  %v1887_v11 = vpop.f32.mrb[48].mxu1  ;;  %v1836_v55 = vpop.f32.mrb[49].mxu0 }
 0x728   :  { %v8113_v47 = vadd.f32 %v1887_v11, %v7909_v17  ;;  %v8116_v10 = vadd.f32 %v1836_v55, %v7909_v17  ;;  %v1889_v19 = vpop.f32.mrb[49].mxu1  ;;  %v1838_v18 = vpop.f32.mrb[50].mxu0 }
 0x729   :  { %v5837_v32 = vmul.f32 -1.442695, %v8110_v14  ;;  %v8120_v15 = vadd.f32 %v1889_v19, %v7909_v17  ;;  %v8123_v43 = vadd.f32 %v1838_v18, %v7907_v62  ;;  %v1891_v34 = vpop.f32.mrb[50].mxu1  ;;  %v1840_v3 = vpop.f32.mrb[51].mxu0 }
 0x72a   :  { %v5839_v31 = vmul.f32 -1.442695, %v8113_v47  ;;  %v5838_v26 = vmul.f32 -1.442695, %v8116_v10  ;;  %v8128_v52 = vadd.f32 %v1891_v34, %v7907_v62  ;;  %v8131_v51 = vadd.f32 %v1840_v3, %v7907_v62  ;;  %v1893_v50 = vpop.f32.mrb[51].mxu1 }
 0x72b   :  { %6517 = vpow2.f32 %v5837_v32  ;;  %v5840_v17 = vmul.f32 -1.442695, %v8120_v15  ;;  %v5841_v60 = vmul.f32 -1.442695, %v8123_v43  ;;  %v8136_v29 = vadd.f32 %v1893_v50, %v7907_v62 }
 0x72c   :  { %6519 = vpow2.f32 %v5839_v31  ;;  %v5843_v23 = vmul.f32 -1.442695, %v8128_v52  ;;  %v5842_v39 = vmul.f32 -1.442695, %v8131_v51 }
 0x72d   :  { %6521 = vpow2.f32 %v5838_v26  ;;  %v5844_v4 = vmul.f32 -1.442695, %v8136_v29 }
 0x72e   :  { %6523 = vpow2.f32 %v5840_v17  ;;  %v1844_v12 = vpop.f32.mrb[52].mxu0 }
 0x72f   :  { %6525 = vpow2.f32 %v5841_v60  ;;  %v8142_v0 = vadd.f32 %v1844_v12, %v7913_v54  ;;  %v1897_v58 = vpop.f32.mrb[52].mxu1  ;;  %v1846_v16 = vpop.f32.mrb[53].mxu0 }
 0x730   :  { %6527 = vpow2.f32 %v5843_v23  ;;  %v8145_v62 = vadd.f32 %v1897_v58, %v7913_v54  ;;  %v8148_v1 = vadd.f32 %v1846_v16, %v7913_v54  ;;  %v1899_v40 = vpop.f32.mrb[53].mxu1  ;;  %v1848_v44 = vpop.f32.mrb[54].mxu0 }
 0x731   :  { %6529 = vpow2.f32 %v5842_v39  ;;  %v5845_v46 = vmul.f32 -1.442695, %v8142_v0  ;;  %v8152_v24 = vadd.f32 %v1848_v44, %v7911_v56  ;;  %v1901_v42 = vpop.f32.mrb[54].mxu1  ;;  %v1850_v13 = vpop.f32.mrb[55].mxu0  ;;  %v8158_v31 = vadd.f32 %v1899_v40, %v7913_v54 }
 0x732   :  { %6531 = vpow2.f32 %v5844_v4  ;;  %v5847_v61 = vmul.f32 -1.442695, %v8145_v62  ;;  %v5846_v38 = vmul.f32 -1.442695, %v8148_v1  ;;  %v1903_v28 = vpop.f32.mrb[55].mxu1  ;;  %v8162_v54 = vadd.f32 %v1901_v42, %v7911_v56 }
 0x733   :  { %6533 = vpow2.f32 %v5845_v46  ;;  %v5849_v5 = vmul.f32 -1.442695, %v8152_v24  ;;  %v5848_v58 = vmul.f32 -1.442695, %v8158_v31  ;;  %v8165_v46 = vadd.f32 %v1850_v13, %v7911_v56 }
 0x734   :  { %6535 = vpow2.f32 %v5847_v61 }
 0x735   :  { %v6518_v11 = vpop.eup %6517  ;;  %6537 = vpow2.f32 %v5846_v38  ;;  %v8168_v38 = vadd.f32 %v1903_v28, %v7911_v56  ;;  %v5850_v42 = vmul.f32 -1.442695, %v8165_v46 }
 0x736   :  { %v6520_v55 = vpop.eup %6519  ;;  %v1954_v19 = vadd.f32 1.0, %v6518_v11  ;;  %6539 = vpow2.f32 %v5849_v5 }
 0x737   :  { %v6522_v18 = vpop.eup %6521  ;;  %v1956_v32 = vadd.f32 1.0, %v6520_v55  ;;  %v5851_v55 = vmul.f32 -1.442695, %v8162_v54 }
 0x738   :  { %v6524_v34 = vpop.eup %6523  ;;  %6541 = vrcp.f32 %v1954_v19  ;;  %v1955_v3 = vadd.f32 1.0, %v6522_v18 }
 0x739   :  { %v6526_v26 = vpop.eup %6525  ;;  %6543 = vrcp.f32 %v1956_v32  ;;  %v1957_v50 = vadd.f32 1.0, %v6524_v34  ;;  %v5852_v34 = vmul.f32 -1.442695, %v8168_v38 }
 0x73a   :  { %v6528_v17 = vpop.eup %6527  ;;  %6545 = vrcp.f32 %v1955_v3  ;;  %v1958_v60 = vadd.f32 1.0, %v6526_v26 }
 0x73b   :  { %v6530_v23 = vpop.eup %6529  ;;  %6547 = vrcp.f32 %v1957_v50  ;;  %v1960_v39 = vadd.f32 1.0, %v6528_v17 }
 0x73c   :  { %v6532_v4 = vpop.eup %6531  ;;  %6549 = vrcp.f32 %v1958_v60  ;;  %v1959_v12 = vadd.f32 1.0, %v6530_v23 }
 0x73d   :  { %v6534_v16 = vpop.eup %6533  ;;  %6551 = vrcp.f32 %v1960_v39  ;;  %v1961_v44 = vadd.f32 1.0, %v6532_v4 }
 0x73e   :  { %6553 = vrcp.f32 %v1959_v12  ;;  %v1962_v40 = vadd.f32 1.0, %v6534_v16  ;;  %v6536_v61 = vpop.eup %6535 }
 0x73f   :  { %6555 = vrcp.f32 %v1961_v44  ;;  %v6538_v5 = vpop.eup %6537 }
 0x740   :  { %6557 = vpow2.f32 %v5848_v58  ;;  %v6540_v11 = vpop.eup %6539 }
 0x741   :  { %6559 = vrcp.f32 %v1962_v40  ;;  %v1966_v18 = vadd.f32 1.0, %v6540_v11  ;;  %v1964_v11 = vadd.f32 1.0, %v6536_v61 }
 0x742   :  { %v6542_v19 = vpop.eup %6541 }
 0x743   :  { %v6544_v32 = vpop.eup %6543  ;;  %6561 = vrcp.f32 %v1966_v18  ;;  %v2002_v28 = vmul.f32 %v6542_v19, %v8110_v14  ;;  %v1963_v19 = vadd.f32 1.0, %v6538_v5 }
 0x744   :  { %v6546_v13 = vpop.eup %6545  ;;  %6563 = vpow2.f32 %v5851_v55  ;;  %v2004_v60 = vmul.f32 %v6544_v32, %v8113_v47 }
 0x745   :  { %v6548_v3 = vpop.eup %6547  ;;  %6565 = vpow2.f32 %v5850_v42  ;;  %v2003_v4 = vmul.f32 %v6546_v13, %v8116_v10 }
 0x746   :  { %v6550_v26 = vpop.eup %6549  ;;  %6567 = vpow2.f32 %v5852_v34  ;;  %v2005_v44 = vmul.f32 %v6548_v3, %v8120_v15 }
 0x747   :  { %v6552_v56 = vpop.eup %6551  ;;  %v2006_v50 = vmul.f32 %v6550_v26, %v8123_v43  ;;  %6569 = vrcp.f32 %v1964_v11 }
 0x748   :  { %v6554_v17 = vpop.eup %6553  ;;  %v2008_v23 = vmul.f32 %v6552_v56, %v8128_v52  ;;  %6571 = vrcp.f32 %v1963_v19  ;;  %v1443_v19 = vunpack.c.h.bf16 %v7849_v7 }
 0x749   :  { %v6556_v39 = vpop.eup %6555  ;;  %v2022_v12 = vpack.c.bf16 %v2006_v50, %v2002_v28  ;;  %v2007_v58 = vmul.f32 %v6554_v17, %v8131_v51 }
 0x74a   :  { %v6558_v16 = vpop.eup %6557  ;;  %v2024_v40 = vpack.c.bf16 %v2008_v23, %v2004_v60  ;;  %v2009_v14 = vmul.f32 %v6556_v39, %v8136_v29 }
 0x74b   :  { %v2023_v43 = vpack.c.bf16 %v2007_v58, %v2003_v4  ;;  %v6560_v55 = vpop.eup %6559  ;;  %v1965_v47 = vadd.f32 1.0, %v6558_v16  ;;  %v6171_v16 = vld [vmem:[%s9462_s1 + $0x20] sm:$0xff]  }
 0x74c   :  { %v2025_v18 = vpack.c.bf16 %v2009_v14, %v2005_v44  ;;  %v2010_v42 = vmul.f32 %v6560_v55, %v8142_v0  ;;  %v1441_v44 = vunpack.c.h.bf16 %v7838_v8  ;;  %v1444_v55 = vunpack.c.l.bf16 %v7862_v27 }
 0x74d   :  { %2048 = vmatprep.subr.bf16.mxu0 %v2023_v43  ;;  %v6562_v52 = vpop.eup %6561  ;;  %6573 = vrcp.f32 %v1965_v47 }
 0x74e   :  { %2091 = vmatprep.subr.bf16.mxu1 %v2025_v18  ;;  %2049 = vmatpush1.bf16.msra.mxu0 %v2022_v12  ;;  %v6564_v10 = vpop.eup %6563  ;;  %v2014_v51 = vmul.f32 %v6562_v52, %v8152_v24  ;;  %v1445_v18 = vunpack.c.h.bf16 %v7862_v27  ;;  %v2147_v27 = vunpack.c.h.bf16 %v7854_v20 }
 0x74f   :  { %2092 = vmatpush1.bf16.msra.mxu1 %v2024_v40  ;;  %v6566_v15 = vpop.eup %6565  ;;  %v1968_v29 = vadd.f32 1.0, %v6564_v10  ;;  %v1442_v40 = vunpack.c.l.bf16 %v7849_v7 }
 0x750   :  { %v6568_v61 = vpop.eup %6567  ;;  %v2026_v32 = vpack.c.bf16 %v2014_v51, %v2010_v42  ;;  %v1967_v5 = vadd.f32 1.0, %v6566_v15  ;;  %v2145_v42 = vunpack.c.h.bf16 %v7833_v53 }
 0x751   :  { %6575 = vrcp.f32 %v1968_v29  ;;  %v1969_v34 = vadd.f32 1.0, %v6568_v61  ;;  %v6570_v13 = vpop.eup %6569 }
 0x752   :  { %6577 = vrcp.f32 %v1967_v5  ;;  %v6572_v3 = vpop.eup %6571  ;;  %v2012_v28 = vmul.f32 %v6570_v13, %v8145_v62  ;;  %v1438_v62 = vunpack.c.l.bf16 %v7826_v48 }
 0x753   :  { %6579 = vrcp.f32 %v1969_v34  ;;  %v2011_v17 = vmul.f32 %v6572_v3, %v8148_v1  ;;  %v2142_v1 = vunpack.c.l.bf16 %v7821_v30 }
 0x757   :  { %v6574_v26 = vpop.eup %6573 }
 0x758   :  { %v2013_v23 = vmul.f32 %v6574_v26, %v8158_v31  ;;  %v1440_v31 = vunpack.c.l.bf16 %v7838_v8  ;;  %v2143_v8 = vunpack.c.h.bf16 %v7821_v30  ;;  %v2146_v26 = vunpack.c.l.bf16 %v7854_v20 }
 0x75b   :  { %v6576_v56 = vpop.eup %6575 }
 0x75c   :  { %v6578_v0 = vpop.eup %6577  ;;  %v2016_v24 = vmul.f32 %v6576_v56, %v8162_v54 }
 0x75d   :  { %v6580_v50 = vpop.eup %6579  ;;  %v2015_v60 = vmul.f32 %v6578_v0, %v8165_v46  ;;  %v2144_v46 = vunpack.c.l.bf16 %v7833_v53 }
 0x75e   :  { %v2028_v39 = vpack.c.bf16 %v2016_v24, %v2012_v28  ;;  %v2017_v4 = vmul.f32 %v6580_v50, %v8168_v38  ;;  %v1439_v38 = vunpack.c.h.bf16 %v7826_v48 }
 0x75f   :  { %v2027_v12 = vpack.c.bf16 %v2015_v60, %v2011_v17 }
 0x760   :  { %v2029_v58 = vpack.c.bf16 %v2017_v4, %v2013_v23 }
 0x761   :  { %2050 = vmatprep.subr.bf16.mxu0 %v2027_v12 }
 0x762   :  { %2093 = vmatprep.subr.bf16.mxu1 %v2029_v58  ;;  %2051 = vmatpush1.bf16.msra.mxu0 %v2026_v32  ;;  %v6172_v58 = vld [vmem:[%s9462_s1 + $0x28] sm:$0xff]  }
 0x763   :  { %2094 = vmatpush1.bf16.msra.mxu1 %v2028_v39 }
 0x765   :  { %5854 = vmatmul.mubr.msk.bf16.vlgmr.msra.gmra.mrb[56].mxu0 %vm110_vm0, %v6171_v16 }
 0x766   :  { %5855 = vmatmul.mubr.msk.bf16.vlgmr.msra.gmra.mrb[56].mxu1 %vm110_vm0, %v6171_v16  ;;  %2234 = vmatprep.mubr.bf16.mxu0 %v9531_v2 }
 0x767   :  { %2287 = vmatprep.mubr.bf16.mxu1 %v9531_v2 }
 0x838   :  { %v2082_v54 = vpop.f32.mrb[56].mxu0 }
 0x839   :  { %v2083_v14 = vadd.f32 %v2082_v54, %v7917_v21  ;;  %v2125_v11 = vpop.f32.mrb[56].mxu1  ;;  %v2084_v43 = vpop.f32.mrb[57].mxu0 }
 0x83a   :  { %v2126_v47 = vadd.f32 %v2125_v11, %v7917_v21  ;;  %v2085_v52 = vadd.f32 %v2084_v43, %v7917_v21  ;;  %v2127_v10 = vpop.f32.mrb[57].mxu1  ;;  %v2086_v48 = vpop.f32.mrb[58].mxu0 }
 0x83b   :  { %v8211_v51 = vadd.f32 %v2083_v14, %v1438_v62  ;;  %v2128_v15 = vadd.f32 %v2127_v10, %v7917_v21  ;;  %v2087_v29 = vadd.f32 %v2086_v48, %v7915_v45  ;;  %v2129_v61 = vpop.f32.mrb[58].mxu1  ;;  %v2088_v7 = vpop.f32.mrb[59].mxu0  ;;  %v2149_v21 = vunpack.c.h.bf16 %v7867_v36 }
 0x83c   :  { %v8216_v32 = vadd.f32 %v2126_v47, %v1440_v31  ;;  %v8218_v5 = vadd.f32 %v2085_v52, %v1439_v38  ;;  %v2130_v34 = vadd.f32 %v2129_v61, %v7915_v45  ;;  %v2089_v30 = vadd.f32 %v2088_v7, %v7915_v45  ;;  %v2131_v13 = vpop.f32.mrb[59].mxu1 }
 0x83d   :  { %v8222_v53 = vadd.f32 %v2128_v15, %v1441_v44  ;;  %v2132_v3 = vadd.f32 %v2131_v13, %v7915_v45  ;;  %v2150_v28 = vpack.c.bf16 %v8211_v51, %v2142_v1  ;;  %v8231_v24 = vadd.f32 %v2087_v29, %v1442_v40 }
 0x83e   :  { %v8227_v56 = vadd.f32 %v2089_v30, %v1443_v19  ;;  %v2151_v0 = vpack.c.bf16 %v8218_v5, %v2143_v8  ;;  %v2152_v60 = vpack.c.bf16 %v8216_v32, %v2144_v46  ;;  %v8237_v23 = vadd.f32 %v2130_v34, %v1444_v55 }
 0x83f   :  { %v8233_v50 = vadd.f32 %v2132_v3, %v1445_v18  ;;  %v2153_v17 = vpack.c.bf16 %v8222_v53, %v2145_v42  ;;  %v2148_v45 = vunpack.c.l.bf16 %v7867_v36  ;;  %v2154_v4 = vpack.c.bf16 %v2146_v26, %v8231_v24  ;;  %v6173_v36 = vld [vmem:[%s9462_s1 + $0x30] sm:$0xff]  }
 0x840   :  { %2202 = vmatprep.subr.bf16.mxu0 %v2151_v0  ;;  %v2155_v20 = vpack.c.bf16 %v2147_v27, %v8227_v56 }
 0x841   :  { %2255 = vmatprep.subr.bf16.mxu1 %v2153_v17  ;;  %2203 = vmatpush1.bf16.msra.mxu0 %v2150_v28  ;;  %v2157_v39 = vpack.c.bf16 %v2149_v21, %v8233_v50  ;;  %v2156_v12 = vpack.c.bf16 %v2148_v45, %v8237_v23 }
 0x842   :  { %2256 = vmatpush1.bf16.msra.mxu1 %v2152_v60  ;;  %2204 = vmatprep.subr.bf16.mxu0 %v2155_v20 }
 0x843   :  { %2257 = vmatprep.subr.bf16.mxu1 %v2157_v39 }
 0x845   :  { %2205 = vmatpush1.bf16.msra.mxu0 %v2154_v4 }
 0x846   :  { %2258 = vmatpush1.bf16.msra.mxu1 %v2156_v12 }
 0x848   :  { %5858 = vmatmul.mubr.msk.bf16.vlgmr.msra.gmra.mrb[60].mxu0 %vm110_vm0, %v6172_v58 }
 0x849   :  { %5860 = vmatmul.mubr.msk.bf16.vlgmr.msra.gmra.mrb[60].mxu1 %vm110_vm0, %v6172_v58  ;;  %2244 = vmatprep.mubr.bf16.mxu0 %v9531_v2 }
 0x84a   :  { %2297 = vmatprep.mubr.bf16.mxu1 %v9531_v2 }
 0x850   :  { %5859 = vmatmul.mubr.msk.bf16.gmra.mrb[64].mxu0 %vm110_vm0, %v6173_v36 }
 0x851   :  { %5861 = vmatmul.mubr.msk.bf16.gmra.mrb[64].mxu1 %vm110_vm0, %v6173_v36  ;;  %2504 = vmatprep.mubr.bf16.mxu0 %v9531_v2 }
 0x852   :  { %2557 = vmatprep.mubr.bf16.mxu1 %v9531_v2 }
 0x91b   :  { %v2236_v16 = vpop.f32.mrb[60].mxu0 }
 0x91c   :  { %v8259_v62 = vadd.f32 %v2236_v16, %v7921_v6  ;;  %v2289_v1 = vpop.f32.mrb[60].mxu1  ;;  %v2238_v31 = vpop.f32.mrb[61].mxu0 }
 0x91d   :  { %v8262_v54 = vadd.f32 %v2289_v1, %v7921_v6  ;;  %v8265_v46 = vadd.f32 %v2238_v31, %v7921_v6  ;;  %v2291_v38 = vpop.f32.mrb[61].mxu1  ;;  %v2240_v44 = vpop.f32.mrb[62].mxu0 }
 0x91e   :  { %v5862_v40 = vmul.f32 -1.442695, %v8259_v62  ;;  %v8269_v14 = vadd.f32 %v2291_v38, %v7921_v6  ;;  %v8272_v11 = vadd.f32 %v2240_v44, %v7919_v57  ;;  %v2293_v43 = vpop.f32.mrb[62].mxu1  ;;  %v2242_v55 = vpop.f32.mrb[63].mxu0 }
 0x91f   :  { %v5864_v19 = vmul.f32 -1.442695, %v8262_v54  ;;  %v5863_v18 = vmul.f32 -1.442695, %v8265_v46  ;;  %v8277_v47 = vadd.f32 %v2293_v43, %v7919_v57  ;;  %v8280_v52 = vadd.f32 %v2242_v55, %v7919_v57  ;;  %v2295_v10 = vpop.f32.mrb[63].mxu1 }
 0x920   :  { %6581 = vpow2.f32 %v5862_v40  ;;  %v5865_v6 = vmul.f32 -1.442695, %v8269_v14  ;;  %v5866_v48 = vmul.f32 -1.442695, %v8272_v11  ;;  %v8285_v8 = vadd.f32 %v2295_v10, %v7919_v57 }
 0x921   :  { %6583 = vpow2.f32 %v5864_v19  ;;  %v5868_v42 = vmul.f32 -1.442695, %v8277_v47  ;;  %v5867_v15 = vmul.f32 -1.442695, %v8280_v52 }
 0x922   :  { %6585 = vpow2.f32 %v5863_v18  ;;  %v5869_v29 = vmul.f32 -1.442695, %v8285_v8 }
 0x923   :  { %6587 = vpow2.f32 %v5865_v6  ;;  %v2246_v61 = vpop.f32.mrb[64].mxu0 }
 0x924   :  { %6589 = vpow2.f32 %v5866_v48  ;;  %v8291_v7 = vadd.f32 %v2246_v61, %v7925_v41  ;;  %v2299_v27 = vpop.f32.mrb[64].mxu1  ;;  %v2248_v34 = vpop.f32.mrb[65].mxu0 }
 0x925   :  { %6591 = vpow2.f32 %v5868_v42  ;;  %v8294_v57 = vadd.f32 %v2299_v27, %v7925_v41  ;;  %v8297_v30 = vadd.f32 %v2248_v34, %v7925_v41  ;;  %v2301_v13 = vpop.f32.mrb[65].mxu1  ;;  %v2250_v3 = vpop.f32.mrb[66].mxu0 }
 0x926   :  { %6593 = vpow2.f32 %v5867_v15  ;;  %v5870_v21 = vmul.f32 -1.442695, %v8291_v7  ;;  %v8301_v26 = vadd.f32 %v2250_v3, %v7923_v22  ;;  %v2303_v0 = vpop.f32.mrb[66].mxu1  ;;  %v2252_v28 = vpop.f32.mrb[67].mxu0  ;;  %v8307_v31 = vadd.f32 %v2301_v13, %v7925_v41 }
 0x927   :  { %6595 = vpow2.f32 %v5869_v29  ;;  %v5872_v17 = vmul.f32 -1.442695, %v8294_v57  ;;  %v5871_v60 = vmul.f32 -1.442695, %v8297_v30  ;;  %v2305_v45 = vpop.f32.mrb[67].mxu1  ;;  %v8311_v41 = vadd.f32 %v2303_v0, %v7923_v22 }
 0x928   :  { %6597 = vpow2.f32 %v5870_v21  ;;  %v5874_v20 = vmul.f32 -1.442695, %v8301_v26  ;;  %v5873_v6 = vmul.f32 -1.442695, %v8307_v31  ;;  %v8314_v29 = vadd.f32 %v2252_v28, %v7923_v22 }
 0x929   :  { %6599 = vpow2.f32 %v5872_v17  ;;  %v8317_v27 = vadd.f32 %v2305_v45, %v7923_v22  ;;  %v5876_v3 = vmul.f32 -1.442695, %v8311_v41 }
 0x92a   :  { %v6582_v39 = vpop.eup %6581  ;;  %6601 = vpow2.f32 %v5871_v60  ;;  %v5875_v0 = vmul.f32 -1.442695, %v8314_v29 }
 0x92b   :  { %v6584_v4 = vpop.eup %6583  ;;  %v2356_v12 = vadd.f32 1.0, %v6582_v39  ;;  %6603 = vpow2.f32 %v5874_v20  ;;  %v5877_v20 = vmul.f32 -1.442695, %v8317_v27 }
 0x92c   :  { %v6586_v58 = vpop.eup %6585  ;;  %v2358_v36 = vadd.f32 1.0, %v6584_v4 }
 0x92d   :  { %v6588_v16 = vpop.eup %6587  ;;  %6605 = vrcp.f32 %v2356_v12  ;;  %v2357_v1 = vadd.f32 1.0, %v6586_v58 }
 0x92e   :  { %v6590_v38 = vpop.eup %6589  ;;  %6607 = vrcp.f32 %v2358_v36  ;;  %v2359_v44 = vadd.f32 1.0, %v6588_v16 }
 0x92f   :  { %v6592_v40 = vpop.eup %6591  ;;  %6609 = vrcp.f32 %v2357_v1  ;;  %v2360_v43 = vadd.f32 1.0, %v6590_v38 }
 0x930   :  { %v6594_v55 = vpop.eup %6593  ;;  %6611 = vrcp.f32 %v2359_v44  ;;  %v2362_v19 = vadd.f32 1.0, %v6592_v40 }
 0x931   :  { %v6596_v18 = vpop.eup %6595  ;;  %6613 = vrcp.f32 %v2360_v43  ;;  %v2361_v10 = vadd.f32 1.0, %v6594_v55 }
 0x932   :  { %v6598_v48 = vpop.eup %6597  ;;  %6615 = vrcp.f32 %v2362_v19  ;;  %v2363_v42 = vadd.f32 1.0, %v6596_v18 }
 0x933   :  { %6617 = vrcp.f32 %v2361_v10  ;;  %v2364_v15 = vadd.f32 1.0, %v6598_v48  ;;  %v6600_v61 = vpop.eup %6599 }
 0x934   :  { %6619 = vrcp.f32 %v2363_v42  ;;  %v6602_v34 = vpop.eup %6601  ;;  %v2366_v18 = vadd.f32 1.0, %v6600_v61 }
 0x935   :  { %6621 = vpow2.f32 %v5873_v6  ;;  %v6604_v13 = vpop.eup %6603  ;;  %v2365_v6 = vadd.f32 1.0, %v6602_v34 }
 0x936   :  { %6623 = vrcp.f32 %v2364_v15  ;;  %v2368_v17 = vadd.f32 1.0, %v6604_v13 }
 0x937   :  { %v6606_v21 = vpop.eup %6605 }
 0x938   :  { %v6608_v60 = vpop.eup %6607  ;;  %6625 = vrcp.f32 %v2368_v17  ;;  %v2404_v45 = vmul.f32 %v6606_v21, %v8259_v62 }
 0x939   :  { %v6610_v28 = vpop.eup %6609  ;;  %6627 = vpow2.f32 %v5876_v3  ;;  %v2406_v36 = vmul.f32 %v6608_v60, %v8262_v54 }
 0x93a   :  { %v6612_v39 = vpop.eup %6611  ;;  %6629 = vpow2.f32 %v5875_v0  ;;  %v2405_v38 = vmul.f32 %v6610_v28, %v8265_v46 }
 0x93b   :  { %v6614_v4 = vpop.eup %6613  ;;  %6631 = vpow2.f32 %v5877_v20  ;;  %v2407_v55 = vmul.f32 %v6612_v39, %v8269_v14 }
 0x93c   :  { %v6616_v22 = vpop.eup %6615  ;;  %v2408_v12 = vmul.f32 %v6614_v4, %v8272_v11  ;;  %6633 = vrcp.f32 %v2366_v18 }
 0x93d   :  { %v6618_v58 = vpop.eup %6617  ;;  %v2410_v16 = vmul.f32 %v6616_v22, %v8277_v47  ;;  %6635 = vrcp.f32 %v2365_v6 }
 0x93e   :  { %v6620_v1 = vpop.eup %6619  ;;  %v2428_v44 = vpack.c.bf16 %v2408_v12, %v2404_v45  ;;  %v2409_v40 = vmul.f32 %v6618_v58, %v8280_v52 }
 0x93f   :  { %v6622_v43 = vpop.eup %6621  ;;  %v2430_v19 = vpack.c.bf16 %v2410_v16, %v2406_v36  ;;  %v2411_v62 = vmul.f32 %v6620_v1, %v8285_v8  ;;  %v6174_v36 = vld [vmem:[%s9462_s1 + $0x38] sm:$0xff]  }
 0x940   :  { %v2429_v11 = vpack.c.bf16 %v2409_v40, %v2405_v38  ;;  %v6624_v10 = vpop.eup %6623  ;;  %v2367_v54 = vadd.f32 1.0, %v6622_v43 }
 0x941   :  { %v2431_v48 = vpack.c.bf16 %v2411_v62, %v2407_v55  ;;  %v2412_v42 = vmul.f32 %v6624_v10, %v8291_v7 }
 0x942   :  { %2472 = vmatprep.subr.bf16.mxu0 %v2429_v11  ;;  %v6626_v47 = vpop.eup %6625  ;;  %6637 = vrcp.f32 %v2367_v54 }
 0x943   :  { %2525 = vmatprep.subr.bf16.mxu1 %v2431_v48  ;;  %2473 = vmatpush1.bf16.msra.mxu0 %v2428_v44  ;;  %v6628_v46 = vpop.eup %6627  ;;  %v2416_v52 = vmul.f32 %v6626_v47, %v8301_v26 }
 0x944   :  { %2526 = vmatpush1.bf16.msra.mxu1 %v2430_v19  ;;  %v6630_v14 = vpop.eup %6629  ;;  %v2370_v8 = vadd.f32 1.0, %v6628_v46 }
 0x945   :  { %v6632_v15 = vpop.eup %6631  ;;  %v2432_v61 = vpack.c.bf16 %v2416_v52, %v2412_v42  ;;  %v2369_v34 = vadd.f32 1.0, %v6630_v14 }
 0x946   :  { %6639 = vrcp.f32 %v2370_v8  ;;  %v2371_v13 = vadd.f32 1.0, %v6632_v15  ;;  %v6634_v3 = vpop.eup %6633 }
 0x947   :  { %6641 = vrcp.f32 %v2369_v34  ;;  %v6636_v21 = vpop.eup %6635  ;;  %v2414_v60 = vmul.f32 %v6634_v3, %v8294_v57  ;;  %v6175_v57 = vld [vmem:[%s9462_s1 + $0x40] sm:$0xff]  }
 0x948   :  { %6643 = vrcp.f32 %v2371_v13  ;;  %v2413_v28 = vmul.f32 %v6636_v21, %v8297_v30 }
 0x94c   :  { %v6638_v17 = vpop.eup %6637 }
 0x94d   :  { %v2415_v4 = vmul.f32 %v6638_v17, %v8307_v31 }
 0x950   :  { %v6640_v0 = vpop.eup %6639 }
 0x951   :  { %v6642_v7 = vpop.eup %6641  ;;  %v2418_v26 = vmul.f32 %v6640_v0, %v8311_v41 }
 0x952   :  { %v6644_v20 = vpop.eup %6643  ;;  %v2417_v39 = vmul.f32 %v6642_v7, %v8314_v29 }
 0x953   :  { %v2434_v22 = vpack.c.bf16 %v2418_v26, %v2414_v60  ;;  %v2419_v45 = vmul.f32 %v6644_v20, %v8317_v27 }
 0x954   :  { %v2433_v12 = vpack.c.bf16 %v2417_v39, %v2413_v28 }
 0x955   :  { %v2435_v58 = vpack.c.bf16 %v2419_v45, %v2415_v4 }
 0x956   :  { %2474 = vmatprep.subr.bf16.mxu0 %v2433_v12 }
 0x957   :  { %2527 = vmatprep.subr.bf16.mxu1 %v2435_v58  ;;  %2475 = vmatpush1.bf16.msra.mxu0 %v2432_v61 }
 0x958   :  { %2528 = vmatpush1.bf16.msra.mxu1 %v2434_v22 }
 0x95a   :  { %5880 = vmatmul.mubr.msk.bf16.vlgmr.msra.gmra.mrb[68].mxu0 %vm110_vm0, %v6174_v36 }
 0x95b   :  { %5882 = vmatmul.mubr.msk.bf16.vlgmr.msra.gmra.mrb[68].mxu1 %vm110_vm0, %v6174_v36  ;;  %2514 = vmatprep.mubr.bf16.mxu0 %v9531_v2 }
 0x95c   :  { %2567 = vmatprep.mubr.bf16.mxu1 %v9531_v2 }
 0x962   :  { %5881 = vmatmul.mubr.msk.bf16.gmra.mrb[72].mxu0 %vm110_vm0, %v6175_v57 }
 0x963   :  { %5883 = vmatmul.mubr.msk.bf16.gmra.mrb[72].mxu1 %vm110_vm0, %v6175_v57  ;;  %2752 = vmatprep.mubr.bf16.mxu0 %v9531_v2 }
 0x964   :  { %2795 = vmatprep.mubr.bf16.mxu1 %v9531_v2 }
 0xa2d   :  { %v2506_v30 = vpop.f32.mrb[68].mxu0 }
 0xa2e   :  { %v8353_v31 = vadd.f32 %v2506_v30, %v7929_v25  ;;  %v2559_v41 = vpop.f32.mrb[68].mxu1  ;;  %v2508_v29 = vpop.f32.mrb[69].mxu0 }
 0xa2f   :  { %v8356_v27 = vadd.f32 %v2559_v41, %v7929_v25  ;;  %v8359_v16 = vadd.f32 %v2508_v29, %v7929_v25  ;;  %v2561_v1 = vpop.f32.mrb[69].mxu1  ;;  %v2510_v38 = vpop.f32.mrb[70].mxu0 }
 0xa30   :  { %v5884_v44 = vmul.f32 -1.442695, %v8353_v31  ;;  %v8363_v40 = vadd.f32 %v2561_v1, %v7929_v25  ;;  %v8366_v43 = vadd.f32 %v2510_v38, %v7927_v33  ;;  %v2563_v55 = vpop.f32.mrb[70].mxu1  ;;  %v2512_v19 = vpop.f32.mrb[71].mxu0 }
 0xa31   :  { %v5886_v62 = vmul.f32 -1.442695, %v8356_v27  ;;  %v5885_v18 = vmul.f32 -1.442695, %v8359_v16  ;;  %v8371_v11 = vadd.f32 %v2563_v55, %v7927_v33  ;;  %v8374_v10 = vadd.f32 %v2512_v19, %v7927_v33  ;;  %v2565_v6 = vpop.f32.mrb[71].mxu1 }
 0xa32   :  { %6645 = vpow2.f32 %v5884_v44  ;;  %v5887_v25 = vmul.f32 -1.442695, %v8363_v40  ;;  %v5888_v48 = vmul.f32 -1.442695, %v8366_v43  ;;  %v8379_v54 = vadd.f32 %v2565_v6, %v7927_v33 }
 0xa33   :  { %6647 = vpow2.f32 %v5886_v62  ;;  %v5890_v47 = vmul.f32 -1.442695, %v8371_v11  ;;  %v5889_v46 = vmul.f32 -1.442695, %v8374_v10 }
 0xa34   :  { %6649 = vpow2.f32 %v5885_v18  ;;  %v5891_v42 = vmul.f32 -1.442695, %v8379_v54 }
 0xa35   :  { %6651 = vpow2.f32 %v5887_v25  ;;  %v2516_v52 = vpop.f32.mrb[72].mxu0 }
 0xa36   :  { %6653 = vpow2.f32 %v5888_v48  ;;  %v8385_v14 = vadd.f32 %v2516_v52, %v7933_v63  ;;  %v2569_v8 = vpop.f32.mrb[72].mxu1  ;;  %v2518_v15 = vpop.f32.mrb[73].mxu0 }
 0xa37   :  { %6655 = vpow2.f32 %v5890_v47  ;;  %v8388_v33 = vadd.f32 %v2569_v8, %v7933_v63  ;;  %v8391_v61 = vadd.f32 %v2518_v15, %v7933_v63  ;;  %v2571_v34 = vpop.f32.mrb[73].mxu1  ;;  %v2520_v13 = vpop.f32.mrb[74].mxu0 }
 0xa38   :  { %6657 = vpow2.f32 %v5889_v46  ;;  %v5892_v3 = vmul.f32 -1.442695, %v8385_v14  ;;  %v8395_v21 = vadd.f32 %v2520_v13, %v7931_v35  ;;  %v2573_v17 = vpop.f32.mrb[74].mxu1  ;;  %v2522_v0 = vpop.f32.mrb[75].mxu0  ;;  %v8401_v36 = vadd.f32 %v2571_v34, %v7933_v63 }
 0xa39   :  { %6659 = vpow2.f32 %v5891_v42  ;;  %v5894_v7 = vmul.f32 -1.442695, %v8388_v33  ;;  %v5893_v60 = vmul.f32 -1.442695, %v8391_v61  ;;  %v2575_v26 = vpop.f32.mrb[75].mxu1  ;;  %v8405_v63 = vadd.f32 %v2573_v17, %v7931_v35 }
 0xa3a   :  { %6661 = vpow2.f32 %v5892_v3  ;;  %v5896_v20 = vmul.f32 -1.442695, %v8395_v21  ;;  %v5895_v19 = vmul.f32 -1.442695, %v8401_v36  ;;  %v8408_v25 = vadd.f32 %v2522_v0, %v7931_v35 }
 0xa3b   :  { %6663 = vpow2.f32 %v5894_v7  ;;  %v8411_v47 = vadd.f32 %v2575_v26, %v7931_v35  ;;  %v5898_v52 = vmul.f32 -1.442695, %v8405_v63 }
 0xa3c   :  { %v6646_v28 = vpop.eup %6645  ;;  %6665 = vpow2.f32 %v5893_v60  ;;  %v5897_v34 = vmul.f32 -1.442695, %v8408_v25 }
 0xa3d   :  { %v6648_v39 = vpop.eup %6647  ;;  %v2626_v4 = vadd.f32 1.0, %v6646_v28  ;;  %6667 = vpow2.f32 %v5896_v20  ;;  %v5899_v3 = vmul.f32 -1.442695, %v8411_v47 }
 0xa3e   :  { %v6650_v22 = vpop.eup %6649  ;;  %v2628_v45 = vadd.f32 1.0, %v6648_v39 }
 0xa3f   :  { %v6652_v12 = vpop.eup %6651  ;;  %6669 = vrcp.f32 %v2626_v4  ;;  %v2627_v58 = vadd.f32 1.0, %v6650_v22 }
 0xa40   :  { %v6654_v57 = vpop.eup %6653  ;;  %6671 = vrcp.f32 %v2628_v45  ;;  %v2629_v30 = vadd.f32 1.0, %v6652_v12 }
 0xa41   :  { %v6656_v41 = vpop.eup %6655  ;;  %6673 = vrcp.f32 %v2627_v58  ;;  %v2630_v29 = vadd.f32 1.0, %v6654_v57 }
 0xa42   :  { %v6658_v1 = vpop.eup %6657  ;;  %6675 = vrcp.f32 %v2629_v30  ;;  %v2632_v38 = vadd.f32 1.0, %v6656_v41 }
 0xa43   :  { %v6660_v44 = vpop.eup %6659  ;;  %6677 = vrcp.f32 %v2630_v29  ;;  %v2631_v55 = vadd.f32 1.0, %v6658_v1 }
 0xa44   :  { %v6662_v62 = vpop.eup %6661  ;;  %6679 = vrcp.f32 %v2632_v38  ;;  %v2633_v18 = vadd.f32 1.0, %v6660_v44 }
 0xa45   :  { %6681 = vrcp.f32 %v2631_v55  ;;  %v2634_v6 = vadd.f32 1.0, %v6662_v62  ;;  %v6664_v48 = vpop.eup %6663 }
 0xa46   :  { %6683 = vrcp.f32 %v2633_v18  ;;  %v6666_v46 = vpop.eup %6665  ;;  %v2636_v41 = vadd.f32 1.0, %v6664_v48 }
 0xa47   :  { %6685 = vpow2.f32 %v5895_v19  ;;  %v6668_v42 = vpop.eup %6667  ;;  %v2635_v1 = vadd.f32 1.0, %v6666_v46 }
 0xa48   :  { %6687 = vrcp.f32 %v2634_v6  ;;  %v2638_v15 = vadd.f32 1.0, %v6668_v42 }
 0xa49   :  { %v6670_v8 = vpop.eup %6669 }
 0xa4a   :  { %v6672_v13 = vpop.eup %6671  ;;  %6689 = vrcp.f32 %v2638_v15  ;;  %v2674_v60 = vmul.f32 %v6670_v8, %v8353_v31  ;;  %v8431_v8 = vld [vmem:[%s9461_s0 + $0x20] sm:$0xff] }
 0xa4b   :  { %v6674_v17 = vpop.eup %6673  ;;  %6691 = vpow2.f32 %v5898_v52  ;;  %v2676_v28 = vmul.f32 %v6672_v13, %v8356_v27  ;;  %v8436_v15 = vld [vmem:[%s9461_s0 + $0x60] sm:$0xff] }
 0xa4c   :  { %v6676_v0 = vpop.eup %6675  ;;  %6693 = vpow2.f32 %v5897_v34  ;;  %v2675_v22 = vmul.f32 %v6674_v17, %v8359_v16 }
 0xa4d   :  { %v6678_v7 = vpop.eup %6677  ;;  %6695 = vpow2.f32 %v5899_v3  ;;  %v2677_v57 = vmul.f32 %v6676_v0, %v8363_v40 }
 0xa4e   :  { %v6680_v35 = vpop.eup %6679  ;;  %v2678_v26 = vmul.f32 %v6678_v7, %v8366_v43  ;;  %6697 = vrcp.f32 %v2636_v41  ;;  %v2705_v41 = vpop.permute.xlu0 %2704 }
 0xa4f   :  { %v6682_v20 = vpop.eup %6681  ;;  %v2680_v39 = vmul.f32 %v6680_v35, %v8371_v11  ;;  %6699 = vrcp.f32 %v2635_v1 }
 0xa50   :  { %v6684_v4 = vpop.eup %6683  ;;  %v2694_v45 = vpack.c.bf16 %v2678_v26, %v2674_v60  ;;  %v2679_v12 = vmul.f32 %v6682_v20, %v8374_v10  ;;  %v8459_v26 = vld [vmem:[%s9461_s0 + $0xa0] sm:$0xff]  ;;  %v8472_v20 = vld [vmem:[%s9461_s0 + $0xa8] sm:$0xff] }
 0xa51   :  { %v6686_v58 = vpop.eup %6685  ;;  %v2696_v30 = vpack.c.bf16 %v2680_v39, %v2676_v28  ;;  %v2681_v31 = vmul.f32 %v6684_v4, %v8379_v54  ;;  %v8477_v28 = vld [vmem:[%s9461_s0 + $0xe8] sm:$0xff]  ;;  %v5917_v39 = vcombine.low %v8431_v8, %v8436_v15 }
 0xa52   :  { %v2695_v43 = vpack.c.bf16 %v2679_v12, %v2675_v22  ;;  %v6688_v29 = vpop.eup %6687  ;;  %v2637_v27 = vadd.f32 1.0, %v6686_v58  ;;  %v5923_v58 = vcombine.low %v8472_v20, %v8477_v28 }
 0xa53   :  { %v2697_v38 = vpack.c.bf16 %v2681_v31, %v2677_v57  ;;  %v2682_v44 = vmul.f32 %v6688_v29, %v8385_v14  ;;  %v6177_v57 = vld [vmem:[%s9462_s1] sm:$0xff]   ;;  %v2710_v31 = vpop.permute.xlu1 %2709 }
 0xa54   :  { %2720 = vmatprep.subr.bf16.mxu0 %v2695_v43  ;;  %v6690_v11 = vpop.eup %6689  ;;  %6701 = vrcp.f32 %v2637_v27 }
 0xa55   :  { %2763 = vmatprep.subr.bf16.mxu1 %v2697_v38  ;;  %2721 = vmatpush1.bf16.msra.mxu0 %v2694_v45  ;;  %v6692_v16 = vpop.eup %6691  ;;  %v2686_v10 = vmul.f32 %v6690_v11, %v8395_v21  ;;  %v5924_v45 = vcombine.high %v8472_v20, %v8477_v28 }
 0xa56   :  { %2764 = vmatpush1.bf16.msra.mxu1 %v2696_v30  ;;  %v6694_v40 = vpop.eup %6693  ;;  %v2640_v54 = vadd.f32 1.0, %v6692_v16  ;;  %v6178_v30 = vld [vmem:[%s9462_s1 + $0x8] sm:$0xff]  }
 0xa57   :  { %v6696_v55 = vpop.eup %6695  ;;  %v2698_v19 = vpack.c.bf16 %v2686_v10, %v2682_v44  ;;  %v2639_v62 = vadd.f32 1.0, %v6694_v40 }
 0xa58   :  { %6703 = vrcp.f32 %v2640_v54  ;;  %v2641_v18 = vadd.f32 1.0, %v6696_v55  ;;  %v6698_v6 = vpop.eup %6697 }
 0xa59   :  { %6705 = vrcp.f32 %v2639_v62  ;;  %v6700_v48 = vpop.eup %6699  ;;  %v2684_v52 = vmul.f32 %v6698_v6, %v8388_v33  ;;  %v8443_v33 = vld [vmem:[%s9461_s0 + $0x28] sm:$0xff] }
 0xa5a   :  { %6707 = vrcp.f32 %v2641_v18  ;;  %v2683_v13 = vmul.f32 %v6700_v48, %v8391_v61  ;;  %v5918_v61 = vcombine.high %v8431_v8, %v8436_v15 }
 0xa5e   :  { %v6702_v46 = vpop.eup %6701 }
 0xa5f   :  { %v2685_v17 = vmul.f32 %v6702_v46, %v8401_v36  ;;  %v8464_v36 = vld [vmem:[%s9461_s0 + $0xe0] sm:$0xff] }
 0xa60   :  { %v5922_v22 = vcombine.high %v8459_v26, %v8464_v36  ;;  %v5921_v12 = vcombine.low %v8459_v26, %v8464_v36 }
 0xa62   :  { %v6704_v42 = vpop.eup %6703 }
 0xa63   :  { %v6706_v14 = vpop.eup %6705  ;;  %v2688_v21 = vmul.f32 %v6704_v42, %v8405_v63  ;;  %v8448_v63 = vld [vmem:[%s9461_s0 + $0x68] sm:$0xff] }
 0xa64   :  { %v6708_v34 = vpop.eup %6707  ;;  %v2687_v3 = vmul.f32 %v6706_v14, %v8408_v25  ;;  %v5920_v60 = vcombine.high %v8443_v33, %v8448_v63  ;;  %v5919_v4 = vcombine.low %v8443_v33, %v8448_v63 }
 0xa65   :  { %v2700_v0 = vpack.c.bf16 %v2688_v21, %v2684_v52  ;;  %v2689_v7 = vmul.f32 %v6708_v34, %v8411_v47  ;;  %v6176_v47 = vld [vmem:[%s9462_s1 + $0x48] sm:$0xff]  }
 0xa66   :  { %v2699_v35 = vpack.c.bf16 %v2687_v3, %v2683_v13 }
 0xa67   :  { %v2701_v25 = vpack.c.bf16 %v2689_v7, %v2685_v17 }
 0xa68   :  { %2722 = vmatprep.subr.bf16.mxu0 %v2699_v35 }
 0xa69   :  { %2765 = vmatprep.subr.bf16.mxu1 %v2701_v25  ;;  %2723 = vmatpush1.bf16.msra.mxu0 %v2698_v19 }
 0xa6a   :  { %2766 = vmatpush1.bf16.msra.mxu1 %v2700_v0  ;;  %2944 = vmatprep.subr.bf16.mxu0 %v5918_v61 }
 0xa6b   :  { %2997 = vmatprep.subr.bf16.mxu1 %v5920_v60 }
 0xa6c   :  { %5901 = vmatmul.mubr.msk.bf16.vlgmr.msra.gmra.mrb[76].mxu0 %vm110_vm0, %v6176_v47 }
 0xa6d   :  { %5902 = vmatmul.mubr.msk.bf16.vlgmr.msra.gmra.mrb[76].mxu1 %vm110_vm0, %v6176_v47  ;;  %2945 = vmatpush1.bf16.msra.mxu0 %v5917_v39 }
 0xa6e   :  { %2998 = vmatpush1.bf16.msra.mxu1 %v5919_v4  ;;  %2946 = vmatprep.subr.bf16.mxu0 %v5922_v22 }
 0xa6f   :  { %2999 = vmatprep.subr.bf16.mxu1 %v5924_v45  ;;  %2976 = vmatprep.mubr.bf16.mxu0 %v9531_v2 }
 0xa70   :  { %3029 = vmatprep.mubr.bf16.mxu1 %v9531_v2 }
 0xa71   :  { %2947 = vmatpush1.bf16.msra.mxu0 %v5921_v12 }
 0xa72   :  { %3000 = vmatpush1.bf16.msra.mxu1 %v5923_v58 }
 0xa74   :  { %5925 = vmatmul.mubr.msk.bf16.vlgmr.msra.gmra.mrb[80].mxu0 %vm110_vm0, %v6177_v57 }
 0xa75   :  { %5927 = vmatmul.mubr.msk.bf16.vlgmr.msra.gmra.mrb[80].mxu1 %vm110_vm0, %v6177_v57  ;;  %2986 = vmatprep.mubr.bf16.mxu0 %v9531_v2 }
 0xa76   :  { %3039 = vmatprep.mubr.bf16.mxu1 %v9531_v2 }
 0xa7c   :  { %5926 = vmatmul.mubr.msk.bf16.gmra.mrb[84].mxu0 %vm110_vm0, %v6178_v30 }
 0xa7d   :  { %5928 = vmatmul.mubr.msk.bf16.gmra.mrb[84].mxu1 %vm110_vm0, %v6178_v30  ;;  %3246 = vmatprep.mubr.bf16.mxu0 %v9531_v2 }
 0xa7e   :  { %3299 = vmatprep.mubr.bf16.mxu1 %v9531_v2 }
 0xb3f   :  { %v2754_v43 = vpop.f32.mrb[76].mxu0 }
 0xb40   :  { %v2755_v29 = vadd.f32 %v2754_v43, %v2705_v41  ;;  %v2797_v1 = vpop.f32.mrb[76].mxu1  ;;  %v2756_v38 = vpop.f32.mrb[77].mxu0 }
 0xb41   :  { %v2798_v27 = vadd.f32 %v2797_v1, %v2705_v41  ;;  %v2757_v11 = vadd.f32 %v2756_v38, %v2705_v41  ;;  %v2799_v16 = vpop.f32.mrb[77].mxu1  ;;  %v2758_v44 = vpop.f32.mrb[78].mxu0 }
 0xb42   :  { %v2806_v10 = vadd.f32 %v2755_v29, %v8211_v51  ;;  %v2800_v40 = vadd.f32 %v2799_v16, %v2705_v41  ;;  %v2759_v54 = vadd.f32 %v2758_v44, %v2710_v31  ;;  %v2801_v55 = vpop.f32.mrb[78].mxu1  ;;  %v2760_v19 = vpop.f32.mrb[79].mxu0 }
 0xb43   :  { %v2808_v62 = vadd.f32 %v2798_v27, %v8216_v32  ;;  %v2807_v18 = vadd.f32 %v2757_v11, %v8218_v5  ;;  %v2802_v6 = vadd.f32 %v2801_v55, %v2710_v31  ;;  %v2761_v48 = vadd.f32 %v2760_v19, %v2710_v31  ;;  %v2803_v46 = vpop.f32.mrb[79].mxu1 }
 0xb44   :  { %v2809_v42 = vadd.f32 %v2800_v40, %v8222_v53  ;;  %v2810_v14 = vadd.f32 %v2759_v54, %v8231_v24  ;;  %v2804_v52 = vadd.f32 %v2803_v46, %v2710_v31 }
 0xb45   :  { %v6139_v21 = vpack.c.bf16 %v2807_v18, %v2806_v10  ;;  %v2812_v34 = vadd.f32 %v2802_v6, %v8237_v23  ;;  %v2811_v51 = vadd.f32 %v2761_v48, %v8227_v56 }
 0xb46   :  { %v6140_v13 = vpack.c.bf16 %v2809_v42, %v2808_v62  ;;  %v2813_v3 = vadd.f32 %v2804_v52, %v8233_v50 }
 0xb47   :  { %2839 = vst [vmem:[#allocation2 + $0x10] sm:$0xff] %v6139_v21  ;;  %v6141_v32 = vpack.c.bf16 %v2811_v51, %v2810_v14  ;;  %v2978_v17 = vpop.f32.mrb[80].mxu0 }
 0xb48   :  { %2840 = vst [vmem:[#allocation2 + $0x18] sm:$0xff] %v6140_v13  ;;  %v6142_v5 = vpack.c.bf16 %v2813_v3, %v2812_v34  ;;  %v8518_v0 = vadd.f32 %v2978_v17, %v7937_v59  ;;  %v3031_v53 = vpop.f32.mrb[80].mxu1  ;;  %v2980_v7 = vpop.f32.mrb[81].mxu0 }
 0xb49   :  { %2841 = vst [vmem:[#allocation2 + $0x50] sm:$0xff] %v6141_v32  ;;  %v8521_v24 = vadd.f32 %v3031_v53, %v7937_v59  ;;  %v8524_v23 = vadd.f32 %v2980_v7, %v7937_v59  ;;  %v3033_v56 = vpop.f32.mrb[81].mxu1  ;;  %v2982_v35 = vpop.f32.mrb[82].mxu0 }
 0xb4a   :  { %2842 = vst [vmem:[#allocation2 + $0x58] sm:$0xff] %v6142_v5  ;;  %v5929_v50 = vmul.f32 -1.442695, %v8518_v0  ;;  %v8528_v61 = vadd.f32 %v3033_v56, %v7937_v59  ;;  %v8531_v25 = vadd.f32 %v2982_v35, %v7935_v37  ;;  %v3035_v60 = vpop.f32.mrb[82].mxu1  ;;  %v2984_v47 = vpop.f32.mrb[83].mxu0 }
 0xb4b   :  { %v5931_v39 = vmul.f32 -1.442695, %v8521_v24  ;;  %v5930_v4 = vmul.f32 -1.442695, %v8524_v23  ;;  %v8536_v22 = vadd.f32 %v3035_v60, %v7935_v37  ;;  %v8539_v45 = vadd.f32 %v2984_v47, %v7935_v37  ;;  %v3037_v12 = vpop.f32.mrb[83].mxu1 }
 0xb4c   :  { %6709 = vpow2.f32 %v5929_v50  ;;  %v5932_v59 = vmul.f32 -1.442695, %v8528_v61  ;;  %v5933_v58 = vmul.f32 -1.442695, %v8531_v25  ;;  %v8544_v57 = vadd.f32 %v3037_v12, %v7935_v37 }
 0xb4d   :  { %6711 = vpow2.f32 %v5931_v39  ;;  %v5935_v30 = vmul.f32 -1.442695, %v8536_v22  ;;  %v5934_v31 = vmul.f32 -1.442695, %v8539_v45 }
 0xb4e   :  { %6713 = vpow2.f32 %v5930_v4  ;;  %v5936_v41 = vmul.f32 -1.442695, %v8544_v57 }
 0xb4f   :  { %6715 = vpow2.f32 %v5932_v59  ;;  %v2988_v43 = vpop.f32.mrb[84].mxu0 }
 0xb50   :  { %6717 = vpow2.f32 %v5933_v58  ;;  %v8550_v29 = vadd.f32 %v2988_v43, %v7941_v49  ;;  %v3041_v1 = vpop.f32.mrb[84].mxu1  ;;  %v2990_v38 = vpop.f32.mrb[85].mxu0 }
 0xb51   :  { %6719 = vpow2.f32 %v5935_v30  ;;  %v8553_v37 = vadd.f32 %v3041_v1, %v7941_v49  ;;  %v8556_v27 = vadd.f32 %v2990_v38, %v7941_v49  ;;  %v3043_v11 = vpop.f32.mrb[85].mxu1  ;;  %v2992_v16 = vpop.f32.mrb[86].mxu0 }
 0xb52   :  { %6721 = vpow2.f32 %v5934_v31  ;;  %v5937_v44 = vmul.f32 -1.442695, %v8550_v29  ;;  %v8560_v10 = vadd.f32 %v2992_v16, %v7939_v9  ;;  %v3045_v40 = vpop.f32.mrb[86].mxu1  ;;  %v2994_v54 = vpop.f32.mrb[87].mxu0  ;;  %v8566_v34 = vadd.f32 %v3043_v11, %v7941_v49 }
 0xb53   :  { %6723 = vpow2.f32 %v5936_v41  ;;  %v5939_v55 = vmul.f32 -1.442695, %v8553_v37  ;;  %v5938_v19 = vmul.f32 -1.442695, %v8556_v27  ;;  %v3047_v62 = vpop.f32.mrb[87].mxu1  ;;  %v8570_v49 = vadd.f32 %v3045_v40, %v7939_v9 }
 0xb54   :  { %6725 = vpow2.f32 %v5937_v44  ;;  %v5941_v18 = vmul.f32 -1.442695, %v8560_v10  ;;  %v5940_v56 = vmul.f32 -1.442695, %v8566_v34  ;;  %v8573_v47 = vadd.f32 %v2994_v54, %v7939_v9 }
 0xb55   :  { %6727 = vpow2.f32 %v5939_v55  ;;  %v8576_v4 = vadd.f32 %v3047_v62, %v7939_v9  ;;  %v5943_v58 = vmul.f32 -1.442695, %v8570_v49 }
 0xb56   :  { %v6710_v6 = vpop.eup %6709  ;;  %6729 = vpow2.f32 %v5938_v19  ;;  %v5942_v41 = vmul.f32 -1.442695, %v8573_v47 }
 0xb57   :  { %v6712_v48 = vpop.eup %6711  ;;  %v3098_v46 = vadd.f32 1.0, %v6710_v6  ;;  %6731 = vpow2.f32 %v5941_v18  ;;  %v5944_v1 = vmul.f32 -1.442695, %v8576_v4 }
 0xb58   :  { %v6714_v42 = vpop.eup %6713  ;;  %v3100_v14 = vadd.f32 1.0, %v6712_v48 }
 0xb59   :  { %v6716_v52 = vpop.eup %6715  ;;  %6733 = vrcp.f32 %v3098_v46  ;;  %v3099_v21 = vadd.f32 1.0, %v6714_v42 }
 0xb5a   :  { %v6718_v51 = vpop.eup %6717  ;;  %6735 = vrcp.f32 %v3100_v14  ;;  %v3101_v13 = vadd.f32 1.0, %v6716_v52 }
 0xb5b   :  { %v6720_v3 = vpop.eup %6719  ;;  %6737 = vrcp.f32 %v3099_v21  ;;  %v3102_v32 = vadd.f32 1.0, %v6718_v51 }
 0xb5c   :  { %v6722_v17 = vpop.eup %6721  ;;  %6739 = vrcp.f32 %v3101_v13  ;;  %v3104_v5 = vadd.f32 1.0, %v6720_v3 }
 0xb5d   :  { %v6724_v53 = vpop.eup %6723  ;;  %6741 = vrcp.f32 %v3102_v32  ;;  %v3103_v7 = vadd.f32 1.0, %v6722_v17 }
 0xb5e   :  { %v6726_v35 = vpop.eup %6725  ;;  %6743 = vrcp.f32 %v3104_v5  ;;  %v3105_v50 = vadd.f32 1.0, %v6724_v53 }
 0xb5f   :  { %6745 = vrcp.f32 %v3103_v7  ;;  %v3106_v60 = vadd.f32 1.0, %v6726_v35  ;;  %v6728_v39 = vpop.eup %6727 }
 0xb60   :  { %6747 = vrcp.f32 %v3105_v50  ;;  %v6730_v12 = vpop.eup %6729  ;;  %v3108_v52 = vadd.f32 1.0, %v6728_v39 }
 0xb61   :  { %6749 = vpow2.f32 %v5940_v56  ;;  %v6732_v59 = vpop.eup %6731  ;;  %v3107_v51 = vadd.f32 1.0, %v6730_v12 }
 0xb62   :  { %6751 = vrcp.f32 %v3106_v60  ;;  %v3110_v31 = vadd.f32 1.0, %v6732_v59 }
 0xb63   :  { %v6734_v30 = vpop.eup %6733 }
 0xb64   :  { %v6736_v43 = vpop.eup %6735  ;;  %6753 = vrcp.f32 %v3110_v31  ;;  %v3146_v44 = vmul.f32 %v6734_v30, %v8518_v0 }
 0xb65   :  { %v6738_v38 = vpop.eup %6737  ;;  %6755 = vpow2.f32 %v5943_v58  ;;  %v3148_v55 = vmul.f32 %v6736_v43, %v8521_v24 }
 0xb66   :  { %v6740_v11 = vpop.eup %6739  ;;  %6757 = vpow2.f32 %v5942_v41  ;;  %v3147_v18 = vmul.f32 %v6738_v38, %v8524_v23 }
 0xb67   :  { %v6742_v16 = vpop.eup %6741  ;;  %6759 = vpow2.f32 %v5944_v1  ;;  %v3149_v42 = vmul.f32 %v6740_v11, %v8528_v61  ;;  %v6179_v1 = vld [vmem:[%s9462_s1 + $0x10] sm:$0xff]  }
 0xb68   :  { %v6744_v9 = vpop.eup %6743  ;;  %v3150_v40 = vmul.f32 %v6742_v16, %v8531_v25  ;;  %6761 = vrcp.f32 %v3108_v52 }
 0xb69   :  { %v6746_v54 = vpop.eup %6745  ;;  %v3152_v19 = vmul.f32 %v6744_v9, %v8536_v22  ;;  %6763 = vrcp.f32 %v3107_v51 }
 0xb6a   :  { %v6748_v62 = vpop.eup %6747  ;;  %v3170_v6 = vpack.c.bf16 %v3150_v40, %v3146_v44  ;;  %v3151_v48 = vmul.f32 %v6746_v54, %v8539_v45  ;;  %v9533_v54 = vld [vmem:[#allocation5_spill] sm:$0xff] }
 0xb6b   :  { %v6750_v46 = vpop.eup %6749  ;;  %v3172_v14 = vpack.c.bf16 %v3152_v19, %v3148_v55  ;;  %v3153_v0 = vmul.f32 %v6748_v62, %v8544_v57 }
 0xb6c   :  { %v3171_v25 = vpack.c.bf16 %v3151_v48, %v3147_v18  ;;  %v6752_v21 = vpop.eup %6751  ;;  %v3109_v24 = vadd.f32 1.0, %v6750_v46 }
 0xb6d   :  { %v3173_v13 = vpack.c.bf16 %v3153_v0, %v3149_v42  ;;  %v3154_v3 = vmul.f32 %v6752_v21, %v8550_v29 }
 0xb6e   :  { %3214 = vmatprep.subr.bf16.mxu0 %v3171_v25  ;;  %v6754_v22 = vpop.eup %6753  ;;  %6765 = vrcp.f32 %v3109_v24  ;;  %v9534_v24 = vld [vmem:[#allocation8_spill] sm:$0xff] }
 0xb6f   :  { %3267 = vmatprep.subr.bf16.mxu1 %v3173_v13  ;;  %3215 = vmatpush1.bf16.msra.mxu0 %v3170_v6  ;;  %v6756_v23 = vpop.eup %6755  ;;  %v3158_v45 = vmul.f32 %v6754_v22, %v8560_v10 }
 0xb70   :  { %3268 = vmatpush1.bf16.msra.mxu1 %v3172_v14  ;;  %v6758_v61 = vpop.eup %6757  ;;  %v3112_v57 = vadd.f32 1.0, %v6756_v23 }
 0xb71   :  { %v6760_v32 = vpop.eup %6759  ;;  %v3174_v17 = vpack.c.bf16 %v3158_v45, %v3154_v3  ;;  %v3111_v5 = vadd.f32 1.0, %v6758_v61 }
 0xb72   :  { %6767 = vrcp.f32 %v3112_v57  ;;  %v3113_v53 = vadd.f32 1.0, %v6760_v32  ;;  %v6762_v7 = vpop.eup %6761 }
 0xb73   :  { %6769 = vrcp.f32 %v3111_v5  ;;  %v6764_v56 = vpop.eup %6763  ;;  %v3156_v60 = vmul.f32 %v6762_v7, %v8553_v37  ;;  %v6180_v37 = vld [vmem:[%s9462_s1 + $0x18] sm:$0xff]   ;;  %v9535_v5 = vld [vmem:[#allocation7_spill] sm:$0xff] }
 0xb74   :  { %6771 = vrcp.f32 %v3113_v53  ;;  %v3155_v12 = vmul.f32 %v6764_v56, %v8556_v27 }
 0xb78   :  { %v6766_v35 = vpop.eup %6765 }
 0xb79   :  { %v3157_v58 = vmul.f32 %v6766_v35, %v8566_v34  ;;  %v9532_v34 = vld [vmem:[#allocation6_spill] sm:$0xff] }
 0xb7c   :  { %v6768_v50 = vpop.eup %6767 }
 0xb7d   :  { %v6770_v29 = vpop.eup %6769  ;;  %v3160_v10 = vmul.f32 %v6768_v50, %v8570_v49 }
 0xb7e   :  { %v6772_v39 = vpop.eup %6771  ;;  %v3159_v59 = vmul.f32 %v6770_v29, %v8573_v47 }
 0xb7f   :  { %v3176_v30 = vpack.c.bf16 %v3160_v10, %v3156_v60  ;;  %v3161_v31 = vmul.f32 %v6772_v39, %v8576_v4 }
 0xb80   :  { %v3175_v41 = vpack.c.bf16 %v3159_v59, %v3155_v12 }
 0xb81   :  { %v3177_v43 = vpack.c.bf16 %v3161_v31, %v3157_v58 }
 0xb82   :  { %3216 = vmatprep.subr.bf16.mxu0 %v3175_v41 }
 0xb83   :  { %3269 = vmatprep.subr.bf16.mxu1 %v3177_v43  ;;  %3217 = vmatpush1.bf16.msra.mxu0 %v3174_v17 }
 0xb84   :  { %3270 = vmatpush1.bf16.msra.mxu1 %v3176_v30 }
 0xb86   :  { %5947 = vmatmul.mubr.msk.bf16.vlgmr.msra.gmra.mrb[88].mxu0 %vm110_vm0, %v6179_v1 }
 0xb87   :  { %5949 = vmatmul.mubr.msk.bf16.vlgmr.msra.gmra.mrb[88].mxu1 %vm110_vm0, %v6179_v1  ;;  %3256 = vmatprep.mubr.bf16.mxu0 %v9531_v2 }
 0xb88   :  { %3309 = vmatprep.mubr.bf16.mxu1 %v9531_v2 }
 0xb8e   :  { %5948 = vmatmul.mubr.msk.bf16.gmra.mrb[92].mxu0 %vm110_vm0, %v6180_v37 }
 0xb8f   :  { %5950 = vmatmul.mubr.msk.bf16.gmra.mrb[92].mxu1 %vm110_vm0, %v6180_v37  ;;  %3494 = vmatprep.mubr.bf16.mxu0 %v9531_v2 }
 0xb90   :  { %3537 = vmatprep.mubr.bf16.mxu1 %v9531_v2 }
 0xc59   :  { %v3248_v27 = vpop.f32.mrb[88].mxu0 }
 0xc5a   :  { %v8612_v49 = vadd.f32 %v3248_v27, %v9532_v34  ;;  %v3301_v47 = vpop.f32.mrb[88].mxu1  ;;  %v3250_v4 = vpop.f32.mrb[89].mxu0 }
 0xc5b   :  { %v8615_v38 = vadd.f32 %v3301_v47, %v9532_v34  ;;  %v8618_v11 = vadd.f32 %v3250_v4, %v9532_v34  ;;  %v3303_v16 = vpop.f32.mrb[89].mxu1  ;;  %v3252_v9 = vpop.f32.mrb[90].mxu0 }
 0xc5c   :  { %v5951_v44 = vmul.f32 -1.442695, %v8612_v49  ;;  %v8622_v40 = vadd.f32 %v3303_v16, %v9532_v34  ;;  %v8625_v55 = vadd.f32 %v3252_v9, %v9533_v54  ;;  %v3305_v19 = vpop.f32.mrb[90].mxu1  ;;  %v3254_v62 = vpop.f32.mrb[91].mxu0 }
 0xc5d   :  { %v5953_v18 = vmul.f32 -1.442695, %v8615_v38  ;;  %v5952_v6 = vmul.f32 -1.442695, %v8618_v11  ;;  %v8630_v48 = vadd.f32 %v3305_v19, %v9533_v54  ;;  %v8633_v46 = vadd.f32 %v3254_v62, %v9533_v54  ;;  %v3307_v42 = vpop.f32.mrb[91].mxu1 }
 0xc5e   :  { %6773 = vpow2.f32 %v5951_v44  ;;  %v5954_v14 = vmul.f32 -1.442695, %v8622_v40  ;;  %v5955_v0 = vmul.f32 -1.442695, %v8625_v55  ;;  %v8638_v52 = vadd.f32 %v3307_v42, %v9533_v54 }
 0xc5f   :  { %6775 = vpow2.f32 %v5953_v18  ;;  %v5957_v25 = vmul.f32 -1.442695, %v8630_v48  ;;  %v5956_v21 = vmul.f32 -1.442695, %v8633_v46 }
 0xc60   :  { %6777 = vpow2.f32 %v5952_v6  ;;  %v5958_v51 = vmul.f32 -1.442695, %v8638_v52 }
 0xc61   :  { %6779 = vpow2.f32 %v5954_v14  ;;  %v3258_v13 = vpop.f32.mrb[92].mxu0 }
 0xc62   :  { %6781 = vpow2.f32 %v5955_v0  ;;  %v8644_v22 = vadd.f32 %v3258_v13, %v9534_v24  ;;  %v3311_v23 = vpop.f32.mrb[92].mxu1  ;;  %v3260_v3 = vpop.f32.mrb[93].mxu0 }
 0xc63   :  { %6783 = vpow2.f32 %v5957_v25  ;;  %v8647_v45 = vadd.f32 %v3311_v23, %v9534_v24  ;;  %v8650_v61 = vadd.f32 %v3260_v3, %v9534_v24  ;;  %v3313_v57 = vpop.f32.mrb[93].mxu1  ;;  %v3262_v32 = vpop.f32.mrb[94].mxu0 }
 0xc64   :  { %6785 = vpow2.f32 %v5956_v21  ;;  %v5959_v17 = vmul.f32 -1.442695, %v8644_v22  ;;  %v8654_v53 = vadd.f32 %v3262_v32, %v9535_v5  ;;  %v3315_v7 = vpop.f32.mrb[94].mxu1  ;;  %v3264_v56 = vpop.f32.mrb[95].mxu0  ;;  %v8660_v41 = vadd.f32 %v3313_v57, %v9534_v24 }
 0xc65   :  { %6787 = vpow2.f32 %v5958_v51  ;;  %v5961_v35 = vmul.f32 -1.442695, %v8647_v45  ;;  %v5960_v50 = vmul.f32 -1.442695, %v8650_v61  ;;  %v3317_v29 = vpop.f32.mrb[95].mxu1  ;;  %v8664_v19 = vadd.f32 %v3315_v7, %v9535_v5 }
 0xc66   :  { %6789 = vpow2.f32 %v5959_v17  ;;  %v5963_v60 = vmul.f32 -1.442695, %v8654_v53  ;;  %v5962_v9 = vmul.f32 -1.442695, %v8660_v41  ;;  %v8667_v18 = vadd.f32 %v3264_v56, %v9535_v5 }
 0xc67   :  { %6791 = vpow2.f32 %v5961_v35  ;;  %v8670_v42 = vadd.f32 %v3317_v29, %v9535_v5  ;;  %v5965_v25 = vmul.f32 -1.442695, %v8664_v19 }
 0xc68   :  { %v6774_v10 = vpop.eup %6773  ;;  %6793 = vpow2.f32 %v5960_v50  ;;  %v5964_v13 = vmul.f32 -1.442695, %v8667_v18 }
 0xc69   :  { %v6776_v39 = vpop.eup %6775  ;;  %v3368_v12 = vadd.f32 1.0, %v6774_v10  ;;  %6795 = vpow2.f32 %v5963_v60  ;;  %v5966_v23 = vmul.f32 -1.442695, %v8670_v42 }
 0xc6a   :  { %v6778_v59 = vpop.eup %6777  ;;  %v3370_v58 = vadd.f32 1.0, %v6776_v39 }
 0xc6b   :  { %v6780_v30 = vpop.eup %6779  ;;  %6797 = vrcp.f32 %v3368_v12  ;;  %v3369_v31 = vadd.f32 1.0, %v6778_v59 }
 0xc6c   :  { %v6782_v43 = vpop.eup %6781  ;;  %6799 = vrcp.f32 %v3370_v58  ;;  %v3371_v1 = vadd.f32 1.0, %v6780_v30 }
 0xc6d   :  { %v6784_v37 = vpop.eup %6783  ;;  %6801 = vrcp.f32 %v3369_v31  ;;  %v3372_v27 = vadd.f32 1.0, %v6782_v43 }
 0xc6e   :  { %v6786_v34 = vpop.eup %6785  ;;  %6803 = vrcp.f32 %v3371_v1  ;;  %v3374_v47 = vadd.f32 1.0, %v6784_v37 }
 0xc6f   :  { %v6788_v4 = vpop.eup %6787  ;;  %6805 = vrcp.f32 %v3372_v27  ;;  %v3373_v16 = vadd.f32 1.0, %v6786_v34 }
 0xc70   :  { %v6790_v44 = vpop.eup %6789  ;;  %6807 = vrcp.f32 %v3374_v47  ;;  %v3375_v54 = vadd.f32 1.0, %v6788_v4 }
 0xc71   :  { %6809 = vrcp.f32 %v3373_v16  ;;  %v3376_v62 = vadd.f32 1.0, %v6790_v44  ;;  %v6792_v6 = vpop.eup %6791 }
 0xc72   :  { %6811 = vrcp.f32 %v3375_v54  ;;  %v6794_v14 = vpop.eup %6793  ;;  %v3378_v30 = vadd.f32 1.0, %v6792_v6 }
 0xc73   :  { %6813 = vpow2.f32 %v5962_v9  ;;  %v6796_v0 = vpop.eup %6795  ;;  %v3377_v43 = vadd.f32 1.0, %v6794_v14 }
 0xc74   :  { %6815 = vrcp.f32 %v3376_v62  ;;  %v3380_v51 = vadd.f32 1.0, %v6796_v0 }
 0xc75   :  { %v6798_v21 = vpop.eup %6797 }
 0xc76   :  { %v6800_v24 = vpop.eup %6799  ;;  %6817 = vrcp.f32 %v3380_v51  ;;  %v3416_v5 = vmul.f32 %v6798_v21, %v8612_v49 }
 0xc77   :  { %v6802_v3 = vpop.eup %6801  ;;  %6819 = vpow2.f32 %v5965_v25  ;;  %v3418_v35 = vmul.f32 %v6800_v24, %v8615_v38 }
 0xc78   :  { %v6804_v57 = vpop.eup %6803  ;;  %6821 = vpow2.f32 %v5964_v13  ;;  %v3417_v60 = vmul.f32 %v6802_v3, %v8618_v11  ;;  %v2855_v3 = vunpack.c.h.bf16 %v8448_v63 }
 0xc79   :  { %v6806_v32 = vpop.eup %6805  ;;  %6823 = vpow2.f32 %v5966_v23  ;;  %v3419_v59 = vmul.f32 %v6804_v57, %v8622_v40  ;;  %v6181_v23 = vld [vmem:[%s9462_s1 + $0x20] sm:$0xff]   ;;  %v2856_v57 = vunpack.c.l.bf16 %v8459_v26 }
 0xc7a   :  { %v6808_v17 = vpop.eup %6807  ;;  %v3420_v7 = vmul.f32 %v6806_v32, %v8625_v55  ;;  %6825 = vrcp.f32 %v3378_v30  ;;  %v9536_v32 = vld [vmem:[#allocation10_spill] sm:$0xff] }
 0xc7b   :  { %v6810_v56 = vpop.eup %6809  ;;  %v3422_v50 = vmul.f32 %v6808_v17, %v8630_v48  ;;  %6827 = vrcp.f32 %v3377_v43 }
 0xc7c   :  { %v6812_v29 = vpop.eup %6811  ;;  %v3436_v10 = vpack.c.bf16 %v3420_v7, %v3416_v5  ;;  %v3421_v39 = vmul.f32 %v6810_v56, %v8633_v46  ;;  %v2858_v56 = vunpack.c.l.bf16 %v8472_v20 }
 0xc7d   :  { %v6814_v12 = vpop.eup %6813  ;;  %v3438_v58 = vpack.c.bf16 %v3422_v50, %v3418_v35  ;;  %v3423_v49 = vmul.f32 %v6812_v29, %v8638_v52  ;;  %v2857_v35 = vunpack.c.h.bf16 %v8459_v26  ;;  %v2859_v50 = vunpack.c.h.bf16 %v8472_v20 }
 0xc7e   :  { %v3437_v55 = vpack.c.bf16 %v3421_v39, %v3417_v60  ;;  %v6816_v31 = vpop.eup %6815  ;;  %v3379_v38 = vadd.f32 1.0, %v6814_v12  ;;  %v3559_v39 = vunpack.c.h.bf16 %v8443_v33  ;;  %v3561_v20 = vunpack.c.h.bf16 %v8464_v36 }
 0xc7f   :  { %v3439_v1 = vpack.c.bf16 %v3423_v49, %v3419_v59  ;;  %v3424_v37 = vmul.f32 %v6816_v31, %v8644_v22 }
 0xc80   :  { %3462 = vmatprep.subr.bf16.mxu0 %v3437_v55  ;;  %v6818_v48 = vpop.eup %6817  ;;  %6829 = vrcp.f32 %v3379_v38 }
 0xc81   :  { %3505 = vmatprep.subr.bf16.mxu1 %v3439_v1  ;;  %3463 = vmatpush1.bf16.msra.mxu0 %v3436_v10  ;;  %v6820_v11 = vpop.eup %6819  ;;  %v3428_v46 = vmul.f32 %v6818_v48, %v8654_v53  ;;  %v3563_v48 = vunpack.c.h.bf16 %v8477_v28 }
 0xc82   :  { %3506 = vmatpush1.bf16.msra.mxu1 %v3438_v58  ;;  %v6822_v40 = vpop.eup %6821  ;;  %v3382_v52 = vadd.f32 1.0, %v6820_v11  ;;  %v9537_v58 = vld [vmem:[#allocation9_spill] sm:$0xff]  ;;  %v3560_v11 = vunpack.c.l.bf16 %v8464_v36 }
 0xc83   :  { %v6824_v27 = vpop.eup %6823  ;;  %v3440_v34 = vpack.c.bf16 %v3428_v46, %v3424_v37  ;;  %v3381_v47 = vadd.f32 1.0, %v6822_v40 }
 0xc84   :  { %6831 = vrcp.f32 %v3382_v52  ;;  %v3383_v4 = vadd.f32 1.0, %v6824_v27  ;;  %v6826_v16 = vpop.eup %6825 }
 0xc85   :  { %6833 = vrcp.f32 %v3381_v47  ;;  %v6828_v9 = vpop.eup %6827  ;;  %v3426_v62 = vmul.f32 %v6826_v16, %v8647_v45  ;;  %v2852_v45 = vunpack.c.l.bf16 %v8436_v15  ;;  %v3562_v16 = vunpack.c.l.bf16 %v8477_v28  ;;  %v6183_v28 = vld [vmem:[%s9462_s1 + $0x30] sm:$0xff]  }
 0xc86   :  { %6835 = vrcp.f32 %v3383_v4  ;;  %v3425_v14 = vmul.f32 %v6828_v9, %v8650_v61  ;;  %v3556_v61 = vunpack.c.l.bf16 %v8431_v8 }
 0xc8a   :  { %v6830_v44 = vpop.eup %6829 }
 0xc8b   :  { %v3427_v25 = vmul.f32 %v6830_v44, %v8660_v41  ;;  %v2854_v41 = vunpack.c.l.bf16 %v8448_v63  ;;  %v3557_v63 = vunpack.c.h.bf16 %v8431_v8 }
 0xc8e   :  { %v6832_v54 = vpop.eup %6831 }
 0xc8f   :  { %v6834_v22 = vpop.eup %6833  ;;  %v3430_v53 = vmul.f32 %v6832_v54, %v8664_v19 }
 0xc90   :  { %v6836_v6 = vpop.eup %6835  ;;  %v3429_v0 = vmul.f32 %v6834_v22, %v8667_v18  ;;  %v3558_v18 = vunpack.c.l.bf16 %v8443_v33  ;;  %v6182_v22 = vld [vmem:[%s9462_s1 + $0x28] sm:$0xff]  }
 0xc91   :  { %v3442_v21 = vpack.c.bf16 %v3430_v53, %v3426_v62  ;;  %v3431_v51 = vmul.f32 %v6836_v6, %v8670_v42  ;;  %v2853_v42 = vunpack.c.h.bf16 %v8436_v15  ;;  %v9538_v53 = vld [vmem:[#allocation12_spill] sm:$0xff] }
 0xc92   :  { %v3441_v13 = vpack.c.bf16 %v3429_v0, %v3425_v14 }
 0xc93   :  { %v3443_v24 = vpack.c.bf16 %v3431_v51, %v3427_v25 }
 0xc94   :  { %3464 = vmatprep.subr.bf16.mxu0 %v3441_v13 }
 0xc95   :  { %3507 = vmatprep.subr.bf16.mxu1 %v3443_v24  ;;  %3465 = vmatpush1.bf16.msra.mxu0 %v3440_v34 }
 0xc96   :  { %3508 = vmatpush1.bf16.msra.mxu1 %v3442_v21 }
 0xc98   :  { %5968 = vmatmul.mubr.msk.bf16.vlgmr.msra.gmra.mrb[96].mxu0 %vm110_vm0, %v6181_v23 }
 0xc99   :  { %5969 = vmatmul.mubr.msk.bf16.vlgmr.msra.gmra.mrb[96].mxu1 %vm110_vm0, %v6181_v23  ;;  %3648 = vmatprep.mubr.bf16.mxu0 %v9531_v2 }
 0xc9a   :  { %3701 = vmatprep.mubr.bf16.mxu1 %v9531_v2 }
 0xd6b   :  { %v3496_v19 = vpop.f32.mrb[96].mxu0 }
 0xd6c   :  { %v3497_v17 = vadd.f32 %v3496_v19, %v9536_v32  ;;  %v3539_v5 = vpop.f32.mrb[96].mxu1  ;;  %v3498_v7 = vpop.f32.mrb[97].mxu0 }
 0xd6d   :  { %v3540_v29 = vadd.f32 %v3539_v5, %v9536_v32  ;;  %v3499_v60 = vadd.f32 %v3498_v7, %v9536_v32  ;;  %v3541_v10 = vpop.f32.mrb[97].mxu1  ;;  %v3500_v15 = vpop.f32.mrb[98].mxu0 }
 0xd6e   :  { %v8713_v12 = vadd.f32 %v3497_v17, %v2852_v45  ;;  %v3542_v59 = vadd.f32 %v3541_v10, %v9536_v32  ;;  %v3501_v49 = vadd.f32 %v3500_v15, %v9537_v58  ;;  %v3543_v30 = vpop.f32.mrb[98].mxu1  ;;  %v3502_v26 = vpop.f32.mrb[99].mxu0  ;;  %v9539_v45 = vld [vmem:[#allocation11_spill] sm:$0xff] }
 0xd6f   :  { %v8718_v55 = vadd.f32 %v3540_v29, %v2854_v41  ;;  %v8720_v31 = vadd.f32 %v3499_v60, %v2853_v42  ;;  %v3544_v43 = vadd.f32 %v3543_v30, %v9537_v58  ;;  %v3503_v8 = vadd.f32 %v3502_v26, %v9537_v58  ;;  %v3545_v1 = vpop.f32.mrb[99].mxu1  ;;  %v9540_v60 = vld [vmem:[#allocation14_spill] sm:$0xff]  ;;  %v9541_v26 = vld [vmem:[#allocation13_spill] sm:$0xff] }
 0xd70   :  { %v8724_v33 = vadd.f32 %v3542_v59, %v2855_v3  ;;  %v3546_v38 = vadd.f32 %v3545_v1, %v9537_v58  ;;  %v3564_v40 = vpack.c.bf16 %v8713_v12, %v3556_v61  ;;  %v8733_v52 = vadd.f32 %v3501_v49, %v2856_v57 }
 0xd71   :  { %v8729_v37 = vadd.f32 %v3503_v8, %v2857_v35  ;;  %v3565_v46 = vpack.c.bf16 %v8720_v31, %v3557_v63  ;;  %v3566_v47 = vpack.c.bf16 %v8718_v55, %v3558_v18  ;;  %v8739_v4 = vadd.f32 %v3544_v43, %v2858_v56 }
 0xd72   :  { %v8735_v27 = vadd.f32 %v3546_v38, %v2859_v50  ;;  %v3567_v34 = vpack.c.bf16 %v8724_v33, %v3559_v39  ;;  %v3568_v44 = vpack.c.bf16 %v3560_v11, %v8733_v52 }
 0xd73   :  { %3616 = vmatprep.subr.bf16.mxu0 %v3565_v46  ;;  %v3569_v36 = vpack.c.bf16 %v3561_v20, %v8729_v37  ;;  %v3570_v54 = vpack.c.bf16 %v3562_v16, %v8739_v4 }
 0xd74   :  { %3669 = vmatprep.subr.bf16.mxu1 %v3567_v34  ;;  %3617 = vmatpush1.bf16.msra.mxu0 %v3564_v40  ;;  %v3571_v9 = vpack.c.bf16 %v3563_v48, %v8735_v27 }
 0xd75   :  { %3670 = vmatpush1.bf16.msra.mxu1 %v3566_v47  ;;  %3618 = vmatprep.subr.bf16.mxu0 %v3569_v36 }
 0xd76   :  { %3671 = vmatprep.subr.bf16.mxu1 %v3571_v9 }
 0xd78   :  { %3619 = vmatpush1.bf16.msra.mxu0 %v3568_v44 }
 0xd79   :  { %3672 = vmatpush1.bf16.msra.mxu1 %v3570_v54 }
 0xd7b   :  { %5972 = vmatmul.mubr.msk.bf16.vlgmr.msra.gmra.mrb[100].mxu0 %vm110_vm0, %v6182_v22 }
 0xd7c   :  { %5974 = vmatmul.mubr.msk.bf16.vlgmr.msra.gmra.mrb[100].mxu1 %vm110_vm0, %v6182_v22  ;;  %3658 = vmatprep.mubr.bf16.mxu0 %v9531_v2 }
 0xd7d   :  { %3711 = vmatprep.mubr.bf16.mxu1 %v9531_v2 }
 0xd83   :  { %5973 = vmatmul.mubr.msk.bf16.gmra.mrb[104].mxu0 %vm110_vm0, %v6183_v28 }
 0xd84   :  { %5975 = vmatmul.mubr.msk.bf16.gmra.mrb[104].mxu1 %vm110_vm0, %v6183_v28  ;;  %3918 = vmatprep.mubr.bf16.mxu0 %v9531_v2 }
 0xd85   :  { %3971 = vmatprep.mubr.bf16.mxu1 %v9531_v2 }
 0xe4e   :  { %v3650_v62 = vpop.f32.mrb[100].mxu0 }
 0xe4f   :  { %v8761_v6 = vadd.f32 %v3650_v62, %v9538_v53  ;;  %v3703_v14 = vpop.f32.mrb[100].mxu1  ;;  %v3652_v0 = vpop.f32.mrb[101].mxu0 }
 0xe50   :  { %v8764_v25 = vadd.f32 %v3703_v14, %v9538_v53  ;;  %v8767_v21 = vadd.f32 %v3652_v0, %v9538_v53  ;;  %v3705_v51 = vpop.f32.mrb[101].mxu1  ;;  %v3654_v13 = vpop.f32.mrb[102].mxu0 }
 0xe51   :  { %v5976_v24 = vmul.f32 -1.442695, %v8761_v6  ;;  %v8771_v23 = vadd.f32 %v3705_v51, %v9538_v53  ;;  %v8774_v61 = vadd.f32 %v3654_v13, %v9539_v45  ;;  %v3707_v41 = vpop.f32.mrb[102].mxu1  ;;  %v3656_v19 = vpop.f32.mrb[103].mxu0 }
 0xe52   :  { %v5978_v18 = vmul.f32 -1.442695, %v8764_v25  ;;  %v5977_v42 = vmul.f32 -1.442695, %v8767_v21  ;;  %v8779_v3 = vadd.f32 %v3707_v41, %v9539_v45  ;;  %v8782_v57 = vadd.f32 %v3656_v19, %v9539_v45  ;;  %v3709_v32 = vpop.f32.mrb[103].mxu1 }
 0xe53   :  { %6837 = vpow2.f32 %v5976_v24  ;;  %v5979_v17 = vmul.f32 -1.442695, %v8771_v23  ;;  %v5980_v5 = vmul.f32 -1.442695, %v8774_v61  ;;  %v8787_v7 = vadd.f32 %v3709_v32, %v9539_v45 }
 0xe54   :  { %6839 = vpow2.f32 %v5978_v18  ;;  %v5982_v56 = vmul.f32 -1.442695, %v8779_v3  ;;  %v5981_v35 = vmul.f32 -1.442695, %v8782_v57 }
 0xe55   :  { %6841 = vpow2.f32 %v5977_v42  ;;  %v5983_v50 = vmul.f32 -1.442695, %v8787_v7 }
 0xe56   :  { %6843 = vpow2.f32 %v5979_v17  ;;  %v3660_v29 = vpop.f32.mrb[104].mxu0 }
 0xe57   :  { %6845 = vpow2.f32 %v5980_v5  ;;  %v8793_v10 = vadd.f32 %v3660_v29, %v9540_v60  ;;  %v3713_v15 = vpop.f32.mrb[104].mxu1  ;;  %v3662_v63 = vpop.f32.mrb[105].mxu0 }
 0xe58   :  { %6847 = vpow2.f32 %v5982_v56  ;;  %v8796_v39 = vadd.f32 %v3713_v15, %v9540_v60  ;;  %v8799_v59 = vadd.f32 %v3662_v63, %v9540_v60  ;;  %v3715_v58 = vpop.f32.mrb[105].mxu1  ;;  %v3664_v49 = vpop.f32.mrb[106].mxu0 }
 0xe59   :  { %6849 = vpow2.f32 %v5981_v35  ;;  %v5984_v30 = vmul.f32 -1.442695, %v8793_v10  ;;  %v8803_v20 = vadd.f32 %v3664_v49, %v9541_v26  ;;  %v3717_v43 = vpop.f32.mrb[106].mxu1  ;;  %v3666_v8 = vpop.f32.mrb[107].mxu0  ;;  %v8809_v44 = vadd.f32 %v3715_v58, %v9540_v60 }
 0xe5a   :  { %6851 = vpow2.f32 %v5983_v50  ;;  %v5986_v1 = vmul.f32 -1.442695, %v8796_v39  ;;  %v5985_v38 = vmul.f32 -1.442695, %v8799_v59  ;;  %v3719_v48 = vpop.f32.mrb[107].mxu1  ;;  %v8813_v41 = vadd.f32 %v3717_v43, %v9541_v26 }
 0xe5b   :  { %6853 = vpow2.f32 %v5984_v30  ;;  %v5988_v11 = vmul.f32 -1.442695, %v8803_v20  ;;  %v5987_v13 = vmul.f32 -1.442695, %v8809_v44  ;;  %v8816_v18 = vadd.f32 %v3666_v8, %v9541_v26 }
 0xe5c   :  { %6855 = vpow2.f32 %v5986_v1  ;;  %v8819_v32 = vadd.f32 %v3719_v48, %v9541_v26  ;;  %v5990_v56 = vmul.f32 -1.442695, %v8813_v41 }
 0xe5d   :  { %v6838_v46 = vpop.eup %6837  ;;  %6857 = vpow2.f32 %v5985_v38  ;;  %v5989_v29 = vmul.f32 -1.442695, %v8816_v18 }
 0xe5e   :  { %v6840_v40 = vpop.eup %6839  ;;  %v3770_v34 = vadd.f32 1.0, %v6838_v46  ;;  %6859 = vpow2.f32 %v5988_v11  ;;  %v5991_v15 = vmul.f32 -1.442695, %v8819_v32 }
 0xe5f   :  { %v6842_v47 = vpop.eup %6841  ;;  %v3772_v16 = vadd.f32 1.0, %v6840_v40 }
 0xe60   :  { %v6844_v36 = vpop.eup %6843  ;;  %6861 = vrcp.f32 %v3770_v34  ;;  %v3771_v9 = vadd.f32 1.0, %v6842_v47 }
 0xe61   :  { %v6846_v54 = vpop.eup %6845  ;;  %6863 = vrcp.f32 %v3772_v16  ;;  %v3773_v22 = vadd.f32 1.0, %v6844_v36 }
 0xe62   :  { %v6848_v28 = vpop.eup %6847  ;;  %6865 = vrcp.f32 %v3771_v9  ;;  %v3774_v62 = vadd.f32 1.0, %v6846_v54 }
 0xe63   :  { %v6850_v53 = vpop.eup %6849  ;;  %6867 = vrcp.f32 %v3773_v22  ;;  %v3776_v14 = vadd.f32 1.0, %v6848_v28 }
 0xe64   :  { %v6852_v0 = vpop.eup %6851  ;;  %6869 = vrcp.f32 %v3774_v62  ;;  %v3775_v51 = vadd.f32 1.0, %v6850_v53 }
 0xe65   :  { %v6854_v24 = vpop.eup %6853  ;;  %6871 = vrcp.f32 %v3776_v14  ;;  %v3777_v45 = vadd.f32 1.0, %v6852_v0 }
 0xe66   :  { %6873 = vrcp.f32 %v3775_v51  ;;  %v3778_v19 = vadd.f32 1.0, %v6854_v24  ;;  %v6856_v42 = vpop.eup %6855 }
 0xe67   :  { %6875 = vrcp.f32 %v3777_v45  ;;  %v6858_v17 = vpop.eup %6857  ;;  %v3780_v36 = vadd.f32 1.0, %v6856_v42 }
 0xe68   :  { %6877 = vpow2.f32 %v5987_v13  ;;  %v6860_v5 = vpop.eup %6859  ;;  %v3779_v54 = vadd.f32 1.0, %v6858_v17 }
 0xe69   :  { %6879 = vrcp.f32 %v3778_v19  ;;  %v3782_v50 = vadd.f32 1.0, %v6860_v5 }
 0xe6a   :  { %v6862_v35 = vpop.eup %6861 }
 0xe6b   :  { %v6864_v60 = vpop.eup %6863  ;;  %6881 = vrcp.f32 %v3782_v50  ;;  %v3818_v26 = vmul.f32 %v6862_v35, %v8761_v6 }
 0xe6c   :  { %v6866_v63 = vpop.eup %6865  ;;  %6883 = vpow2.f32 %v5990_v56  ;;  %v3820_v1 = vmul.f32 %v6864_v60, %v8764_v25 }
 0xe6d   :  { %v6868_v58 = vpop.eup %6867  ;;  %6885 = vpow2.f32 %v5989_v29  ;;  %v3819_v11 = vmul.f32 %v6866_v63, %v8767_v21 }
 0xe6e   :  { %v6870_v49 = vpop.eup %6869  ;;  %6887 = vpow2.f32 %v5991_v15  ;;  %v3821_v47 = vmul.f32 %v6868_v58, %v8771_v23  ;;  %v6184_v15 = vld [vmem:[%s9462_s1 + $0x38] sm:$0xff]  }
 0xe6f   :  { %v6872_v30 = vpop.eup %6871  ;;  %v3822_v43 = vmul.f32 %v6870_v49, %v8774_v61  ;;  %6889 = vrcp.f32 %v3780_v36 }
 0xe70   :  { %v6874_v8 = vpop.eup %6873  ;;  %v3824_v38 = vmul.f32 %v6872_v30, %v8779_v3  ;;  %6891 = vrcp.f32 %v3779_v54 }
 0xe71   :  { %v6876_v48 = vpop.eup %6875  ;;  %v3842_v46 = vpack.c.bf16 %v3822_v43, %v3818_v26  ;;  %v3823_v40 = vmul.f32 %v6874_v8, %v8782_v57  ;;  %v9543_v8 = vld [vmem:[#allocation15_spill] sm:$0xff] }
 0xe72   :  { %v6878_v34 = vpop.eup %6877  ;;  %v3844_v16 = vpack.c.bf16 %v3824_v38, %v3820_v1  ;;  %v3825_v6 = vmul.f32 %v6876_v48, %v8787_v7 }
 0xe73   :  { %v3843_v61 = vpack.c.bf16 %v3823_v40, %v3819_v11  ;;  %v6880_v9 = vpop.eup %6879  ;;  %v3781_v25 = vadd.f32 1.0, %v6878_v34 }
 0xe74   :  { %v3845_v22 = vpack.c.bf16 %v3825_v6, %v3821_v47  ;;  %v3826_v28 = vmul.f32 %v6880_v9, %v8793_v10 }
 0xe75   :  { %3886 = vmatprep.subr.bf16.mxu0 %v3843_v61  ;;  %v6882_v3 = vpop.eup %6881  ;;  %6893 = vrcp.f32 %v3781_v25  ;;  %v9544_v25 = vld [vmem:[#allocation18_spill] sm:$0xff] }
 0xe76   :  { %3939 = vmatprep.subr.bf16.mxu1 %v3845_v22  ;;  %3887 = vmatpush1.bf16.msra.mxu0 %v3842_v46  ;;  %v6884_v21 = vpop.eup %6883  ;;  %v3830_v57 = vmul.f32 %v6882_v3, %v8803_v20 }
 0xe77   :  { %3940 = vmatpush1.bf16.msra.mxu1 %v3844_v16  ;;  %v6886_v23 = vpop.eup %6885  ;;  %v3784_v7 = vadd.f32 1.0, %v6884_v21 }
 0xe78   :  { %v6888_v62 = vpop.eup %6887  ;;  %v3846_v53 = vpack.c.bf16 %v3830_v57, %v3826_v28  ;;  %v3783_v14 = vadd.f32 1.0, %v6886_v23 }
 0xe79   :  { %6895 = vrcp.f32 %v3784_v7  ;;  %v3785_v0 = vadd.f32 1.0, %v6888_v62  ;;  %v6890_v51 = vpop.eup %6889 }
 0xe7a   :  { %6897 = vrcp.f32 %v3783_v14  ;;  %v6892_v13 = vpop.eup %6891  ;;  %v3828_v19 = vmul.f32 %v6890_v51, %v8796_v39  ;;  %v6185_v39 = vld [vmem:[%s9462_s1 + $0x40] sm:$0xff]  }
 0xe7b   :  { %6899 = vrcp.f32 %v3785_v0  ;;  %v3827_v17 = vmul.f32 %v6892_v13, %v8799_v59  ;;  %v9545_v14 = vld [vmem:[#allocation17_spill] sm:$0xff] }
 0xe7f   :  { %v6894_v24 = vpop.eup %6893 }
 0xe80   :  { %v3829_v56 = vmul.f32 %v6894_v24, %v8809_v44  ;;  %v9542_v44 = vld [vmem:[#allocation16_spill] sm:$0xff] }
 0xe83   :  { %v6896_v45 = vpop.eup %6895 }
 0xe84   :  { %v6898_v10 = vpop.eup %6897  ;;  %v3832_v20 = vmul.f32 %v6896_v45, %v8813_v41 }
 0xe85   :  { %v6900_v42 = vpop.eup %6899  ;;  %v3831_v5 = vmul.f32 %v6898_v10, %v8816_v18 }
 0xe86   :  { %v3848_v35 = vpack.c.bf16 %v3832_v20, %v3828_v19  ;;  %v3833_v50 = vmul.f32 %v6900_v42, %v8819_v32 }
 0xe87   :  { %v3847_v29 = vpack.c.bf16 %v3831_v5, %v3827_v17 }
 0xe88   :  { %v3849_v60 = vpack.c.bf16 %v3833_v50, %v3829_v56 }
 0xe89   :  { %3888 = vmatprep.subr.bf16.mxu0 %v3847_v29 }
 0xe8a   :  { %3941 = vmatprep.subr.bf16.mxu1 %v3849_v60  ;;  %3889 = vmatpush1.bf16.msra.mxu0 %v3846_v53 }
 0xe8b   :  { %3942 = vmatpush1.bf16.msra.mxu1 %v3848_v35 }
 0xe8d   :  { %5994 = vmatmul.mubr.msk.bf16.vlgmr.msra.gmra.mrb[108].mxu0 %vm110_vm0, %v6184_v15 }
 0xe8e   :  { %5996 = vmatmul.mubr.msk.bf16.vlgmr.msra.gmra.mrb[108].mxu1 %vm110_vm0, %v6184_v15  ;;  %3928 = vmatprep.mubr.bf16.mxu0 %v9531_v2 }
 0xe8f   :  { %3981 = vmatprep.mubr.bf16.mxu1 %v9531_v2 }
 0xe95   :  { %5995 = vmatmul.mubr.msk.bf16.gmra.mrb[112].mxu0 %vm110_vm0, %v6185_v39 }
 0xe96   :  { %5997 = vmatmul.mubr.msk.bf16.gmra.mrb[112].mxu1 %vm110_vm0, %v6185_v39  ;;  %4166 = vmatprep.mubr.bf16.mxu0 %v9531_v2 }
 0xe97   :  { %4209 = vmatprep.mubr.bf16.mxu1 %v9531_v2 }
 0xf60   :  { %v3920_v59 = vpop.f32.mrb[108].mxu0 }
 0xf61   :  { %v8855_v41 = vadd.f32 %v3920_v59, %v9542_v44  ;;  %v3973_v18 = vpop.f32.mrb[108].mxu1  ;;  %v3922_v32 = vpop.f32.mrb[109].mxu0 }
 0xf62   :  { %v8858_v63 = vadd.f32 %v3973_v18, %v9542_v44  ;;  %v8861_v58 = vadd.f32 %v3922_v32, %v9542_v44  ;;  %v3975_v49 = vpop.f32.mrb[109].mxu1  ;;  %v3924_v30 = vpop.f32.mrb[110].mxu0 }
 0xf63   :  { %v5998_v26 = vmul.f32 -1.442695, %v8855_v41  ;;  %v8865_v43 = vadd.f32 %v3975_v49, %v9542_v44  ;;  %v8868_v1 = vadd.f32 %v3924_v30, %v9543_v8  ;;  %v3977_v38 = vpop.f32.mrb[110].mxu1  ;;  %v3926_v48 = vpop.f32.mrb[111].mxu0 }
 0xf64   :  { %v6000_v11 = vmul.f32 -1.442695, %v8858_v63  ;;  %v5999_v46 = vmul.f32 -1.442695, %v8861_v58  ;;  %v8873_v40 = vadd.f32 %v3977_v38, %v9543_v8  ;;  %v8876_v34 = vadd.f32 %v3926_v48, %v9543_v8  ;;  %v3979_v47 = vpop.f32.mrb[111].mxu1 }
 0xf65   :  { %6901 = vpow2.f32 %v5998_v26  ;;  %v6001_v16 = vmul.f32 -1.442695, %v8865_v43  ;;  %v6002_v6 = vmul.f32 -1.442695, %v8868_v1  ;;  %v8881_v36 = vadd.f32 %v3979_v47, %v9543_v8 }
 0xf66   :  { %6903 = vpow2.f32 %v6000_v11  ;;  %v6004_v61 = vmul.f32 -1.442695, %v8873_v40  ;;  %v6003_v9 = vmul.f32 -1.442695, %v8876_v34 }
 0xf67   :  { %6905 = vpow2.f32 %v5999_v46  ;;  %v6005_v54 = vmul.f32 -1.442695, %v8881_v36 }
 0xf68   :  { %6907 = vpow2.f32 %v6001_v16  ;;  %v3930_v22 = vpop.f32.mrb[112].mxu0 }
 0xf69   :  { %6909 = vpow2.f32 %v6002_v6  ;;  %v8887_v3 = vadd.f32 %v3930_v22, %v9544_v25  ;;  %v3983_v21 = vpop.f32.mrb[112].mxu1  ;;  %v3932_v28 = vpop.f32.mrb[113].mxu0 }
 0xf6a   :  { %6911 = vpow2.f32 %v6004_v61  ;;  %v8890_v57 = vadd.f32 %v3983_v21, %v9544_v25  ;;  %v8893_v23 = vadd.f32 %v3932_v28, %v9544_v25  ;;  %v3985_v7 = vpop.f32.mrb[113].mxu1  ;;  %v3934_v62 = vpop.f32.mrb[114].mxu0 }
 0xf6b   :  { %6913 = vpow2.f32 %v6003_v9  ;;  %v6006_v53 = vmul.f32 -1.442695, %v8887_v3  ;;  %v8897_v0 = vadd.f32 %v3934_v62, %v9545_v14  ;;  %v3987_v51 = vpop.f32.mrb[114].mxu1  ;;  %v3936_v13 = vpop.f32.mrb[115].mxu0  ;;  %v8903_v29 = vadd.f32 %v3985_v7, %v9544_v25 }
 0xf6c   :  { %6915 = vpow2.f32 %v6005_v54  ;;  %v6008_v24 = vmul.f32 -1.442695, %v8890_v57  ;;  %v6007_v45 = vmul.f32 -1.442695, %v8893_v23  ;;  %v3989_v10 = vpop.f32.mrb[115].mxu1  ;;  %v8907_v38 = vadd.f32 %v3987_v51, %v9545_v14 }
 0xf6d   :  { %6917 = vpow2.f32 %v6006_v53  ;;  %v6010_v19 = vmul.f32 -1.442695, %v8897_v0  ;;  %v6009_v30 = vmul.f32 -1.442695, %v8903_v29  ;;  %v8910_v11 = vadd.f32 %v3936_v13, %v9545_v14 }
 0xf6e   :  { %6919 = vpow2.f32 %v6008_v24  ;;  %v8913_v47 = vadd.f32 %v3989_v10, %v9545_v14  ;;  %v6012_v61 = vmul.f32 -1.442695, %v8907_v38 }
 0xf6f   :  { %v6902_v20 = vpop.eup %6901  ;;  %6921 = vpow2.f32 %v6007_v45  ;;  %v6011_v22 = vmul.f32 -1.442695, %v8910_v11 }
 0xf70   :  { %v6904_v42 = vpop.eup %6903  ;;  %v4040_v17 = vadd.f32 1.0, %v6902_v20  ;;  %6923 = vpow2.f32 %v6010_v19  ;;  %v6013_v21 = vmul.f32 -1.442695, %v8913_v47 }
 0xf71   :  { %v6906_v5 = vpop.eup %6905  ;;  %v4042_v56 = vadd.f32 1.0, %v6904_v42 }
 0xf72   :  { %v6908_v35 = vpop.eup %6907  ;;  %6925 = vrcp.f32 %v4040_v17  ;;  %v4041_v50 = vadd.f32 1.0, %v6906_v5 }
 0xf73   :  { %v6910_v60 = vpop.eup %6909  ;;  %6927 = vrcp.f32 %v4042_v56  ;;  %v4043_v15 = vadd.f32 1.0, %v6908_v35 }
 0xf74   :  { %v6912_v39 = vpop.eup %6911  ;;  %6929 = vrcp.f32 %v4041_v50  ;;  %v4044_v59 = vadd.f32 1.0, %v6910_v60 }
 0xf75   :  { %v6914_v44 = vpop.eup %6913  ;;  %6931 = vrcp.f32 %v4043_v15  ;;  %v4046_v18 = vadd.f32 1.0, %v6912_v39 }
 0xf76   :  { %v6916_v32 = vpop.eup %6915  ;;  %6933 = vrcp.f32 %v4044_v59  ;;  %v4045_v49 = vadd.f32 1.0, %v6914_v44 }
 0xf77   :  { %v6918_v26 = vpop.eup %6917  ;;  %6935 = vrcp.f32 %v4046_v18  ;;  %v4047_v8 = vadd.f32 1.0, %v6916_v32 }
 0xf78   :  { %6937 = vrcp.f32 %v4045_v49  ;;  %v4048_v48 = vadd.f32 1.0, %v6918_v26  ;;  %v6920_v46 = vpop.eup %6919 }
 0xf79   :  { %6939 = vrcp.f32 %v4047_v8  ;;  %v6922_v16 = vpop.eup %6921  ;;  %v4050_v35 = vadd.f32 1.0, %v6920_v46  ;;  %v8933_v46 = vld [vmem:[%s9461_s0 + $0x30] sm:$0xff] }
 0xf7a   :  { %6941 = vpow2.f32 %v6009_v30  ;;  %v6924_v6 = vpop.eup %6923  ;;  %v4049_v60 = vadd.f32 1.0, %v6922_v16  ;;  %v8938_v16 = vld [vmem:[%s9461_s0 + $0x70] sm:$0xff] }
 0xf7b   :  { %6943 = vrcp.f32 %v4048_v48  ;;  %v4052_v54 = vadd.f32 1.0, %v6924_v6 }
 0xf7c   :  { %v6926_v9 = vpop.eup %6925 }
 0xf7d   :  { %v6928_v25 = vpop.eup %6927  ;;  %6945 = vrcp.f32 %v4052_v54  ;;  %v4088_v14 = vmul.f32 %v6926_v9, %v8855_v41 }
 0xf7e   :  { %v6930_v28 = vpop.eup %6929  ;;  %6947 = vpow2.f32 %v6012_v61  ;;  %v4090_v24 = vmul.f32 %v6928_v25, %v8858_v63 }
 0xf7f   :  { %v6932_v7 = vpop.eup %6931  ;;  %6949 = vpow2.f32 %v6011_v22  ;;  %v4089_v19 = vmul.f32 %v6930_v28, %v8861_v58 }
 0xf80   :  { %v6934_v62 = vpop.eup %6933  ;;  %6951 = vpow2.f32 %v6013_v21  ;;  %v4091_v5 = vmul.f32 %v6932_v7, %v8865_v43  ;;  %v8961_v7 = vld [vmem:[%s9461_s0 + $0xb0] sm:$0xff] }
 0xf81   :  { %v6936_v53 = vpop.eup %6935  ;;  %v4092_v51 = vmul.f32 %v6934_v62, %v8868_v1  ;;  %6953 = vrcp.f32 %v4050_v35  ;;  %v8974_v62 = vld [vmem:[%s9461_s0 + $0xb8] sm:$0xff] }
 0xf82   :  { %v6938_v13 = vpop.eup %6937  ;;  %v4094_v45 = vmul.f32 %v6936_v53, %v8873_v40  ;;  %6955 = vrcp.f32 %v4049_v60  ;;  %v8979_v53 = vld [vmem:[%s9461_s0 + $0xf8] sm:$0xff] }
 0xf83   :  { %v6940_v10 = vpop.eup %6939  ;;  %v4108_v20 = vpack.c.bf16 %v4092_v51, %v4088_v14  ;;  %v4093_v42 = vmul.f32 %v6938_v13, %v8876_v34  ;;  %v6031_v14 = vcombine.low %v8933_v46, %v8938_v16 }
 0xf84   :  { %v6942_v17 = vpop.eup %6941  ;;  %v4110_v56 = vpack.c.bf16 %v4094_v45, %v4090_v24  ;;  %v4095_v41 = vmul.f32 %v6940_v10, %v8881_v36  ;;  %v6038_v24 = vcombine.high %v8974_v62, %v8979_v53  ;;  %v6037_v10 = vcombine.low %v8974_v62, %v8979_v53 }
 0xf85   :  { %v4109_v1 = vpack.c.bf16 %v4093_v42, %v4089_v19  ;;  %v6944_v50 = vpop.eup %6943  ;;  %v4051_v63 = vadd.f32 1.0, %v6942_v17  ;;  %v6187_v19 = vld [vmem:[%s9462_s1] sm:$0xff]   ;;  %v4124_v42 = vpop.permute.xlu1 %4123 }
 0xf86   :  { %v4111_v15 = vpack.c.bf16 %v4095_v41, %v4091_v5  ;;  %v4096_v39 = vmul.f32 %v6944_v50, %v8887_v3  ;;  %v4119_v17 = vpop.permute.xlu0 %4118 }
 0xf87   :  { %4134 = vmatprep.subr.bf16.mxu0 %v4109_v1  ;;  %v6946_v40 = vpop.eup %6945  ;;  %6957 = vrcp.f32 %v4051_v63 }
 0xf88   :  { %4177 = vmatprep.subr.bf16.mxu1 %v4111_v15  ;;  %4135 = vmatpush1.bf16.msra.mxu0 %v4108_v20  ;;  %v6948_v58 = vpop.eup %6947  ;;  %v4100_v34 = vmul.f32 %v6946_v40, %v8897_v0  ;;  %v6188_v20 = vld [vmem:[%s9462_s1 + $0x8] sm:$0xff]  }
 0xf89   :  { %4178 = vmatpush1.bf16.msra.mxu1 %v4110_v56  ;;  %v6950_v43 = vpop.eup %6949  ;;  %v4054_v36 = vadd.f32 1.0, %v6948_v58 }
 0xf8a   :  { %v6952_v59 = vpop.eup %6951  ;;  %v4112_v44 = vpack.c.bf16 %v4100_v34, %v4096_v39  ;;  %v4053_v18 = vadd.f32 1.0, %v6950_v43 }
 0xf8b   :  { %6959 = vrcp.f32 %v4054_v36  ;;  %v4055_v32 = vadd.f32 1.0, %v6952_v59  ;;  %v6954_v49 = vpop.eup %6953 }
 0xf8c   :  { %6961 = vrcp.f32 %v4053_v18  ;;  %v6956_v30 = vpop.eup %6955  ;;  %v4098_v48 = vmul.f32 %v6954_v49, %v8890_v57  ;;  %v8945_v57 = vld [vmem:[%s9461_s0 + $0x38] sm:$0xff] }
 0xf8d   :  { %6963 = vrcp.f32 %v4055_v32  ;;  %v4097_v61 = vmul.f32 %v6956_v30, %v8893_v23  ;;  %v6032_v23 = vcombine.high %v8933_v46, %v8938_v16 }
 0xf91   :  { %v6958_v26 = vpop.eup %6957 }
 0xf92   :  { %v4099_v54 = vmul.f32 %v6958_v26, %v8903_v29  ;;  %v8966_v29 = vld [vmem:[%s9461_s0 + $0xf0] sm:$0xff] }
 0xf93   :  { %v6036_v13 = vcombine.high %v8961_v7, %v8966_v29  ;;  %v6035_v45 = vcombine.low %v8961_v7, %v8966_v29 }
 0xf95   :  { %v6960_v8 = vpop.eup %6959 }
 0xf96   :  { %v6962_v3 = vpop.eup %6961  ;;  %v4102_v0 = vmul.f32 %v6960_v8, %v8907_v38  ;;  %v8950_v38 = vld [vmem:[%s9461_s0 + $0x78] sm:$0xff] }
 0xf97   :  { %v6964_v6 = vpop.eup %6963  ;;  %v4101_v9 = vmul.f32 %v6962_v3, %v8910_v11  ;;  %v6034_v28 = vcombine.high %v8945_v57, %v8950_v38  ;;  %v6033_v51 = vcombine.low %v8945_v57, %v8950_v38 }
 0xf98   :  { %v4114_v22 = vpack.c.bf16 %v4102_v0, %v4098_v48  ;;  %v4103_v25 = vmul.f32 %v6964_v6, %v8913_v47  ;;  %v6186_v47 = vld [vmem:[%s9462_s1 + $0x48] sm:$0xff]   ;;  %v9546_v6 = vld [vmem:[#allocation20_spill] sm:$0xff] }
 0xf99   :  { %v4113_v21 = vpack.c.bf16 %v4101_v9, %v4097_v61 }
 0xf9a   :  { %v4115_v11 = vpack.c.bf16 %v4103_v25, %v4099_v54  ;;  %v9547_v25 = vld [vmem:[#allocation19_spill] sm:$0xff] }
 0xf9b   :  { %4136 = vmatprep.subr.bf16.mxu0 %v4113_v21 }
 0xf9c   :  { %4179 = vmatprep.subr.bf16.mxu1 %v4115_v11  ;;  %4137 = vmatpush1.bf16.msra.mxu0 %v4112_v44 }
 0xf9d   :  { %4180 = vmatpush1.bf16.msra.mxu1 %v4114_v22  ;;  %4358 = vmatprep.subr.bf16.mxu0 %v6032_v23 }
 0xf9e   :  { %4411 = vmatprep.subr.bf16.mxu1 %v6034_v28 }
 0xf9f   :  { %6015 = vmatmul.mubr.msk.bf16.vlgmr.msra.gmra.mrb[116].mxu0 %vm110_vm0, %v6186_v47 }
 0xfa0   :  { %6016 = vmatmul.mubr.msk.bf16.vlgmr.msra.gmra.mrb[116].mxu1 %vm110_vm0, %v6186_v47  ;;  %4359 = vmatpush1.bf16.msra.mxu0 %v6031_v14 }
 0xfa1   :  { %4412 = vmatpush1.bf16.msra.mxu1 %v6033_v51  ;;  %4360 = vmatprep.subr.bf16.mxu0 %v6036_v13 }
 0xfa2   :  { %4413 = vmatprep.subr.bf16.mxu1 %v6038_v24  ;;  %4390 = vmatprep.mubr.bf16.mxu0 %v9531_v2 }
 0xfa3   :  { %4443 = vmatprep.mubr.bf16.mxu1 %v9531_v2 }
 0xfa4   :  { %4361 = vmatpush1.bf16.msra.mxu0 %v6035_v45 }
 0xfa5   :  { %4414 = vmatpush1.bf16.msra.mxu1 %v6037_v10 }
 0xfa7   :  { %6039 = vmatmul.mubr.msk.bf16.vlgmr.msra.gmra.mrb[120].mxu0 %vm110_vm0, %v6187_v19 }
 0xfa8   :  { %6041 = vmatmul.mubr.msk.bf16.vlgmr.msra.gmra.mrb[120].mxu1 %vm110_vm0, %v6187_v19  ;;  %4400 = vmatprep.mubr.bf16.mxu0 %v9531_v2 }
 0xfa9   :  { %4453 = vmatprep.mubr.bf16.mxu1 %v9531_v2 }
 0xfaf   :  { %6040 = vmatmul.mubr.msk.bf16.gmra.mrb[124].mxu0 %vm110_vm0, %v6188_v20 }
 0xfb0   :  { %6042 = vmatmul.mubr.msk.bf16.gmra.mrb[124].mxu1 %vm110_vm0, %v6188_v20  ;;  %4660 = vmatprep.mubr.bf16.mxu0 %v9531_v2 }
 0xfb1   :  { %4713 = vmatprep.mubr.bf16.mxu1 %v9531_v2 }
0x1072   :  { %v4168_v5 = vpop.f32.mrb[116].mxu0 }
0x1073   :  { %v4169_v56 = vadd.f32 %v4168_v5, %v4119_v17  ;;  %v4211_v41 = vpop.f32.mrb[116].mxu1  ;;  %v4170_v35 = vpop.f32.mrb[117].mxu0  ;;  %v9548_v5 = vld [vmem:[#allocation22_spill] sm:$0xff] }
0x1074   :  { %v4212_v1 = vadd.f32 %v4211_v41, %v4119_v17  ;;  %v4171_v50 = vadd.f32 %v4170_v35, %v4119_v17  ;;  %v4213_v60 = vpop.f32.mrb[117].mxu1  ;;  %v4172_v15 = vpop.f32.mrb[118].mxu0 }
0x1075   :  { %v4220_v63 = vadd.f32 %v4169_v56, %v8713_v12  ;;  %v4214_v40 = vadd.f32 %v4213_v60, %v4119_v17  ;;  %v4173_v58 = vadd.f32 %v4172_v15, %v4124_v42  ;;  %v4215_v39 = vpop.f32.mrb[118].mxu1  ;;  %v4174_v34 = vpop.f32.mrb[119].mxu0 }
0x1076   :  { %v4222_v43 = vadd.f32 %v4212_v1, %v8718_v55  ;;  %v4221_v36 = vadd.f32 %v4171_v50, %v8720_v31  ;;  %v4216_v59 = vadd.f32 %v4215_v39, %v4124_v42  ;;  %v4175_v44 = vadd.f32 %v4174_v34, %v4124_v42  ;;  %v4217_v18 = vpop.f32.mrb[119].mxu1 }
0x1077   :  { %v4223_v32 = vadd.f32 %v4214_v40, %v8724_v33  ;;  %v4224_v49 = vadd.f32 %v4173_v58, %v8733_v52  ;;  %v4218_v30 = vadd.f32 %v4217_v18, %v4124_v42  ;;  %v9549_v40 = vld [vmem:[#allocation21_spill] sm:$0xff] }
0x1078   :  { %v6143_v26 = vpack.c.bf16 %v4221_v36, %v4220_v63  ;;  %v4226_v8 = vadd.f32 %v4216_v59, %v8739_v4  ;;  %v4225_v12 = vadd.f32 %v4175_v44, %v8729_v37 }
0x1079   :  { %v6144_v3 = vpack.c.bf16 %v4223_v32, %v4222_v43  ;;  %v4227_v48 = vadd.f32 %v4218_v30, %v8735_v27 }
0x107a   :  { %4253 = vst [vmem:[#allocation2 + $0x20] sm:$0xff] %v6143_v26  ;;  %v6145_v55 = vpack.c.bf16 %v4225_v12, %v4224_v49  ;;  %v4392_v0 = vpop.f32.mrb[120].mxu0 }
0x107b   :  { %4254 = vst [vmem:[#allocation2 + $0x28] sm:$0xff] %v6144_v3  ;;  %v6146_v31 = vpack.c.bf16 %v4227_v48, %v4226_v8  ;;  %v9020_v61 = vadd.f32 %v4392_v0, %v9546_v6  ;;  %v4445_v33 = vpop.f32.mrb[120].mxu1  ;;  %v4394_v9 = vpop.f32.mrb[121].mxu0 }
0x107c   :  { %4255 = vst [vmem:[#allocation2 + $0x60] sm:$0xff] %v6145_v55  ;;  %v9023_v52 = vadd.f32 %v4445_v33, %v9546_v6  ;;  %v9026_v4 = vadd.f32 %v4394_v9, %v9546_v6  ;;  %v4447_v37 = vpop.f32.mrb[121].mxu1  ;;  %v4396_v54 = vpop.f32.mrb[122].mxu0 }
0x107d   :  { %4256 = vst [vmem:[#allocation2 + $0x68] sm:$0xff] %v6146_v31  ;;  %v6043_v27 = vmul.f32 -1.442695, %v9020_v61  ;;  %v9030_v22 = vadd.f32 %v4447_v37, %v9546_v6  ;;  %v9033_v21 = vadd.f32 %v4396_v54, %v9547_v25  ;;  %v4449_v23 = vpop.f32.mrb[122].mxu1  ;;  %v4398_v11 = vpop.f32.mrb[123].mxu0 }
0x107e   :  { %v6045_v28 = vmul.f32 -1.442695, %v9023_v52  ;;  %v6044_v47 = vmul.f32 -1.442695, %v9026_v4  ;;  %v9038_v14 = vadd.f32 %v4449_v23, %v9547_v25  ;;  %v9041_v51 = vadd.f32 %v4398_v11, %v9547_v25  ;;  %v4451_v13 = vpop.f32.mrb[123].mxu1 }
0x107f   :  { %6965 = vpow2.f32 %v6043_v27  ;;  %v6046_v24 = vmul.f32 -1.442695, %v9030_v22  ;;  %v6047_v45 = vmul.f32 -1.442695, %v9033_v21  ;;  %v9046_v10 = vadd.f32 %v4451_v13, %v9547_v25 }
0x1080   :  { %6967 = vpow2.f32 %v6045_v28  ;;  %v6049_v19 = vmul.f32 -1.442695, %v9038_v14  ;;  %v6048_v20 = vmul.f32 -1.442695, %v9041_v51 }
0x1081   :  { %6969 = vpow2.f32 %v6044_v47  ;;  %v6050_v42 = vmul.f32 -1.442695, %v9046_v10 }
0x1082   :  { %6971 = vpow2.f32 %v6046_v24  ;;  %v4402_v17 = vpop.f32.mrb[124].mxu0 }
0x1083   :  { %6973 = vpow2.f32 %v6047_v45  ;;  %v9052_v56 = vadd.f32 %v4402_v17, %v9548_v5  ;;  %v4455_v41 = vpop.f32.mrb[124].mxu1  ;;  %v4404_v35 = vpop.f32.mrb[125].mxu0 }
0x1084   :  { %6975 = vpow2.f32 %v6049_v19  ;;  %v9055_v1 = vadd.f32 %v4455_v41, %v9548_v5  ;;  %v9058_v50 = vadd.f32 %v4404_v35, %v9548_v5  ;;  %v4457_v60 = vpop.f32.mrb[125].mxu1  ;;  %v4406_v15 = vpop.f32.mrb[126].mxu0 }
0x1085   :  { %6977 = vpow2.f32 %v6048_v20  ;;  %v6051_v63 = vmul.f32 -1.442695, %v9052_v56  ;;  %v9062_v58 = vadd.f32 %v4406_v15, %v9549_v40  ;;  %v4459_v39 = vpop.f32.mrb[126].mxu1  ;;  %v4408_v34 = vpop.f32.mrb[127].mxu0  ;;  %v9068_v3 = vadd.f32 %v4457_v60, %v9548_v5 }
0x1086   :  { %6979 = vpow2.f32 %v6050_v42  ;;  %v6053_v43 = vmul.f32 -1.442695, %v9055_v1  ;;  %v6052_v36 = vmul.f32 -1.442695, %v9058_v50  ;;  %v4461_v59 = vpop.f32.mrb[127].mxu1  ;;  %v9072_v23 = vadd.f32 %v4459_v39, %v9549_v40 }
0x1087   :  { %6981 = vpow2.f32 %v6051_v63  ;;  %v6055_v44 = vmul.f32 -1.442695, %v9062_v58  ;;  %v6054_v54 = vmul.f32 -1.442695, %v9068_v3  ;;  %v9075_v28 = vadd.f32 %v4408_v34, %v9549_v40 }
0x1088   :  { %6983 = vpow2.f32 %v6053_v43  ;;  %v9078_v13 = vadd.f32 %v4461_v59, %v9549_v40  ;;  %v6057_v19 = vmul.f32 -1.442695, %v9072_v23 }
0x1089   :  { %v6966_v18 = vpop.eup %6965  ;;  %6985 = vpow2.f32 %v6052_v36  ;;  %v6056_v17 = vmul.f32 -1.442695, %v9075_v28 }
0x108a   :  { %v6968_v32 = vpop.eup %6967  ;;  %v4512_v49 = vadd.f32 1.0, %v6966_v18  ;;  %6987 = vpow2.f32 %v6055_v44  ;;  %v6058_v41 = vmul.f32 -1.442695, %v9078_v13 }
0x108b   :  { %v6970_v30 = vpop.eup %6969  ;;  %v4514_v26 = vadd.f32 1.0, %v6968_v32 }
0x108c   :  { %v6972_v8 = vpop.eup %6971  ;;  %6989 = vrcp.f32 %v4512_v49  ;;  %v4513_v12 = vadd.f32 1.0, %v6970_v30 }
0x108d   :  { %v6974_v48 = vpop.eup %6973  ;;  %6991 = vrcp.f32 %v4514_v26  ;;  %v4515_v55 = vadd.f32 1.0, %v6972_v8 }
0x108e   :  { %v6976_v0 = vpop.eup %6975  ;;  %6993 = vrcp.f32 %v4513_v12  ;;  %v4516_v31 = vadd.f32 1.0, %v6974_v48 }
0x108f   :  { %v6978_v6 = vpop.eup %6977  ;;  %6995 = vrcp.f32 %v4515_v55  ;;  %v4518_v33 = vadd.f32 1.0, %v6976_v0 }
0x1090   :  { %v6980_v9 = vpop.eup %6979  ;;  %6997 = vrcp.f32 %v4516_v31  ;;  %v4517_v37 = vadd.f32 1.0, %v6978_v6 }
0x1091   :  { %v6982_v27 = vpop.eup %6981  ;;  %6999 = vrcp.f32 %v4518_v33  ;;  %v4519_v25 = vadd.f32 1.0, %v6980_v9 }
0x1092   :  { %7001 = vrcp.f32 %v4517_v37  ;;  %v4520_v11 = vadd.f32 1.0, %v6982_v27  ;;  %v6984_v47 = vpop.eup %6983 }
0x1093   :  { %7003 = vrcp.f32 %v4519_v25  ;;  %v6986_v24 = vpop.eup %6985  ;;  %v4522_v8 = vadd.f32 1.0, %v6984_v47 }
0x1094   :  { %7005 = vpow2.f32 %v6054_v54  ;;  %v6988_v45 = vpop.eup %6987  ;;  %v4521_v48 = vadd.f32 1.0, %v6986_v24 }
0x1095   :  { %7007 = vrcp.f32 %v4520_v11  ;;  %v4524_v42 = vadd.f32 1.0, %v6988_v45 }
0x1096   :  { %v6990_v20 = vpop.eup %6989 }
0x1097   :  { %v6992_v5 = vpop.eup %6991  ;;  %7009 = vrcp.f32 %v4524_v42  ;;  %v4560_v40 = vmul.f32 %v6990_v20, %v9020_v61 }
0x1098   :  { %v6994_v35 = vpop.eup %6993  ;;  %7011 = vpow2.f32 %v6057_v19  ;;  %v4562_v43 = vmul.f32 %v6992_v5, %v9023_v52 }
0x1099   :  { %v6996_v60 = vpop.eup %6995  ;;  %7013 = vpow2.f32 %v6056_v17  ;;  %v4561_v44 = vmul.f32 %v6994_v35, %v9026_v4 }
0x109a   :  { %v6998_v15 = vpop.eup %6997  ;;  %7015 = vpow2.f32 %v6058_v41  ;;  %v4563_v30 = vmul.f32 %v6996_v60, %v9030_v22  ;;  %v6189_v41 = vld [vmem:[%s9462_s1 + $0x10] sm:$0xff]  }
0x109b   :  { %v7000_v63 = vpop.eup %6999  ;;  %v4564_v39 = vmul.f32 %v6998_v15, %v9033_v21  ;;  %7017 = vrcp.f32 %v4522_v8 }
0x109c   :  { %v7002_v34 = vpop.eup %7001  ;;  %v4566_v36 = vmul.f32 %v7000_v63, %v9038_v14  ;;  %7019 = vrcp.f32 %v4521_v48 }
0x109d   :  { %v7004_v59 = vpop.eup %7003  ;;  %v4584_v18 = vpack.c.bf16 %v4564_v39, %v4560_v40  ;;  %v4565_v32 = vmul.f32 %v7002_v34, %v9041_v51  ;;  %v9551_v34 = vld [vmem:[#allocation23_spill] sm:$0xff] }
0x109e   :  { %v7006_v49 = vpop.eup %7005  ;;  %v4586_v26 = vpack.c.bf16 %v4566_v36, %v4562_v43  ;;  %v4567_v61 = vmul.f32 %v7004_v59, %v9046_v10 }
0x109f   :  { %v4585_v21 = vpack.c.bf16 %v4565_v32, %v4561_v44  ;;  %v7008_v12 = vpop.eup %7007  ;;  %v4523_v52 = vadd.f32 1.0, %v7006_v49 }
0x10a0   :  { %v4587_v55 = vpack.c.bf16 %v4567_v61, %v4563_v30  ;;  %v4568_v0 = vmul.f32 %v7008_v12, %v9052_v56 }
0x10a1   :  { %4628 = vmatprep.subr.bf16.mxu0 %v4585_v21  ;;  %v7010_v14 = vpop.eup %7009  ;;  %7021 = vrcp.f32 %v4523_v52  ;;  %v9552_v52 = vld [vmem:[#allocation26_spill] sm:$0xff] }
0x10a2   :  { %4681 = vmatprep.subr.bf16.mxu1 %v4587_v55  ;;  %4629 = vmatpush1.bf16.msra.mxu0 %v4584_v18  ;;  %v7012_v4 = vpop.eup %7011  ;;  %v4572_v51 = vmul.f32 %v7010_v14, %v9062_v58 }
0x10a3   :  { %4682 = vmatpush1.bf16.msra.mxu1 %v4586_v26  ;;  %v7014_v22 = vpop.eup %7013  ;;  %v4526_v10 = vadd.f32 1.0, %v7012_v4 }
0x10a4   :  { %v7016_v31 = vpop.eup %7015  ;;  %v4588_v6 = vpack.c.bf16 %v4572_v51, %v4568_v0  ;;  %v4525_v33 = vadd.f32 1.0, %v7014_v22 }
0x10a5   :  { %7023 = vrcp.f32 %v4526_v10  ;;  %v4527_v9 = vadd.f32 1.0, %v7016_v31  ;;  %v7018_v37 = vpop.eup %7017 }
0x10a6   :  { %7025 = vrcp.f32 %v4525_v33  ;;  %v7020_v54 = vpop.eup %7019  ;;  %v4570_v11 = vmul.f32 %v7018_v37, %v9055_v1  ;;  %v6190_v1 = vld [vmem:[%s9462_s1 + $0x18] sm:$0xff]   ;;  %v9553_v33 = vld [vmem:[#allocation25_spill] sm:$0xff] }
0x10a7   :  { %7027 = vrcp.f32 %v4527_v9  ;;  %v4569_v24 = vmul.f32 %v7020_v54, %v9058_v50 }
0x10ab   :  { %v7022_v27 = vpop.eup %7021 }
0x10ac   :  { %v4571_v19 = vmul.f32 %v7022_v27, %v9068_v3  ;;  %v9550_v3 = vld [vmem:[#allocation24_spill] sm:$0xff] }
0x10af   :  { %v7024_v25 = vpop.eup %7023 }
0x10b0   :  { %v7026_v56 = vpop.eup %7025  ;;  %v4574_v58 = vmul.f32 %v7024_v25, %v9072_v23 }
0x10b1   :  { %v7028_v47 = vpop.eup %7027  ;;  %v4573_v45 = vmul.f32 %v7026_v56, %v9075_v28 }
0x10b2   :  { %v4590_v20 = vpack.c.bf16 %v4574_v58, %v4570_v11  ;;  %v4575_v42 = vmul.f32 %v7028_v47, %v9078_v13 }
0x10b3   :  { %v4589_v17 = vpack.c.bf16 %v4573_v45, %v4569_v24 }
0x10b4   :  { %v4591_v5 = vpack.c.bf16 %v4575_v42, %v4571_v19 }
0x10b5   :  { %4630 = vmatprep.subr.bf16.mxu0 %v4589_v17 }
0x10b6   :  { %4683 = vmatprep.subr.bf16.mxu1 %v4591_v5  ;;  %4631 = vmatpush1.bf16.msra.mxu0 %v4588_v6 }
0x10b7   :  { %4684 = vmatpush1.bf16.msra.mxu1 %v4590_v20 }
0x10b9   :  { %6061 = vmatmul.mubr.msk.bf16.vlgmr.msra.gmra.mrb[128].mxu0 %vm110_vm0, %v6189_v41 }
0x10ba   :  { %6063 = vmatmul.mubr.msk.bf16.vlgmr.msra.gmra.mrb[128].mxu1 %vm110_vm0, %v6189_v41  ;;  %4670 = vmatprep.mubr.bf16.mxu0 %v9531_v2 }
0x10bb   :  { %4723 = vmatprep.mubr.bf16.mxu1 %v9531_v2 }
0x10c1   :  { %6062 = vmatmul.mubr.msk.bf16.gmra.mrb[132].mxu0 %vm110_vm0, %v6190_v1 }
0x10c2   :  { %6064 = vmatmul.mubr.msk.bf16.gmra.mrb[132].mxu1 %vm110_vm0, %v6190_v1  ;;  %4908 = vmatprep.mubr.bf16.mxu0 %v9531_v2 }
0x10c3   :  { %4951 = vmatprep.mubr.bf16.mxu1 %v9531_v2 }
0x118c   :  { %v4662_v50 = vpop.f32.mrb[128].mxu0 }
0x118d   :  { %v9114_v23 = vadd.f32 %v4662_v50, %v9550_v3  ;;  %v4715_v28 = vpop.f32.mrb[128].mxu1  ;;  %v4664_v13 = vpop.f32.mrb[129].mxu0 }
0x118e   :  { %v9117_v35 = vadd.f32 %v4715_v28, %v9550_v3  ;;  %v9120_v60 = vadd.f32 %v4664_v13, %v9550_v3  ;;  %v4717_v15 = vpop.f32.mrb[129].mxu1  ;;  %v4666_v63 = vpop.f32.mrb[130].mxu0 }
0x118f   :  { %v6065_v40 = vmul.f32 -1.442695, %v9114_v23  ;;  %v9124_v39 = vadd.f32 %v4717_v15, %v9550_v3  ;;  %v9127_v43 = vadd.f32 %v4666_v63, %v9551_v34  ;;  %v4719_v36 = vpop.f32.mrb[130].mxu1  ;;  %v4668_v59 = vpop.f32.mrb[131].mxu0 }
0x1190   :  { %v6067_v44 = vmul.f32 -1.442695, %v9117_v35  ;;  %v6066_v18 = vmul.f32 -1.442695, %v9120_v60  ;;  %v9132_v32 = vadd.f32 %v4719_v36, %v9551_v34  ;;  %v9135_v49 = vadd.f32 %v4668_v59, %v9551_v34  ;;  %v4721_v30 = vpop.f32.mrb[131].mxu1 }
0x1191   :  { %7029 = vpow2.f32 %v6065_v40  ;;  %v6068_v26 = vmul.f32 -1.442695, %v9124_v39  ;;  %v6069_v61 = vmul.f32 -1.442695, %v9127_v43  ;;  %v9140_v8 = vadd.f32 %v4721_v30, %v9551_v34 }
0x1192   :  { %7031 = vpow2.f32 %v6067_v44  ;;  %v6071_v21 = vmul.f32 -1.442695, %v9132_v32  ;;  %v6070_v12 = vmul.f32 -1.442695, %v9135_v49 }
0x1193   :  { %7033 = vpow2.f32 %v6066_v18  ;;  %v6072_v48 = vmul.f32 -1.442695, %v9140_v8 }
0x1194   :  { %7035 = vpow2.f32 %v6068_v26  ;;  %v4672_v55 = vpop.f32.mrb[132].mxu0 }
0x1195   :  { %7037 = vpow2.f32 %v6069_v61  ;;  %v9146_v14 = vadd.f32 %v4672_v55, %v9552_v52  ;;  %v4725_v4 = vpop.f32.mrb[132].mxu1  ;;  %v4674_v0 = vpop.f32.mrb[133].mxu0 }
0x1196   :  { %7039 = vpow2.f32 %v6071_v21  ;;  %v9149_v51 = vadd.f32 %v4725_v4, %v9552_v52  ;;  %v9152_v22 = vadd.f32 %v4674_v0, %v9552_v52  ;;  %v4727_v10 = vpop.f32.mrb[133].mxu1  ;;  %v4676_v31 = vpop.f32.mrb[134].mxu0 }
0x1197   :  { %7041 = vpow2.f32 %v6070_v12  ;;  %v6073_v6 = vmul.f32 -1.442695, %v9146_v14  ;;  %v9156_v9 = vadd.f32 %v4676_v31, %v9553_v33  ;;  %v4729_v37 = vpop.f32.mrb[134].mxu1  ;;  %v4678_v54 = vpop.f32.mrb[135].mxu0  ;;  %v9162_v17 = vadd.f32 %v4727_v10, %v9552_v52 }
0x1198   :  { %7043 = vpow2.f32 %v6072_v48  ;;  %v6075_v27 = vmul.f32 -1.442695, %v9149_v51  ;;  %v6074_v25 = vmul.f32 -1.442695, %v9152_v22  ;;  %v4731_v56 = vpop.f32.mrb[135].mxu1  ;;  %v9166_v36 = vadd.f32 %v4729_v37, %v9553_v33 }
0x1199   :  { %7045 = vpow2.f32 %v6073_v6  ;;  %v6077_v11 = vmul.f32 -1.442695, %v9156_v9  ;;  %v6076_v63 = vmul.f32 -1.442695, %v9162_v17  ;;  %v9169_v44 = vadd.f32 %v4678_v54, %v9553_v33 }
0x119a   :  { %7047 = vpow2.f32 %v6075_v27  ;;  %v9172_v30 = vadd.f32 %v4731_v56, %v9553_v33  ;;  %v6079_v21 = vmul.f32 -1.442695, %v9166_v36 }
0x119b   :  { %v7030_v58 = vpop.eup %7029  ;;  %7049 = vpow2.f32 %v6074_v25  ;;  %v6078_v55 = vmul.f32 -1.442695, %v9169_v44 }
0x119c   :  { %v7032_v47 = vpop.eup %7031  ;;  %v4782_v24 = vadd.f32 1.0, %v7030_v58  ;;  %7051 = vpow2.f32 %v6077_v11  ;;  %v6080_v4 = vmul.f32 -1.442695, %v9172_v30 }
0x119d   :  { %v7034_v45 = vpop.eup %7033  ;;  %v4784_v19 = vadd.f32 1.0, %v7032_v47 }
0x119e   :  { %v7036_v20 = vpop.eup %7035  ;;  %7053 = vrcp.f32 %v4782_v24  ;;  %v4783_v42 = vadd.f32 1.0, %v7034_v45 }
0x119f   :  { %v7038_v5 = vpop.eup %7037  ;;  %7055 = vrcp.f32 %v4784_v19  ;;  %v4785_v41 = vadd.f32 1.0, %v7036_v20 }
0x11a0   :  { %v7040_v1 = vpop.eup %7039  ;;  %7057 = vrcp.f32 %v4783_v42  ;;  %v4786_v50 = vadd.f32 1.0, %v7038_v5 }
0x11a1   :  { %v7042_v3 = vpop.eup %7041  ;;  %7059 = vrcp.f32 %v4785_v41  ;;  %v4788_v28 = vadd.f32 1.0, %v7040_v1 }
0x11a2   :  { %v7044_v13 = vpop.eup %7043  ;;  %7061 = vrcp.f32 %v4786_v50  ;;  %v4787_v15 = vadd.f32 1.0, %v7042_v3 }
0x11a3   :  { %v7046_v40 = vpop.eup %7045  ;;  %7063 = vrcp.f32 %v4788_v28  ;;  %v4789_v34 = vadd.f32 1.0, %v7044_v13 }
0x11a4   :  { %7065 = vrcp.f32 %v4787_v15  ;;  %v4790_v59 = vadd.f32 1.0, %v7046_v40  ;;  %v7048_v18 = vpop.eup %7047 }
0x11a5   :  { %7067 = vrcp.f32 %v4789_v34  ;;  %v7050_v26 = vpop.eup %7049  ;;  %v4792_v20 = vadd.f32 1.0, %v7048_v18 }
0x11a6   :  { %7069 = vpow2.f32 %v6076_v63  ;;  %v7052_v61 = vpop.eup %7051  ;;  %v4791_v5 = vadd.f32 1.0, %v7050_v26 }
0x11a7   :  { %7071 = vrcp.f32 %v4790_v59  ;;  %v4794_v48 = vadd.f32 1.0, %v7052_v61 }
0x11a8   :  { %v7054_v12 = vpop.eup %7053 }
0x11a9   :  { %v7056_v52 = vpop.eup %7055  ;;  %7073 = vrcp.f32 %v4794_v48  ;;  %v4830_v33 = vmul.f32 %v7054_v12, %v9114_v23 }
0x11aa   :  { %v7058_v0 = vpop.eup %7057  ;;  %7075 = vpow2.f32 %v6079_v21  ;;  %v4832_v27 = vmul.f32 %v7056_v52, %v9117_v35 }
0x11ab   :  { %v7060_v10 = vpop.eup %7059  ;;  %7077 = vpow2.f32 %v6078_v55  ;;  %v4831_v11 = vmul.f32 %v7058_v0, %v9120_v60  ;;  %v4269_v0 = vunpack.c.h.bf16 %v8950_v38 }
0x11ac   :  { %v7062_v31 = vpop.eup %7061  ;;  %7079 = vpow2.f32 %v6080_v4  ;;  %v4833_v45 = vmul.f32 %v7060_v10, %v9124_v39  ;;  %v6191_v4 = vld [vmem:[%s9462_s1 + $0x20] sm:$0xff]   ;;  %v4270_v10 = vunpack.c.l.bf16 %v8961_v7 }
0x11ad   :  { %v7064_v6 = vpop.eup %7063  ;;  %v4834_v37 = vmul.f32 %v7062_v31, %v9127_v43  ;;  %7081 = vrcp.f32 %v4792_v20  ;;  %v9554_v31 = vld [vmem:[#allocation28_spill] sm:$0xff] }
0x11ae   :  { %v7066_v54 = vpop.eup %7065  ;;  %v4836_v25 = vmul.f32 %v7064_v6, %v9132_v32  ;;  %7083 = vrcp.f32 %v4791_v5 }
0x11af   :  { %v7068_v56 = vpop.eup %7067  ;;  %v4850_v58 = vpack.c.bf16 %v4834_v37, %v4830_v33  ;;  %v4835_v47 = vmul.f32 %v7066_v54, %v9135_v49  ;;  %v4272_v54 = vunpack.c.l.bf16 %v8974_v62 }
0x11b0   :  { %v7070_v24 = vpop.eup %7069  ;;  %v4852_v19 = vpack.c.bf16 %v4836_v25, %v4832_v27  ;;  %v4837_v23 = vmul.f32 %v7068_v56, %v9140_v8  ;;  %v4271_v27 = vunpack.c.h.bf16 %v8961_v7  ;;  %v4273_v25 = vunpack.c.h.bf16 %v8974_v62 }
0x11b1   :  { %v4851_v43 = vpack.c.bf16 %v4835_v47, %v4831_v11  ;;  %v7072_v42 = vpop.eup %7071  ;;  %v4793_v35 = vadd.f32 1.0, %v7070_v24  ;;  %v4973_v47 = vunpack.c.h.bf16 %v8945_v57  ;;  %v4975_v62 = vunpack.c.h.bf16 %v8966_v29 }
0x11b2   :  { %v4853_v41 = vpack.c.bf16 %v4837_v23, %v4833_v45  ;;  %v4838_v1 = vmul.f32 %v7072_v42, %v9146_v14 }
0x11b3   :  { %4876 = vmatprep.subr.bf16.mxu0 %v4851_v43  ;;  %v7074_v32 = vpop.eup %7073  ;;  %7085 = vrcp.f32 %v4793_v35 }
0x11b4   :  { %4919 = vmatprep.subr.bf16.mxu1 %v4853_v41  ;;  %4877 = vmatpush1.bf16.msra.mxu0 %v4850_v58  ;;  %v7076_v60 = vpop.eup %7075  ;;  %v4842_v49 = vmul.f32 %v7074_v32, %v9156_v9  ;;  %v4977_v32 = vunpack.c.h.bf16 %v8979_v53 }
0x11b5   :  { %4920 = vmatpush1.bf16.msra.mxu1 %v4852_v19  ;;  %v7078_v39 = vpop.eup %7077  ;;  %v4796_v8 = vadd.f32 1.0, %v7076_v60  ;;  %v9555_v19 = vld [vmem:[#allocation27_spill] sm:$0xff]  ;;  %v4974_v60 = vunpack.c.l.bf16 %v8966_v29 }
0x11b6   :  { %v7080_v50 = vpop.eup %7079  ;;  %v4854_v3 = vpack.c.bf16 %v4842_v49, %v4838_v1  ;;  %v4795_v28 = vadd.f32 1.0, %v7078_v39 }
0x11b7   :  { %7087 = vrcp.f32 %v4796_v8  ;;  %v4797_v13 = vadd.f32 1.0, %v7080_v50  ;;  %v7082_v15 = vpop.eup %7081 }
0x11b8   :  { %7089 = vrcp.f32 %v4795_v28  ;;  %v7084_v63 = vpop.eup %7083  ;;  %v4840_v59 = vmul.f32 %v7082_v15, %v9149_v51  ;;  %v4266_v51 = vunpack.c.l.bf16 %v8938_v16  ;;  %v4976_v15 = vunpack.c.l.bf16 %v8979_v53  ;;  %v6193_v53 = vld [vmem:[%s9462_s1 + $0x30] sm:$0xff]  }
0x11b9   :  { %7091 = vrcp.f32 %v4797_v13  ;;  %v4839_v26 = vmul.f32 %v7084_v63, %v9152_v22  ;;  %v4970_v22 = vunpack.c.l.bf16 %v8933_v46 }
0x11bd   :  { %v7086_v40 = vpop.eup %7085 }
0x11be   :  { %v4841_v21 = vmul.f32 %v7086_v40, %v9162_v17  ;;  %v4268_v17 = vunpack.c.l.bf16 %v8950_v38  ;;  %v4971_v38 = vunpack.c.h.bf16 %v8933_v46 }
0x11c1   :  { %v7088_v34 = vpop.eup %7087 }
0x11c2   :  { %v7090_v14 = vpop.eup %7089  ;;  %v4844_v9 = vmul.f32 %v7088_v34, %v9166_v36 }
0x11c3   :  { %v7092_v18 = vpop.eup %7091  ;;  %v4843_v61 = vmul.f32 %v7090_v14, %v9169_v44  ;;  %v4972_v44 = vunpack.c.l.bf16 %v8945_v57  ;;  %v6192_v14 = vld [vmem:[%s9462_s1 + $0x28] sm:$0xff]  }
0x11c4   :  { %v4856_v12 = vpack.c.bf16 %v4844_v9, %v4840_v59  ;;  %v4845_v48 = vmul.f32 %v7092_v18, %v9172_v30  ;;  %v4267_v30 = vunpack.c.h.bf16 %v8938_v16  ;;  %v9556_v9 = vld [vmem:[#allocation30_spill] sm:$0xff] }
0x11c5   :  { %v4855_v55 = vpack.c.bf16 %v4843_v61, %v4839_v26 }
0x11c6   :  { %v4857_v52 = vpack.c.bf16 %v4845_v48, %v4841_v21 }
0x11c7   :  { %4878 = vmatprep.subr.bf16.mxu0 %v4855_v55 }
0x11c8   :  { %4921 = vmatprep.subr.bf16.mxu1 %v4857_v52  ;;  %4879 = vmatpush1.bf16.msra.mxu0 %v4854_v3 }
0x11c9   :  { %4922 = vmatpush1.bf16.msra.mxu1 %v4856_v12 }
0x11cb   :  { %6082 = vmatmul.mubr.msk.bf16.vlgmr.msra.gmra.mrb[136].mxu0 %vm110_vm0, %v6191_v4 }
0x11cc   :  { %6083 = vmatmul.mubr.msk.bf16.vlgmr.msra.gmra.mrb[136].mxu1 %vm110_vm0, %v6191_v4  ;;  %5062 = vmatprep.mubr.bf16.mxu0 %v9531_v2 }
0x11cd   :  { %5115 = vmatprep.mubr.bf16.mxu1 %v9531_v2 }
0x129e   :  { %v4910_v36 = vpop.f32.mrb[136].mxu0 }
0x129f   :  { %v4911_v6 = vadd.f32 %v4910_v36, %v9554_v31  ;;  %v4953_v33 = vpop.f32.mrb[136].mxu1  ;;  %v4912_v37 = vpop.f32.mrb[137].mxu0 }
0x12a0   :  { %v4954_v56 = vadd.f32 %v4953_v33, %v9554_v31  ;;  %v4913_v11 = vadd.f32 %v4912_v37, %v9554_v31  ;;  %v4955_v58 = vpop.f32.mrb[137].mxu1  ;;  %v4914_v16 = vpop.f32.mrb[138].mxu0 }
0x12a1   :  { %v9215_v24 = vadd.f32 %v4911_v6, %v4266_v51  ;;  %v4956_v45 = vadd.f32 %v4955_v58, %v9554_v31  ;;  %v4915_v23 = vadd.f32 %v4914_v16, %v9555_v19  ;;  %v4957_v20 = vpop.f32.mrb[138].mxu1  ;;  %v4916_v7 = vpop.f32.mrb[139].mxu0  ;;  %v9557_v51 = vld [vmem:[#allocation29_spill] sm:$0xff] }
0x12a2   :  { %v9220_v43 = vadd.f32 %v4954_v56, %v4268_v17  ;;  %v9222_v42 = vadd.f32 %v4913_v11, %v4267_v30  ;;  %v4958_v5 = vadd.f32 %v4957_v20, %v9555_v19  ;;  %v4917_v46 = vadd.f32 %v4916_v7, %v9555_v19  ;;  %v4959_v41 = vpop.f32.mrb[139].mxu1  ;;  %v9558_v11 = vld [vmem:[#allocation32_spill] sm:$0xff]  ;;  %v9559_v7 = vld [vmem:[#allocation31_spill] sm:$0xff] }
0x12a3   :  { %v9226_v57 = vadd.f32 %v4956_v45, %v4269_v0  ;;  %v4960_v35 = vadd.f32 %v4959_v41, %v9555_v19  ;;  %v4978_v39 = vpack.c.bf16 %v9215_v24, %v4970_v22  ;;  %v9235_v8 = vadd.f32 %v4915_v23, %v4270_v10 }
0x12a4   :  { %v9231_v1 = vadd.f32 %v4917_v46, %v4271_v27  ;;  %v4979_v49 = vpack.c.bf16 %v9222_v42, %v4971_v38  ;;  %v4980_v28 = vpack.c.bf16 %v9220_v43, %v4972_v44  ;;  %v9241_v13 = vadd.f32 %v4958_v5, %v4272_v54 }
0x12a5   :  { %v9237_v50 = vadd.f32 %v4960_v35, %v4273_v25  ;;  %v4981_v3 = vpack.c.bf16 %v9226_v57, %v4973_v47  ;;  %v4982_v40 = vpack.c.bf16 %v4974_v60, %v9235_v8 }
0x12a6   :  { %5030 = vmatprep.subr.bf16.mxu0 %v4979_v49  ;;  %v4983_v29 = vpack.c.bf16 %v4975_v62, %v9231_v1  ;;  %v4984_v34 = vpack.c.bf16 %v4976_v15, %v9241_v13 }
0x12a7   :  { %5083 = vmatprep.subr.bf16.mxu1 %v4981_v3  ;;  %5031 = vmatpush1.bf16.msra.mxu0 %v4978_v39  ;;  %v4985_v63 = vpack.c.bf16 %v4977_v32, %v9237_v50 }
0x12a8   :  { %5084 = vmatpush1.bf16.msra.mxu1 %v4980_v28  ;;  %5032 = vmatprep.subr.bf16.mxu0 %v4983_v29 }
0x12a9   :  { %5085 = vmatprep.subr.bf16.mxu1 %v4985_v63 }
0x12ab   :  { %5033 = vmatpush1.bf16.msra.mxu0 %v4982_v40 }
0x12ac   :  { %5086 = vmatpush1.bf16.msra.mxu1 %v4984_v34 }
0x12ae   :  { %6086 = vmatmul.mubr.msk.bf16.vlgmr.msra.gmra.mrb[140].mxu0 %vm110_vm0, %v6192_v14 }
0x12af   :  { %6088 = vmatmul.mubr.msk.bf16.vlgmr.msra.gmra.mrb[140].mxu1 %vm110_vm0, %v6192_v14  ;;  %5072 = vmatprep.mubr.bf16.mxu0 %v9531_v2 }
0x12b0   :  { %5125 = vmatprep.mubr.bf16.mxu1 %v9531_v2 }
0x12b6   :  { %6087 = vmatmul.mubr.msk.bf16.gmra.mrb[144].mxu0 %vm110_vm0, %v6193_v53 }
0x12b7   :  { %6089 = vmatmul.mubr.msk.bf16.gmra.mrb[144].mxu1 %vm110_vm0, %v6193_v53  ;;  %5332 = vmatprep.mubr.bf16.mxu0 %v9531_v2 }
0x12b8   :  { %5385 = vmatprep.mubr.bf16.mxu1 %v9531_v2 }
0x1381   :  { %v5064_v59 = vpop.f32.mrb[140].mxu0 }
0x1382   :  { %v9263_v18 = vadd.f32 %v5064_v59, %v9556_v9  ;;  %v5117_v26 = vpop.f32.mrb[140].mxu1  ;;  %v5066_v61 = vpop.f32.mrb[141].mxu0 }
0x1383   :  { %v9266_v21 = vadd.f32 %v5117_v26, %v9556_v9  ;;  %v9269_v12 = vadd.f32 %v5066_v61, %v9556_v9  ;;  %v5119_v48 = vpop.f32.mrb[141].mxu1  ;;  %v5068_v55 = vpop.f32.mrb[142].mxu0 }
0x1384   :  { %v6090_v52 = vmul.f32 -1.442695, %v9263_v18  ;;  %v9273_v4 = vadd.f32 %v5119_v48, %v9556_v9  ;;  %v9276_v22 = vadd.f32 %v5068_v55, %v9557_v51  ;;  %v5121_v17 = vpop.f32.mrb[142].mxu1  ;;  %v5070_v36 = vpop.f32.mrb[143].mxu0 }
0x1385   :  { %v6092_v44 = vmul.f32 -1.442695, %v9266_v21  ;;  %v6091_v30 = vmul.f32 -1.442695, %v9269_v12  ;;  %v9281_v0 = vadd.f32 %v5121_v17, %v9557_v51  ;;  %v9284_v10 = vadd.f32 %v5070_v36, %v9557_v51  ;;  %v5123_v31 = vpop.f32.mrb[143].mxu1 }
0x1386   :  { %7093 = vpow2.f32 %v6090_v52  ;;  %v6093_v6 = vmul.f32 -1.442695, %v9273_v4  ;;  %v6094_v33 = vmul.f32 -1.442695, %v9276_v22  ;;  %v9289_v37 = vadd.f32 %v5123_v31, %v9557_v51 }
0x1387   :  { %7095 = vpow2.f32 %v6092_v44  ;;  %v6096_v54 = vmul.f32 -1.442695, %v9281_v0  ;;  %v6095_v27 = vmul.f32 -1.442695, %v9284_v10 }
0x1388   :  { %7097 = vpow2.f32 %v6091_v30  ;;  %v6097_v25 = vmul.f32 -1.442695, %v9289_v37 }
0x1389   :  { %7099 = vpow2.f32 %v6093_v6  ;;  %v5074_v56 = vpop.f32.mrb[144].mxu0 }
0x138a   :  { %7101 = vpow2.f32 %v6094_v33  ;;  %v9295_v58 = vadd.f32 %v5074_v56, %v9558_v11  ;;  %v5127_v16 = vpop.f32.mrb[144].mxu1  ;;  %v5076_v38 = vpop.f32.mrb[145].mxu0 }
0x138b   :  { %7103 = vpow2.f32 %v6096_v54  ;;  %v9298_v47 = vadd.f32 %v5127_v16, %v9558_v11  ;;  %v9301_v45 = vadd.f32 %v5076_v38, %v9558_v11  ;;  %v5129_v19 = vpop.f32.mrb[145].mxu1  ;;  %v5078_v23 = vpop.f32.mrb[146].mxu0 }
0x138c   :  { %7105 = vpow2.f32 %v6095_v27  ;;  %v6098_v20 = vmul.f32 -1.442695, %v9295_v58  ;;  %v9305_v62 = vadd.f32 %v5078_v23, %v9559_v7  ;;  %v5131_v5 = vpop.f32.mrb[146].mxu1  ;;  %v5080_v46 = vpop.f32.mrb[147].mxu0  ;;  %v9311_v40 = vadd.f32 %v5129_v19, %v9558_v11 }
0x138d   :  { %7107 = vpow2.f32 %v6097_v25  ;;  %v6100_v41 = vmul.f32 -1.442695, %v9298_v47  ;;  %v6099_v35 = vmul.f32 -1.442695, %v9301_v45  ;;  %v5133_v32 = vpop.f32.mrb[147].mxu1  ;;  %v9315_v17 = vadd.f32 %v5131_v5, %v9559_v7 }
0x138e   :  { %7109 = vpow2.f32 %v6098_v20  ;;  %v6102_v60 = vmul.f32 -1.442695, %v9305_v62  ;;  %v6101_v55 = vmul.f32 -1.442695, %v9311_v40  ;;  %v9318_v44 = vadd.f32 %v5080_v46, %v9559_v7 }
0x138f   :  { %7111 = vpow2.f32 %v6100_v41  ;;  %v9321_v31 = vadd.f32 %v5133_v32, %v9559_v7  ;;  %v6104_v54 = vmul.f32 -1.442695, %v9315_v17 }
0x1390   :  { %v7094_v49 = vpop.eup %7093  ;;  %7113 = vpow2.f32 %v6099_v35  ;;  %v6103_v56 = vmul.f32 -1.442695, %v9318_v44 }
0x1391   :  { %v7096_v39 = vpop.eup %7095  ;;  %v5184_v3 = vadd.f32 1.0, %v7094_v49  ;;  %7115 = vpow2.f32 %v6102_v60  ;;  %v6105_v16 = vmul.f32 -1.442695, %v9321_v31 }
0x1392   :  { %v7098_v28 = vpop.eup %7097  ;;  %v5186_v15 = vadd.f32 1.0, %v7096_v39 }
0x1393   :  { %v7100_v29 = vpop.eup %7099  ;;  %7117 = vrcp.f32 %v5184_v3  ;;  %v5185_v63 = vadd.f32 1.0, %v7098_v28 }
0x1394   :  { %v7102_v34 = vpop.eup %7101  ;;  %7119 = vrcp.f32 %v5186_v15  ;;  %v5187_v14 = vadd.f32 1.0, %v7100_v29 }
0x1395   :  { %v7104_v53 = vpop.eup %7103  ;;  %7121 = vrcp.f32 %v5185_v63  ;;  %v5188_v59 = vadd.f32 1.0, %v7102_v34 }
0x1396   :  { %v7106_v9 = vpop.eup %7105  ;;  %7123 = vrcp.f32 %v5187_v14  ;;  %v5190_v26 = vadd.f32 1.0, %v7104_v53 }
0x1397   :  { %v7108_v61 = vpop.eup %7107  ;;  %7125 = vrcp.f32 %v5188_v59  ;;  %v5189_v48 = vadd.f32 1.0, %v7106_v9 }
0x1398   :  { %v7110_v52 = vpop.eup %7109  ;;  %7127 = vrcp.f32 %v5190_v26  ;;  %v5191_v51 = vadd.f32 1.0, %v7108_v61 }
0x1399   :  { %7129 = vrcp.f32 %v5189_v48  ;;  %v5192_v36 = vadd.f32 1.0, %v7110_v52  ;;  %v7112_v30 = vpop.eup %7111 }
0x139a   :  { %7131 = vrcp.f32 %v5191_v51  ;;  %v7114_v6 = vpop.eup %7113  ;;  %v5194_v29 = vadd.f32 1.0, %v7112_v30 }
0x139b   :  { %7133 = vpow2.f32 %v6101_v55  ;;  %v7116_v33 = vpop.eup %7115  ;;  %v5193_v34 = vadd.f32 1.0, %v7114_v6 }
0x139c   :  { %7135 = vrcp.f32 %v5192_v36  ;;  %v5196_v25 = vadd.f32 1.0, %v7116_v33 }
0x139d   :  { %v7118_v27 = vpop.eup %7117 }
0x139e   :  { %v7120_v11 = vpop.eup %7119  ;;  %7137 = vrcp.f32 %v5196_v25  ;;  %v5232_v7 = vmul.f32 %v7118_v27, %v9263_v18 }
0x139f   :  { %v7122_v38 = vpop.eup %7121  ;;  %7139 = vpow2.f32 %v6104_v54  ;;  %v5234_v41 = vmul.f32 %v7120_v11, %v9266_v21 }
0x13a0   :  { %v7124_v19 = vpop.eup %7123  ;;  %7141 = vpow2.f32 %v6103_v56  ;;  %v5233_v60 = vmul.f32 %v7122_v38, %v9269_v12 }
0x13a1   :  { %v7126_v23 = vpop.eup %7125  ;;  %7143 = vpow2.f32 %v6105_v16  ;;  %v5235_v28 = vmul.f32 %v7124_v19, %v9273_v4  ;;  %v6194_v16 = vld [vmem:[%s9462_s1 + $0x38] sm:$0xff]  }
0x13a2   :  { %v7128_v20 = vpop.eup %7127  ;;  %v5236_v5 = vmul.f32 %v7126_v23, %v9276_v22  ;;  %7145 = vrcp.f32 %v5194_v29 }
0x13a3   :  { %v7130_v46 = vpop.eup %7129  ;;  %v5238_v35 = vmul.f32 %v7128_v20, %v9281_v0  ;;  %7147 = vrcp.f32 %v5193_v34 }
0x13a4   :  { %v7132_v32 = vpop.eup %7131  ;;  %v5256_v49 = vpack.c.bf16 %v5236_v5, %v5232_v7  ;;  %v5237_v39 = vmul.f32 %v7130_v46, %v9284_v10 }
0x13a5   :  { %v7134_v3 = vpop.eup %7133  ;;  %v5258_v15 = vpack.c.bf16 %v5238_v35, %v5234_v41  ;;  %v5239_v18 = vmul.f32 %v7132_v32, %v9289_v37 }
0x13a6   :  { %v5257_v22 = vpack.c.bf16 %v5237_v39, %v5233_v60  ;;  %v7136_v63 = vpop.eup %7135  ;;  %v5195_v21 = vadd.f32 1.0, %v7134_v3 }
0x13a7   :  { %v5259_v14 = vpack.c.bf16 %v5239_v18, %v5235_v28  ;;  %v5240_v53 = vmul.f32 %v7136_v63, %v9295_v58 }
0x13a8   :  { %5300 = vmatprep.subr.bf16.mxu0 %v5257_v22  ;;  %v7138_v0 = vpop.eup %7137  ;;  %7149 = vrcp.f32 %v5195_v21 }
0x13a9   :  { %5353 = vmatprep.subr.bf16.mxu1 %v5259_v14  ;;  %5301 = vmatpush1.bf16.msra.mxu0 %v5256_v49  ;;  %v7140_v12 = vpop.eup %7139  ;;  %v5244_v10 = vmul.f32 %v7138_v0, %v9305_v62  ;;  %v9562_v14 = vld [vmem:[#allocation36_spill] sm:$0xff] }
0x13aa   :  { %5354 = vmatpush1.bf16.msra.mxu1 %v5258_v15  ;;  %v7142_v4 = vpop.eup %7141  ;;  %v5198_v37 = vadd.f32 1.0, %v7140_v12 }
0x13ab   :  { %v7144_v59 = vpop.eup %7143  ;;  %v5260_v9 = vpack.c.bf16 %v5244_v10, %v5240_v53  ;;  %v5197_v26 = vadd.f32 1.0, %v7142_v4 }
0x13ac   :  { %7151 = vrcp.f32 %v5198_v37  ;;  %v5199_v61 = vadd.f32 1.0, %v7144_v59  ;;  %v7146_v48 = vpop.eup %7145 }
0x13ad   :  { %7153 = vrcp.f32 %v5197_v26  ;;  %v7148_v55 = vpop.eup %7147  ;;  %v5242_v36 = vmul.f32 %v7146_v48, %v9298_v47  ;;  %v6195_v47 = vld [vmem:[%s9462_s1 + $0x40] sm:$0xff]  }
0x13ae   :  { %7155 = vrcp.f32 %v5199_v61  ;;  %v5241_v6 = vmul.f32 %v7148_v55, %v9301_v45 }
0x13b2   :  { %v7150_v52 = vpop.eup %7149 }
0x13b3   :  { %v5243_v54 = vmul.f32 %v7150_v52, %v9311_v40  ;;  %v9560_v40 = vld [vmem:[#allocation34_spill] sm:$0xff] }
0x13b6   :  { %v7152_v51 = vpop.eup %7151 }
0x13b7   :  { %v7154_v58 = vpop.eup %7153  ;;  %v5246_v62 = vmul.f32 %v7152_v51, %v9315_v17 }
0x13b8   :  { %v7156_v30 = vpop.eup %7155  ;;  %v5245_v33 = vmul.f32 %v7154_v58, %v9318_v44 }
0x13b9   :  { %v5262_v27 = vpack.c.bf16 %v5246_v62, %v5242_v36  ;;  %v5247_v25 = vmul.f32 %v7156_v30, %v9321_v31 }
0x13ba   :  { %v5261_v56 = vpack.c.bf16 %v5245_v33, %v5241_v6 }
0x13bb   :  { %v5263_v11 = vpack.c.bf16 %v5247_v25, %v5243_v54 }
0x13bc   :  { %5302 = vmatprep.subr.bf16.mxu0 %v5261_v56 }
0x13bd   :  { %5355 = vmatprep.subr.bf16.mxu1 %v5263_v11  ;;  %5303 = vmatpush1.bf16.msra.mxu0 %v5260_v9  ;;  %v9563_v9 = vld [vmem:[#allocation35_spill] sm:$0xff] }
0x13be   :  { %5356 = vmatpush1.bf16.msra.mxu1 %v5262_v27 }
0x13c0   :  { %6108 = vmatmul.mubr.msk.bf16.vlgmr.msra.gmra.mrb[148].mxu0 %vm110_vm0, %v6194_v16 }
0x13c1   :  { %6110 = vmatmul.mubr.msk.bf16.vlgmr.msra.gmra.mrb[148].mxu1 %vm110_vm0, %v6194_v16  ;;  %5342 = vmatprep.mubr.bf16.mxu0 %v9531_v2 }
0x13c2   :  { %5395 = vmatprep.mubr.bf16.mxu1 %v9531_v2 }
0x13c8   :  { %6109 = vmatmul.mubr.msk.bf16.gmra.mrb[152].mxu0 %vm110_vm0, %v6195_v47 }
0x13c9   :  { %6111 = vmatmul.mubr.msk.bf16.gmra.mrb[152].mxu1 %vm110_vm0, %v6195_v47  ;;  %5580 = vmatprep.mubr.bf16.mxu0 %v9531_v2 }
0x13ca   :  { %5623 = vmatprep.mubr.bf16.mxu1 %v9531_v2  ;;  %v9561_v2 = vld [vmem:[#allocation33_spill] sm:$0xff] }
0x1493   :  { %v5334_v45 = vpop.f32.mrb[148].mxu0 }
0x1494   :  { %v9357_v17 = vadd.f32 %v5334_v45, %v9560_v40  ;;  %v5387_v44 = vpop.f32.mrb[148].mxu1  ;;  %v5336_v31 = vpop.f32.mrb[149].mxu0 }
0x1495   :  { %v9360_v38 = vadd.f32 %v5387_v44, %v9560_v40  ;;  %v9363_v19 = vadd.f32 %v5336_v31, %v9560_v40  ;;  %v5389_v23 = vpop.f32.mrb[149].mxu1  ;;  %v5338_v20 = vpop.f32.mrb[150].mxu0 }
0x1496   :  { %v6112_v7 = vmul.f32 -1.442695, %v9357_v17  ;;  %v9367_v5 = vadd.f32 %v5389_v23, %v9560_v40  ;;  %v9370_v46 = vadd.f32 %v5338_v20, %v9561_v2  ;;  %v5391_v41 = vpop.f32.mrb[150].mxu1  ;;  %v5340_v35 = vpop.f32.mrb[151].mxu0 }
0x1497   :  { %v6114_v32 = vmul.f32 -1.442695, %v9360_v38  ;;  %v6113_v60 = vmul.f32 -1.442695, %v9363_v19  ;;  %v9375_v49 = vadd.f32 %v5391_v41, %v9561_v2  ;;  %v9378_v39 = vadd.f32 %v5340_v35, %v9561_v2  ;;  %v5393_v3 = vpop.f32.mrb[151].mxu1 }
0x1498   :  { %7157 = vpow2.f32 %v6112_v7  ;;  %v6115_v28 = vmul.f32 -1.442695, %v9367_v5  ;;  %v6116_v15 = vmul.f32 -1.442695, %v9370_v46  ;;  %v9383_v18 = vadd.f32 %v5393_v3, %v9561_v2 }
0x1499   :  { %7159 = vpow2.f32 %v6114_v32  ;;  %v6118_v29 = vmul.f32 -1.442695, %v9375_v49  ;;  %v6117_v22 = vmul.f32 -1.442695, %v9378_v39 }
0x149a   :  { %7161 = vpow2.f32 %v6113_v60  ;;  %v6119_v63 = vmul.f32 -1.442695, %v9383_v18 }
0x149b   :  { %7163 = vpow2.f32 %v6115_v28  ;;  %v5344_v34 = vpop.f32.mrb[152].mxu0 }
0x149c   :  { %7165 = vpow2.f32 %v6116_v15  ;;  %v9389_v21 = vadd.f32 %v5344_v34, %v9562_v14  ;;  %v5397_v0 = vpop.f32.mrb[152].mxu1  ;;  %v5346_v12 = vpop.f32.mrb[153].mxu0 }
0x149d   :  { %7167 = vpow2.f32 %v6118_v29  ;;  %v9392_v53 = vadd.f32 %v5397_v0, %v9562_v14  ;;  %v9395_v10 = vadd.f32 %v5346_v12, %v9562_v14  ;;  %v5399_v4 = vpop.f32.mrb[153].mxu1  ;;  %v5348_v37 = vpop.f32.mrb[154].mxu0 }
0x149e   :  { %7169 = vpow2.f32 %v6117_v22  ;;  %v6120_v59 = vmul.f32 -1.442695, %v9389_v21  ;;  %v9399_v26 = vadd.f32 %v5348_v37, %v9563_v9  ;;  %v5401_v61 = vpop.f32.mrb[154].mxu1  ;;  %v5350_v48 = vpop.f32.mrb[155].mxu0  ;;  %v9405_v25 = vadd.f32 %v5399_v4, %v9562_v14 }
0x149f   :  { %7171 = vpow2.f32 %v6119_v63  ;;  %v6122_v55 = vmul.f32 -1.442695, %v9392_v53  ;;  %v6121_v52 = vmul.f32 -1.442695, %v9395_v10  ;;  %v5403_v51 = vpop.f32.mrb[155].mxu1  ;;  %v9409_v2 = vadd.f32 %v5401_v61, %v9563_v9 }
0x14a0   :  { %7173 = vpow2.f32 %v6120_v59  ;;  %v6124_v58 = vmul.f32 -1.442695, %v9399_v26  ;;  %v6123_v23 = vmul.f32 -1.442695, %v9405_v25  ;;  %v9412_v35 = vadd.f32 %v5350_v48, %v9563_v9 }
0x14a1   :  { %7175 = vpow2.f32 %v6122_v55  ;;  %v9415_v60 = vadd.f32 %v5403_v51, %v9563_v9  ;;  %v6126_v15 = vmul.f32 -1.442695, %v9409_v2 }
0x14a2   :  { %v7158_v36 = vpop.eup %7157  ;;  %7177 = vpow2.f32 %v6121_v52  ;;  %v6125_v63 = vmul.f32 -1.442695, %v9412_v35 }
0x14a3   :  { %v7160_v62 = vpop.eup %7159  ;;  %v5454_v30 = vadd.f32 1.0, %v7158_v36  ;;  %7179 = vpow2.f32 %v6124_v58  ;;  %v6127_v14 = vmul.f32 -1.442695, %v9415_v60 }
0x14a4   :  { %v7162_v6 = vpop.eup %7161  ;;  %v5456_v33 = vadd.f32 1.0, %v7160_v62 }
0x14a5   :  { %v7164_v54 = vpop.eup %7163  ;;  %7181 = vrcp.f32 %v5454_v30  ;;  %v5455_v27 = vadd.f32 1.0, %v7162_v6 }
0x14a6   :  { %v7166_v56 = vpop.eup %7165  ;;  %7183 = vrcp.f32 %v5456_v33  ;;  %v5457_v11 = vadd.f32 1.0, %v7164_v54 }
0x14a7   :  { %v7168_v16 = vpop.eup %7167  ;;  %7185 = vrcp.f32 %v5455_v27  ;;  %v5458_v47 = vadd.f32 1.0, %v7166_v56 }
0x14a8   :  { %v7170_v45 = vpop.eup %7169  ;;  %7187 = vrcp.f32 %v5457_v11  ;;  %v5460_v40 = vadd.f32 1.0, %v7168_v16 }
0x14a9   :  { %v7172_v44 = vpop.eup %7171  ;;  %7189 = vrcp.f32 %v5458_v47  ;;  %v5459_v31 = vadd.f32 1.0, %v7170_v45 }
0x14aa   :  { %v7174_v20 = vpop.eup %7173  ;;  %7191 = vrcp.f32 %v5460_v40  ;;  %v5461_v7 = vadd.f32 1.0, %v7172_v44 }
0x14ab   :  { %7193 = vrcp.f32 %v5459_v31  ;;  %v5462_v41 = vadd.f32 1.0, %v7174_v20  ;;  %v7176_v32 = vpop.eup %7175 }
0x14ac   :  { %7195 = vrcp.f32 %v5461_v7  ;;  %v7178_v3 = vpop.eup %7177  ;;  %v5464_v33 = vadd.f32 1.0, %v7176_v32 }
0x14ad   :  { %7197 = vpow2.f32 %v6123_v23  ;;  %v7180_v28 = vpop.eup %7179  ;;  %v5463_v27 = vadd.f32 1.0, %v7178_v3 }
0x14ae   :  { %7199 = vrcp.f32 %v5462_v41  ;;  %v5466_v22 = vadd.f32 1.0, %v7180_v28 }
0x14af   :  { %v7182_v29 = vpop.eup %7181 }
0x14b0   :  { %v7184_v34 = vpop.eup %7183  ;;  %7201 = vrcp.f32 %v5466_v22  ;;  %v5502_v59 = vmul.f32 %v7182_v29, %v9357_v17 }
0x14b1   :  { %v7186_v0 = vpop.eup %7185  ;;  %7203 = vpow2.f32 %v6126_v15  ;;  %v5504_v48 = vmul.f32 %v7184_v34, %v9360_v38  ;;  %v6196_v34 = vld [vmem:[%s9462_s1 + $0x48] sm:$0xff]   ;;  %s7254_s1 = smov [#allocation2]  }
0x14b2   :  { %v7188_v12 = vpop.eup %7187  ;;  %7205 = vpow2.f32 %v6125_v63  ;;  %v5503_v51 = vmul.f32 %v7186_v0, %v9363_v19  ;;  %s5676_s17 = sshll.u32 %s7254_s1, 4  ;;  %s5677_s17 = int_to_ptr.vmem [resolvable:$true] %s5676_s17 }
0x14b3   :  { %v7190_v4 = vpop.eup %7189  ;;  %7207 = vpow2.f32 %v6127_v14  ;;  %v5505_v30 = vmul.f32 %v7188_v12, %v9367_v5  ;;  %s7229_s2 = scalar_lea.vmem %s5677_s17, 2048  ;;  %p7234_p1 = scmp.lt.s32.totalorder %s5677_s17, %s5677_s17 }
0x14b4   :  { %v7192_v37 = vpop.eup %7191  ;;  %v5506_v9 = vmul.f32 %v7190_v4, %v9370_v46  ;;  %7209 = vrcp.f32 %v5464_v33  ;;  %p7230_p0 = scmp.ne.s32.totalorder %s5677_s17, %s7229_s2  ;;  %p7235_p2 = scmp.lt.s32.totalorder %s7229_s2, %s7229_s2 }
0x14b5   :  { %v7194_v61 = vpop.eup %7193  ;;  %v5508_v55 = vmul.f32 %v7192_v37, %v9375_v49  ;;  %7211 = vrcp.f32 %v5463_v27 }
0x14b6   :  { %v7196_v52 = vpop.eup %7195  ;;  %v5522_v58 = vpack.c.bf16 %v5506_v9, %v5502_v59  ;;  %v5507_v36 = vmul.f32 %v7194_v61, %v9378_v39  ;;  %p7236_p3 = por %p7235_p2, %p7234_p1 }
0x14b7   :  { %v7198_v62 = vpop.eup %7197  ;;  %v5524_v6 = vpack.c.bf16 %v5508_v55, %v5504_v48  ;;  %v5509_v17 = vmul.f32 %v7196_v52, %v9383_v18 }
0x14b8   :  { %v5523_v46 = vpack.c.bf16 %v5507_v36, %v5503_v51  ;;  %v7200_v54 = vpop.eup %7199  ;;  %v5465_v38 = vadd.f32 1.0, %v7198_v62  ;;  %p7237_p4 = pnand %p7236_p3, %p7230_p0 }
0x14b9   :  { %v5525_v56 = vpack.c.bf16 %v5509_v17, %v5505_v30  ;;  %v5510_v11 = vmul.f32 %v7200_v54, %v9389_v21 }
0x14ba   :  { %5548 = vmatprep.subr.bf16.mxu0 %v5523_v46  ;;  %v7202_v49 = vpop.eup %7201  ;;  %7213 = vrcp.f32 %v5465_v38 }
0x14bb   :  { %5591 = vmatprep.subr.bf16.mxu1 %v5525_v56  ;;  %5549 = vmatpush1.bf16.msra.mxu0 %v5522_v58  ;;  %v7204_v19 = vpop.eup %7203  ;;  %v5514_v39 = vmul.f32 %v7202_v49, %v9399_v26 }
0x14bc   :  { %5592 = vmatpush1.bf16.msra.mxu1 %v5524_v6  ;;  %v7206_v5 = vpop.eup %7205  ;;  %v5468_v18 = vadd.f32 1.0, %v7204_v19 }
0x14bd   :  { %v7208_v16 = vpop.eup %7207  ;;  %v5526_v47 = vpack.c.bf16 %v5514_v39, %v5510_v11  ;;  %v5467_v45 = vadd.f32 1.0, %v7206_v5 }
0x14be   :  { %7215 = vrcp.f32 %v5468_v18  ;;  %v5469_v40 = vadd.f32 1.0, %v7208_v16  ;;  %v7210_v44 = vpop.eup %7209 }
0x14bf   :  { %7217 = vrcp.f32 %v5467_v45  ;;  %v7212_v31 = vpop.eup %7211  ;;  %v5512_v7 = vmul.f32 %v7210_v44, %v9392_v53  ;;  %v5538_v53 = vpop.permute.xlu1 %5537 }
0x14c0   :  { %7219 = vrcp.f32 %v5469_v40  ;;  %v5511_v32 = vmul.f32 %v7212_v31, %v9395_v10  ;;  %v5533_v10 = vpop.permute.xlu0 %5532 }
0x14c4   :  { %v7214_v23 = vpop.eup %7213 }
0x14c5   :  { %v5513_v28 = vmul.f32 %v7214_v23, %v9405_v25 }
0x14c8   :  { %v7216_v20 = vpop.eup %7215 }
0x14c9   :  { %v7218_v21 = vpop.eup %7217  ;;  %v5516_v26 = vmul.f32 %v7216_v20, %v9409_v2 }
0x14ca   :  { %v7220_v41 = vpop.eup %7219  ;;  %v5515_v3 = vmul.f32 %v7218_v21, %v9412_v35 }
0x14cb   :  { %v5528_v15 = vpack.c.bf16 %v5516_v26, %v5512_v7  ;;  %v5517_v29 = vmul.f32 %v7220_v41, %v9415_v60 }
0x14cc   :  { %v5527_v22 = vpack.c.bf16 %v5515_v3, %v5511_v32 }
0x14cd   :  { %v5529_v63 = vpack.c.bf16 %v5517_v29, %v5513_v28 }
0x14ce   :  { %5550 = vmatprep.subr.bf16.mxu0 %v5527_v22 }
0x14cf   :  { %5593 = vmatprep.subr.bf16.mxu1 %v5529_v63  ;;  %5551 = vmatpush1.bf16.msra.mxu0 %v5526_v47 }
0x14d0   :  { %5594 = vmatpush1.bf16.msra.mxu1 %v5528_v15 }
0x14d2   :  { %6129 = vmatmul.mubr.msk.bf16.vlgmr.msra.gmra.mrb[156].mxu0 %vm110_vm0, %v6196_v34 }
0x14d3   :  { %6130 = vmatmul.mubr.msk.bf16.vlgmr.msra.gmra.mrb[156].mxu1 %vm110_vm0, %v6196_v34 }
0x15a5   :  { %v5582_v25 = vpop.f32.mrb[156].mxu0 }
0x15a6   :  { %v5583_v2 = vadd.f32 %v5582_v25, %v5533_v10  ;;  %v5625_v35 = vpop.f32.mrb[156].mxu1  ;;  %v5584_v60 = vpop.f32.mrb[157].mxu0 }
0x15a7   :  { %v5626_v14 = vadd.f32 %v5625_v35, %v5533_v10  ;;  %v5585_v0 = vadd.f32 %v5584_v60, %v5533_v10  ;;  %v5627_v12 = vpop.f32.mrb[157].mxu1  ;;  %v5586_v4 = vpop.f32.mrb[158].mxu0 }
0x15a8   :  { %v5634_v37 = vadd.f32 %v5583_v2, %v9215_v24  ;;  %v5628_v59 = vadd.f32 %v5627_v12, %v5533_v10  ;;  %v5587_v9 = vadd.f32 %v5586_v4, %v5538_v53  ;;  %v5629_v61 = vpop.f32.mrb[158].mxu1  ;;  %v5588_v48 = vpop.f32.mrb[159].mxu0 }
0x15a9   :  { %v5636_v55 = vadd.f32 %v5626_v14, %v9220_v43  ;;  %v5635_v52 = vadd.f32 %v5585_v0, %v9222_v42  ;;  %v5630_v51 = vadd.f32 %v5629_v61, %v5538_v53  ;;  %v5589_v58 = vadd.f32 %v5588_v48, %v5538_v53  ;;  %v5631_v36 = vpop.f32.mrb[159].mxu1 }
0x15aa   :  { %v5637_v62 = vadd.f32 %v5628_v59, %v9226_v57  ;;  %v5638_v30 = vadd.f32 %v5587_v9, %v9235_v8  ;;  %v5632_v6 = vadd.f32 %v5631_v36, %v5538_v53 }
0x15ab   :  { %v6147_v17 = vpack.c.bf16 %v5635_v52, %v5634_v37  ;;  %v5640_v24 = vadd.f32 %v5630_v51, %v9241_v13  ;;  %v5639_v33 = vadd.f32 %v5589_v58, %v9231_v1 }
0x15ac   :  { %v6148_v46 = vpack.c.bf16 %v5637_v62, %v5636_v55  ;;  %v5641_v43 = vadd.f32 %v5632_v6, %v9237_v50 }
0x15ad   :  { %5667 = vst [vmem:[#allocation2 + $0x30] sm:$0xff] %v6147_v17  ;;  %v6149_v42 = vpack.c.bf16 %v5639_v33, %v5638_v30 }
0x15ae   :  { %5668 = vst [vmem:[#allocation2 + $0x38] sm:$0xff] %v6148_v46  ;;  %v6150_v54 = vpack.c.bf16 %v5641_v43, %v5640_v24 }
0x15af   :  { %5669 = vst [vmem:[#allocation2 + $0x70] sm:$0xff] %v6149_v42 }
0x15b0   :  { %5670 = vst [vmem:[#allocation2 + $0x78] sm:$0xff] %v6150_v54 }
0x15b1   :  { %7240 = shalt.err (!%p7237_p4)
}
0x15b2   :  { %s7241_s20 = scalar_lea.hbm %s9464_s3, 2048 }
0x15b3   :  { %p7242_p5 = scmp.ne.s32.totalorder %s9464_s3, %s7241_s20  ;;  %p7245_p6 = scmp.lt.u32.totalorder %s7241_s20, %s9464_s3 }
0x15b5   :  { %p7247_p7 = pnand %p7245_p6, %p7242_p5 }
0x15b7   :  { %7250 = shalt.err (!%p7247_p7)
}
0x15b8   :  { %s7255_s0 = smov 1024   ;;  %s7256_s25 = smov 64  }
0x15b9   :  { %5682 = dma.vmem_to_hbm [thread:$0]  %s5677_s17, 2048, %s9464_s3, [#allocation3], %s7255_s0, %s7255_s0, %s7256_s25  }
0x15ba   :  { %7251 = dma.done.wait [#allocation3], 2048  }
0x15bb   :  { %7252 = vsyncadd [#allocation3], 4294965248 }
0x15bc   :  { %5686 = vsyncpa [#allocation3], 1 }

</bundles_post_ra>
